<compile_context>
chip_gen: v7x
topology: tpu7x:2x2x1
jax: 0.10.0
libtpu: 0.0.40
codegen_flags: <defaults>
</compile_context>

<pallas_src>
import functools

import jax
import jax.numpy as jnp
from jax import lax
from jax.experimental import pallas as pl
from jax.experimental.pallas import tpu as pltpu


LP = 8  # left zero-pad columns in the hidden scratch -> interior store is sublane-aligned


def _round_up(x, m):
    return (x + m - 1) // m * m


def _vmem_capacity_bytes():
    try:
        return int(pltpu.get_tpu_info().vmem_capacity_bytes)
    except Exception:
        return 64 << 20  # conservative fallback (v7x per-core VMEM)


def _choose_row_tile(ho, wo, *, n, stride, w_cols, ch, cin, w, budget):
    """Pick the output-row slab TH.

    Constraints: TH divides Ho and TH*Wo is a multiple of 128 (lane-dense,
    unmasked output stores) unless TH == Ho (full-dim block).
    Heuristic: make the slab as fat as the VMEM budget allows, targeting
    M = TH*Wo >= 512 (amortize the ~0.35us/step overhead and fill the MXU),
    while keeping at least ~4 total grid steps so v7x's two TensorCores both
    get work and the software pipeline has depth.
    """
    cands = [d for d in range(1, ho + 1)
             if ho % d == 0 and ((d * wo) % 128 == 0 or d == ho)]
    if not cands:
        cands = [ho]

    def vmem_bytes(d):
        rows_in = d * stride + (2 if stride == 1 else 1)
        scratch = rows_in * w_cols * ch * 2                 # bf16 hid scratch
        x_blk = 2 * (rows_in + 2) * w * cin * 2             # double-buffered inputs
        out_blk = 2 * d * wo * max(ch, 128) * 4             # output blocks
        tmp = 6 * d * wo * ch * 4                           # acc / taps / dw temporaries
        return scratch + x_blk + out_blk + tmp

    fit = [d for d in cands if vmem_bytes(d) <= budget] or [cands[0]]
    big = [d for d in fit if d * wo >= 512]
    if big:
        pool = [d for d in big if n * (ho // d) >= 4] or big
        capped = [d for d in pool if d * wo <= 2048]
        return max(capped) if capped else min(pool)
    pool = [d for d in fit if n * (ho // d) >= 4] or fit
    return max(pool)


# ----------------------------------------------------------------------------
# Fused kernel
# ----------------------------------------------------------------------------
def _inverted_residual_kernel(*refs, stride, th, W, Wo, cin, oup, cop,
                              has_expand, use_res, has_bot, tc_cols):
    refs = list(refs)
    xt_ref = refs.pop(0)                       # (1, W, cin)       top halo row
    xm_ref = refs.pop(0)                       # (row_step, W, cin) center rows
    xb_ref = refs.pop(0) if has_bot else None  # (1, W, cin)       bottom halo row (stride=1)
    xr_ref = refs.pop(0) if use_res else None  # (cin, m) f32      residual tile
    we_ref, be_ref, wd_ref, bd_ref, wp_ref, bp_ref, o_ref, hid_ref = refs

    s = stride
    row_step = th * s
    tin = hid_ref.shape[0]
    ch = hid_ref.shape[-1]
    rb = pl.program_id(1)
    last_rb = pl.num_programs(1) - 1

    def expand(x2d):
        """1x1 expand conv (+folded BN) + ReLU6: (m, cin) bf16 -> (m, ch) f32."""
        if has_expand:
            # NOTE: K = cin is small (lane-sparse MXU); structural for this layer.
            h = jnp.dot(x2d, we_ref[...], preferred_element_type=jnp.float32)
            return jnp.clip(h + be_ref[...], 0.0, 6.0)
        h = x2d.astype(jnp.float32)
        if ch > cin:
            h = jnp.concatenate(
                [h, jnp.zeros((x2d.shape[0], ch - cin), jnp.float32)], axis=-1)
        return h

    # ---- stage 1: expand into the padded VMEM scratch. Interior starts at the
    # sublane-aligned column LP (unmasked store); the two conv-padding columns
    # are the only narrow stores. Row halos handled below.
    xm2d = xm_ref[...].reshape(row_step * W, cin)
    hm = expand(xm2d).reshape(row_step, W, ch).astype(hid_ref.dtype)
    hid_ref[1:1 + row_step, LP:LP + W, :] = hm

    zrow = jnp.zeros((1, tc_cols, ch), hid_ref.dtype)
    zcol = jnp.zeros((tin, 1, ch), hid_ref.dtype)
    hid_ref[:, LP - 1:LP, :] = zcol            # depthwise left zero padding
    hid_ref[:, LP + W:LP + W + 1, :] = zcol    # depthwise right zero padding

    @pl.when(rb > 0)
    def _():
        ht = expand(xt_ref[...].reshape(W, cin)).reshape(1, W, ch)
        hid_ref[0:1, LP:LP + W, :] = ht.astype(hid_ref.dtype)

    @pl.when(rb == 0)
    def _():
        hid_ref[0:1, :, :] = zrow              # conv top zero padding

    if has_bot:                                # stride == 1 only
        @pl.when(rb < last_rb)
        def _():
            hb = expand(xb_ref[...].reshape(W, cin)).reshape(1, W, ch)
            hid_ref[tin - 1:tin, LP:LP + W, :] = hb.astype(hid_ref.dtype)

        @pl.when(rb == last_rb)
        def _():
            hid_ref[tin - 1:tin, :, :] = zrow  # conv bottom zero padding

    # ---- stage 2: depthwise 3x3 (+folded BN) + ReLU6 (f32 accumulation)
    wdv = wd_ref[...]                          # (3, 3, ch) f32, hoisted once
    acc = jnp.zeros((th, Wo, ch), jnp.float32)
    if s == 1:
        # One load + one bf16->f32 convert per kh row-slab; the kw = -1/+1 taps
        # are sublane-shifted slices of the same loaded value (XLU work) instead
        # of 9 misaligned ref loads + converts.
        for kh in range(3):
            rowv = hid_ref[kh:kh + th, :, :].astype(jnp.float32)   # (th, tc_cols, ch)
            taps = (rowv[:, LP - 1:LP - 1 + W, :],                  # kw=0 (left pad col)
                    rowv[:, LP:LP + W, :],                          # kw=1 (aligned center)
                    rowv[:, LP + 1:LP + 1 + W, :])                  # kw=2 (right pad col)
            for kw in range(3):
                acc = acc + taps[kw] * wdv[kh:kh + 1, kw:kw + 1, :]
    else:
        for kh in range(3):
            for kw in range(3):
                patch = hid_ref[pl.ds(kh, th, stride=s),
                                pl.ds(LP - 1 + kw, Wo, stride=s), :]
                acc = acc + patch.astype(jnp.float32) * wdv[kh:kh + 1, kw:kw + 1, :]
    dw = jnp.clip(acc + bd_ref[...], 0.0, 6.0)

    # ---- stage 3: project 1x1 conv (+folded BN) [+ residual]
    # w_proj is pre-transposed to (cop, ch); contracting on ch gives the output
    # tile directly in (cop, m) layout -> lane-dense store, no 128-wide f32
    # transpose and no MXU work on zero-padded output channels.
    m = th * Wo
    dw2d = dw.reshape(m, ch).astype(jnp.bfloat16)
    yt = lax.dot_general(wp_ref[...], dw2d,
                         dimension_numbers=(((1,), (1,)), ((), ())),
                         preferred_element_type=jnp.float32)        # (cop, m)
    yt = yt + bp_ref[...]
    y = yt if cop == oup else yt[:oup, :]
    if use_res:
        # residual supplied already in (cin, m) f32 layout; only real channels added
        y = y + xr_ref[...]
    o_ref[...] = y.astype(o_ref.dtype)


# ----------------------------------------------------------------------------
# Wrapper (pallas_call plumbing)
# ----------------------------------------------------------------------------
def inverted_residual_forward(x_nchw, kparams, *, inp, oup, stride, expand_ratio,
                              out_dtype=jnp.float32):
    """MobileNetV2 InvertedResidual forward (NCHW in, NCHW out)."""
    N, C, H, W = x_nchw.shape
    assert C == inp and stride in (1, 2)
    has_expand = expand_ratio != 1
    use_res = (stride == 1) and (inp == oup)
    ch = kparams["w_dw"].shape[-1]
    cop = kparams["w_proj_t"].shape[0]

    Ho = (H - 1) // stride + 1
    Wo = (W - 1) // stride + 1

    cap = _vmem_capacity_bytes()
    vmem_limit = int(min(cap, 128 << 20) * 3 // 4)   # ~48 MiB on v7x, ~96 MiB on v5e/v6e
    tc_cols = _round_up(LP + W + 1, 8)
    th = _choose_row_tile(Ho, Wo, n=N, stride=stride, w_cols=tc_cols, ch=ch,
                          cin=inp, w=W, budget=int(vmem_limit * 0.8))
    n_row_blocks = Ho // th
    row_step = th * stride
    assert n_row_blocks * th == Ho
    assert n_row_blocks * row_step == H, "spatial dims must tile evenly"
    has_bot = stride == 1
    tin = row_step + (2 if stride == 1 else 1)

    # Single NCHW -> NHWC relayout fused with the bf16 downcast (halves the DMA
    # bytes the kernel reads).  In a stacked network, keep activations NHWC/bf16
    # between blocks (and set out_dtype=bf16) so this pass disappears entirely.
    x = jnp.transpose(x_nchw, (0, 2, 3, 1)).astype(jnp.bfloat16)

    kernel = functools.partial(
        _inverted_residual_kernel, stride=stride, th=th, W=W, Wo=Wo, cin=inp,
        oup=oup, cop=cop, has_expand=has_expand, use_res=use_res,
        has_bot=has_bot, tc_cols=tc_cols)

    def top_map(n, r):   # halo row above the slab (clamped; zero row at rb==0)
        return (n, jnp.maximum(r * row_step - 1, 0), 0, 0)

    def mid_map(n, r):   # center rows of the slab
        return (n, r, 0, 0)

    def bot_map(n, r):   # halo row below the slab (clamped; zero row at last rb)
        return (n, jnp.minimum(r * row_step + row_step, H - 1), 0, 0)

    rep2 = lambda n, r: (0, 0)
    rep3 = lambda n, r: (0, 0, 0)

    in_specs = [pl.BlockSpec((None, 1, W, inp), top_map),
                pl.BlockSpec((None, row_step, W, inp), mid_map)]
    inputs = [x, x]
    if has_bot:
        in_specs.append(pl.BlockSpec((None, 1, W, inp), bot_map))
        inputs.append(x)
    if use_res:
        # residual tile in (cin, m) layout: a free reshape view of the NCHW input
        in_specs.append(pl.BlockSpec((None, inp, th * Wo), lambda n, r: (n, 0, r)))
        inputs.append(x_nchw.reshape(N, inp, H * W))
    in_specs += [pl.BlockSpec((inp, ch), rep2),
                 pl.BlockSpec((1, ch), rep2),
                 pl.BlockSpec((3, 3, ch), rep3),
                 pl.BlockSpec((1, ch), rep2),
                 pl.BlockSpec((cop, ch), rep2),
                 pl.BlockSpec((cop, 1), rep2)]
    inputs += [kparams["w_exp"], kparams["b_exp"], kparams["w_dw"],
               kparams["b_dw"], kparams["w_proj_t"], kparams["b_proj"]]

    out3 = pl.pallas_call(
        kernel,
        out_shape=jax.ShapeDtypeStruct((N, oup, Ho * Wo), out_dtype),
        grid=(N, n_row_blocks),
        in_specs=in_specs,
        out_specs=pl.BlockSpec((None, oup, th * Wo), lambda n, r: (n, 0, r)),
        scratch_shapes=[pltpu.VMEM((tin, tc_cols, ch), jnp.bfloat16)],
        compiler_params=pltpu.CompilerParams(
            dimension_semantics=("parallel", "parallel"),
            vmem_limit_bytes=vmem_limit),
    )(*inputs)

    return out3.reshape(N, oup, Ho, Wo)   # already NCHW; reshape is layout-free


# ----------------------------------------------------------------------------
# Parameter construction (deterministic, synthetic) + one-time kernel prep
# ----------------------------------------------------------------------------
def _fold_bn(gamma, beta, mean, var, eps=1e-5):
    scale = gamma / jnp.sqrt(var + eps)
    bias = beta - mean * scale
    return scale, bias


def make_params(key, inp, oup, expand_ratio):
    hidden = int(round(inp * expand_ratio))
    ks = jax.random.split(key, 15)

    def bn_params(k0, k1, k2, k3, c):
        gamma = 1.0 + 0.1 * jax.random.normal(k0, (c,), jnp.float32)
        beta = 0.1 * jax.random.normal(k1, (c,), jnp.float32)
        mean = 0.1 * jax.random.normal(k2, (c,), jnp.float32)
        var = 0.5 + 0.5 * jnp.abs(jax.random.normal(k3, (c,), jnp.float32))
        return _fold_bn(gamma, beta, mean, var)

    params = {}
    params["w_exp"] = 0.2 * jax.random.normal(ks[0], (inp, hidden), jnp.float32)
    params["s_exp"], params["b_exp"] = bn_params(ks[1], ks[2], ks[3], ks[4], hidden)
    params["w_dw"] = 0.2 * jax.random.normal(ks[5], (3, 3, hidden), jnp.float32)
    params["s_dw"], params["b_dw"] = bn_params(ks[6], ks[7], ks[8], ks[9], hidden)
    params["w_proj"] = 0.2 * jax.random.normal(ks[10], (hidden, oup), jnp.float32)
    params["s_proj"], params["b_proj"] = bn_params(ks[11], ks[12], ks[13], ks[14], oup)
    return params


def prepare_kernel_params(params, *, inp, oup, expand_ratio):
    """Fold BN scales into conv weights, pad the hidden channel dim to 128 lanes,
    pre-transpose the project weight to (cop, ch) with cop = round_up(oup, 8),
    and cast MXU weights to bf16 (one-time transform, outside the hot path)."""
    hidden = int(round(inp * expand_ratio))
    ch = _round_up(hidden, 128)
    cop = _round_up(oup, 8)
    kp = {}
    if expand_ratio != 1:
        w = params["w_exp"] * params["s_exp"][None, :]
        kp["w_exp"] = jnp.zeros((inp, ch), jnp.bfloat16).at[:, :hidden].set(
            w.astype(jnp.bfloat16))
        kp["b_exp"] = jnp.zeros((1, ch), jnp.float32).at[:, :hidden].set(
            params["b_exp"])
    else:  # no expand conv: dummy (unused) refs keep one kernel signature
        kp["w_exp"] = jnp.zeros((inp, ch), jnp.bfloat16)
        kp["b_exp"] = jnp.zeros((1, ch), jnp.float32)
    wd = params["w_dw"] * params["s_dw"][None, None, :]
    kp["w_dw"] = jnp.zeros((3, 3, ch), jnp.float32).at[:, :, :hidden].set(wd)
    kp["b_dw"] = jnp.zeros((1, ch), jnp.float32).at[:, :hidden].set(params["b_dw"])
    wpt = (params["w_proj"] * params["s_proj"][None, :]).T            # (oup, hidden)
    kp["w_proj_t"] = jnp.zeros((cop, ch), jnp.bfloat16).at[:oup, :hidden].set(
        wpt.astype(jnp.bfloat16))
    kp["b_proj"] = jnp.zeros((cop, 1), jnp.float32).at[:oup, 0].set(params["b_proj"])
    return kp


# ----------------------------------------------------------------------------
# Pure-JAX (lax.conv) NCHW reference for validation
# ----------------------------------------------------------------------------
def reference_forward(x_nchw, params, *, inp, oup, stride, expand_ratio):
    hidden = int(round(inp * expand_ratio))
    use_res = (stride == 1) and (inp == oup)

    def conv(x, w_oihw, s, groups, pad):
        return jax.lax.conv_general_dilated(
            x, w_oihw, (s, s), [(pad, pad), (pad, pad)],
            dimension_numbers=("NCHW", "OIHW", "NCHW"),
            feature_group_count=groups)

    def affine(y, scale, bias):
        return y * scale[None, :, None, None] + bias[None, :, None, None]

    h = x_nchw
    if expand_ratio != 1:
        w1 = params["w_exp"].T.reshape(hidden, inp, 1, 1)
        h = jnp.clip(affine(conv(h, w1, 1, 1, 0), params["s_exp"], params["b_exp"]),
                     0.0, 6.0)
    wd = jnp.transpose(params["w_dw"], (2, 0, 1))[:, None, :, :]
    h = jnp.clip(affine(conv(h, wd, stride, hidden, 1), params["s_dw"], params["b_dw"]),
                 0.0, 6.0)
    w2 = params["w_proj"].T.reshape(oup, hidden, 1, 1)
    h = affine(conv(h, w2, 1, 1, 0), params["s_proj"], params["b_proj"])
    return x_nchw + h if use_res else h


# ----------------------------------------------------------------------------
if __name__ == "__main__":
    key = jax.random.PRNGKey(0)

    configs = [
        # stride=1, inp == oup -> residual active; whole-image slabs, 4 grid steps.
        dict(N=4, H=16, W=16, inp=8, oup=8, stride=1, expand_ratio=6),
        # stride=2 downsampling block (no residual, no bottom-halo input).
        dict(N=4, H=16, W=16, inp=8, oup=16, stride=2, expand_ratio=6),
    ]

    for cfg in configs:
        key, k_x, k_p = jax.random.split(key, 3)
        N, H, W = cfg["N"], cfg["H"], cfg["W"]
        inp, oup = cfg["inp"], cfg["oup"]
        stride, er = cfg["stride"], cfg["expand_ratio"]

        x = jax.random.normal(k_x, (N, inp, H, W), jnp.float32)   # NCHW like PyTorch
        params = make_params(k_p, inp, oup, er)
        kparams = prepare_kernel_params(params, inp=inp, oup=oup, expand_ratio=er)

        fwd = jax.jit(functools.partial(inverted_residual_forward,
                                        inp=inp, oup=oup, stride=stride,
                                        expand_ratio=er))
        out = jax.block_until_ready(fwd(x, kparams))

        ref = reference_forward(x, params, inp=inp, oup=oup, stride=stride,
                                expand_ratio=er)
        Ho = (H - 1) // stride + 1
        Wo = (W - 1) // stride + 1
        assert out.shape == (N, oup, Ho, Wo)
        # bf16 MXU inputs / bf16 hidden storage -> compare against the pure-f32
        # lax.conv reference with a correspondingly loosened tolerance.
        err = jnp.abs(out - ref)
        assert bool(jnp.all(err <= 5e-2 + 5e-2 * jnp.abs(ref))), \
            "mismatch vs lax.conv reference"
        assert float(jnp.mean(err)) < 1e-2, "mean error too large vs lax.conv reference"

    print("KERNEL_OK")
</pallas_src>

<mosaic_0001>
module attributes {stable_mosaic.version = 11 : i64} {
  func.func @_inverted_residual_kernel(%arg0: i32, %arg1: i32, %arg2: memref<1x1x16x8xbf16, #tpu.memory_space<vmem>>, %arg3: memref<1x16x16x8xbf16, #tpu.memory_space<vmem>>, %arg4: memref<1x1x16x8xbf16, #tpu.memory_space<vmem>>, %arg5: memref<1x8x256xf32, #tpu.memory_space<vmem>>, %arg6: memref<8x128xbf16, #tpu.memory_space<vmem>>, %arg7: memref<1x128xf32, #tpu.memory_space<vmem>>, %arg8: memref<3x3x128xf32, #tpu.memory_space<vmem>>, %arg9: memref<1x128xf32, #tpu.memory_space<vmem>>, %arg10: memref<8x128xbf16, #tpu.memory_space<vmem>>, %arg11: memref<8x1xf32, #tpu.memory_space<vmem>>, %arg12: memref<1x8x256xf32, #tpu.memory_space<vmem>>, %arg13: memref<18x32x128xbf16, #tpu.memory_space<vmem>>) attributes {dimension_semantics = [#tpu.dimension_semantics<parallel>, #tpu.dimension_semantics<parallel>], iteration_bounds = array<i64: 4, 1>, scalar_prefetch = 0 : i64, scratch_operands = 1 : i64, tpu.core_type = #tpu.core_type<tc>, window_params = [{transform_indices = @transform_0, window_bounds = array<i64: 1, 1, 16, 8>}, {transform_indices = @transform_1, window_bounds = array<i64: 1, 16, 16, 8>}, {transform_indices = @transform_2, window_bounds = array<i64: 1, 1, 16, 8>}, {transform_indices = @transform_3, window_bounds = array<i64: 1, 8, 256>}, {pipeline_mode = #tpu.pipeline_mode<synchronous>, transform_indices = @transform_4, window_bounds = array<i64: 8, 128>}, {pipeline_mode = #tpu.pipeline_mode<synchronous>, transform_indices = @transform_5, window_bounds = array<i64: 1, 128>}, {pipeline_mode = #tpu.pipeline_mode<synchronous>, transform_indices = @transform_6, window_bounds = array<i64: 3, 3, 128>}, {pipeline_mode = #tpu.pipeline_mode<synchronous>, transform_indices = @transform_7, window_bounds = array<i64: 1, 128>}, {pipeline_mode = #tpu.pipeline_mode<synchronous>, transform_indices = @transform_8, window_bounds = array<i64: 8, 128>}, {pipeline_mode = #tpu.pipeline_mode<synchronous>, transform_indices = @transform_9, window_bounds = array<i64: 8, 1>}, {transform_indices = @transform_10, window_bounds = array<i64: 1, 8, 256>}]} {
    %c0 = arith.constant 0 : index
    %c0_0 = arith.constant 0 : index
    %c0_1 = arith.constant 0 : index
    %c0_2 = arith.constant 0 : index
    %0 = vector.load %arg3[%c0, %c0_0, %c0_1, %c0_2] : memref<1x16x16x8xbf16, #tpu.memory_space<vmem>>, vector<1x16x16x8xbf16>
    %1 = vector.shape_cast %0 : vector<1x16x16x8xbf16> to vector<16x16x8xbf16>
    %2 = vector.shape_cast %1 : vector<16x16x8xbf16> to vector<256x8xbf16>
    %c0_3 = arith.constant 0 : index
    %c0_4 = arith.constant 0 : index
    %3 = vector.load %arg6[%c0_3, %c0_4] : memref<8x128xbf16, #tpu.memory_space<vmem>>, vector<8x128xbf16>
    %cst = arith.constant dense<0.000000e+00> : vector<256x128xf32>
    %4 = tpu.matmul %2, %3, %cst {dimension_numbers = #tpu.dot_dimension_numbers<[1], [0], [0], [1], [0, 0, 1, 1], [], []>} : vector<256x8xbf16>, vector<8x128xbf16>, vector<256x128xf32> -> vector<256x128xf32>
    %c0_5 = arith.constant 0 : index
    %c0_6 = arith.constant 0 : index
    %5 = vector.load %arg7[%c0_5, %c0_6] : memref<1x128xf32, #tpu.memory_space<vmem>>, vector<1x128xf32>
    %6 = vector.broadcast %5 : vector<1x128xf32> to vector<256x128xf32>
    %7 = arith.addf %4, %6 : vector<256x128xf32>
    %cst_7 = arith.constant 0.000000e+00 : f32
    %cst_8 = arith.constant 6.000000e+00 : f32
    %8 = vector.broadcast %cst_7 : f32 to vector<256x128xf32>
    %9 = arith.maximumf %8, %7 : vector<256x128xf32>
    %10 = vector.broadcast %cst_8 : f32 to vector<256x128xf32>
    %11 = arith.minimumf %10, %9 : vector<256x128xf32>
    %12 = vector.shape_cast %11 : vector<256x128xf32> to vector<16x16x128xf32>
    %13 = arith.truncf %12 : vector<16x16x128xf32> to vector<16x16x128xbf16>
    %c1 = arith.constant 1 : index
    %c8 = arith.constant 8 : index
    %c0_9 = arith.constant 0 : index
    %14 = vector.load %arg13[%c1, %c8, %c0_9] : memref<18x32x128xbf16, #tpu.memory_space<vmem>>, vector<16x16x128xbf16>
    tpu.vector_store %arg13[%c1, %c8, %c0_9], %13 {strides = array<i32>} : memref<18x32x128xbf16, #tpu.memory_space<vmem>>, vector<16x16x128xbf16>,
    %cst_10 = arith.constant 0.000000e+00 : bf16
    %15 = vector.broadcast %cst_10 : bf16 to vector<1x32x128xbf16>
    %cst_11 = arith.constant 0.000000e+00 : bf16
    %16 = vector.broadcast %cst_11 : bf16 to vector<18x1x128xbf16>
    %c0_12 = arith.constant 0 : index
    %c7 = arith.constant 7 : index
    %c0_13 = arith.constant 0 : index
    %17 = vector.load %arg13[%c0_12, %c7, %c0_13] : memref<18x32x128xbf16, #tpu.memory_space<vmem>>, vector<18x1x128xbf16>
    tpu.vector_store %arg13[%c0_12, %c7, %c0_13], %16 {strides = array<i32>} : memref<18x32x128xbf16, #tpu.memory_space<vmem>>, vector<18x1x128xbf16>,
    %c0_14 = arith.constant 0 : index
    %c24 = arith.constant 24 : index
    %c0_15 = arith.constant 0 : index
    %18 = vector.load %arg13[%c0_14, %c24, %c0_15] : memref<18x32x128xbf16, #tpu.memory_space<vmem>>, vector<18x1x128xbf16>
    tpu.vector_store %arg13[%c0_14, %c24, %c0_15], %16 {strides = array<i32>} : memref<18x32x128xbf16, #tpu.memory_space<vmem>>, vector<18x1x128xbf16>,
    %c0_i32 = arith.constant 0 : i32
    %19 = arith.cmpi sgt, %arg1, %c0_i32 : i32
    %20 = arith.extui %19 : i1 to i32
    %c0_i32_16 = arith.constant 0 : i32
    %21 = arith.cmpi ne, %20, %c0_i32_16 : i32
    scf.if %21 {
      %c0_50 = arith.constant 0 : index
      %c0_51 = arith.constant 0 : index
      %c0_52 = arith.constant 0 : index
      %c0_53 = arith.constant 0 : index
      %105 = vector.load %arg2[%c0_50, %c0_51, %c0_52, %c0_53] : memref<1x1x16x8xbf16, #tpu.memory_space<vmem>>, vector<1x1x16x8xbf16>
      %106 = vector.shape_cast %105 : vector<1x1x16x8xbf16> to vector<1x16x8xbf16>
      %107 = vector.shape_cast %106 : vector<1x16x8xbf16> to vector<16x8xbf16>
      %c0_54 = arith.constant 0 : index
      %c0_55 = arith.constant 0 : index
      %108 = vector.load %arg6[%c0_54, %c0_55] : memref<8x128xbf16, #tpu.memory_space<vmem>>, vector<8x128xbf16>
      %cst_56 = arith.constant dense<0.000000e+00> : vector<16x128xf32>
      %109 = tpu.matmul %107, %108, %cst_56 {dimension_numbers = #tpu.dot_dimension_numbers<[1], [0], [0], [1], [0, 0, 1, 1], [], []>} : vector<16x8xbf16>, vector<8x128xbf16>, vector<16x128xf32> -> vector<16x128xf32>
      %c0_57 = arith.constant 0 : index
      %c0_58 = arith.constant 0 : index
      %110 = vector.load %arg7[%c0_57, %c0_58] : memref<1x128xf32, #tpu.memory_space<vmem>>, vector<1x128xf32>
      %111 = vector.broadcast %110 : vector<1x128xf32> to vector<16x128xf32>
      %112 = arith.addf %109, %111 : vector<16x128xf32>
      %cst_59 = arith.constant 0.000000e+00 : f32
      %cst_60 = arith.constant 6.000000e+00 : f32
      %113 = vector.broadcast %cst_59 : f32 to vector<16x128xf32>
      %114 = arith.maximumf %113, %112 : vector<16x128xf32>
      %115 = vector.broadcast %cst_60 : f32 to vector<16x128xf32>
      %116 = arith.minimumf %115, %114 : vector<16x128xf32>
      %117 = vector.shape_cast %116 : vector<16x128xf32> to vector<1x16x128xf32>
      %118 = arith.truncf %117 : vector<1x16x128xf32> to vector<1x16x128xbf16>
      %c0_61 = arith.constant 0 : index
      %c8_62 = arith.constant 8 : index
      %c0_63 = arith.constant 0 : index
      %119 = vector.load %arg13[%c0_61, %c8_62, %c0_63] : memref<18x32x128xbf16, #tpu.memory_space<vmem>>, vector<1x16x128xbf16>
      tpu.vector_store %arg13[%c0_61, %c8_62, %c0_63], %118 {strides = array<i32>} : memref<18x32x128xbf16, #tpu.memory_space<vmem>>, vector<1x16x128xbf16>,
    } else {
    }
    %c0_i32_17 = arith.constant 0 : i32
    %22 = arith.cmpi eq, %arg1, %c0_i32_17 : i32
    %23 = arith.extui %22 : i1 to i32
    %c0_i32_18 = arith.constant 0 : i32
    %24 = arith.cmpi ne, %23, %c0_i32_18 : i32
    scf.if %24 {
      %c0_50 = arith.constant 0 : index
      %c0_51 = arith.constant 0 : index
      %c0_52 = arith.constant 0 : index
      %105 = vector.load %arg13[%c0_50, %c0_51, %c0_52] : memref<18x32x128xbf16, #tpu.memory_space<vmem>>, vector<1x32x128xbf16>
      tpu.vector_store %arg13[%c0_50, %c0_51, %c0_52], %15 {strides = array<i32>} : memref<18x32x128xbf16, #tpu.memory_space<vmem>>, vector<1x32x128xbf16>,
    } else {
    }
    %c0_i32_19 = arith.constant 0 : i32
    %25 = arith.cmpi slt, %arg1, %c0_i32_19 : i32
    %26 = arith.extui %25 : i1 to i32
    %c0_i32_20 = arith.constant 0 : i32
    %27 = arith.cmpi ne, %26, %c0_i32_20 : i32
    scf.if %27 {
      %c0_50 = arith.constant 0 : index
      %c0_51 = arith.constant 0 : index
      %c0_52 = arith.constant 0 : index
      %c0_53 = arith.constant 0 : index
      %105 = vector.load %arg4[%c0_50, %c0_51, %c0_52, %c0_53] : memref<1x1x16x8xbf16, #tpu.memory_space<vmem>>, vector<1x1x16x8xbf16>
      %106 = vector.shape_cast %105 : vector<1x1x16x8xbf16> to vector<1x16x8xbf16>
      %107 = vector.shape_cast %106 : vector<1x16x8xbf16> to vector<16x8xbf16>
      %c0_54 = arith.constant 0 : index
      %c0_55 = arith.constant 0 : index
      %108 = vector.load %arg6[%c0_54, %c0_55] : memref<8x128xbf16, #tpu.memory_space<vmem>>, vector<8x128xbf16>
      %cst_56 = arith.constant dense<0.000000e+00> : vector<16x128xf32>
      %109 = tpu.matmul %107, %108, %cst_56 {dimension_numbers = #tpu.dot_dimension_numbers<[1], [0], [0], [1], [0, 0, 1, 1], [], []>} : vector<16x8xbf16>, vector<8x128xbf16>, vector<16x128xf32> -> vector<16x128xf32>
      %c0_57 = arith.constant 0 : index
      %c0_58 = arith.constant 0 : index
      %110 = vector.load %arg7[%c0_57, %c0_58] : memref<1x128xf32, #tpu.memory_space<vmem>>, vector<1x128xf32>
      %111 = vector.broadcast %110 : vector<1x128xf32> to vector<16x128xf32>
      %112 = arith.addf %109, %111 : vector<16x128xf32>
      %cst_59 = arith.constant 0.000000e+00 : f32
      %cst_60 = arith.constant 6.000000e+00 : f32
      %113 = vector.broadcast %cst_59 : f32 to vector<16x128xf32>
      %114 = arith.maximumf %113, %112 : vector<16x128xf32>
      %115 = vector.broadcast %cst_60 : f32 to vector<16x128xf32>
      %116 = arith.minimumf %115, %114 : vector<16x128xf32>
      %117 = vector.shape_cast %116 : vector<16x128xf32> to vector<1x16x128xf32>
      %118 = arith.truncf %117 : vector<1x16x128xf32> to vector<1x16x128xbf16>
      %c17 = arith.constant 17 : index
      %c8_61 = arith.constant 8 : index
      %c0_62 = arith.constant 0 : index
      %119 = vector.load %arg13[%c17, %c8_61, %c0_62] : memref<18x32x128xbf16, #tpu.memory_space<vmem>>, vector<1x16x128xbf16>
      tpu.vector_store %arg13[%c17, %c8_61, %c0_62], %118 {strides = array<i32>} : memref<18x32x128xbf16, #tpu.memory_space<vmem>>, vector<1x16x128xbf16>,
    } else {
    }
    %c0_i32_21 = arith.constant 0 : i32
    %28 = arith.cmpi eq, %arg1, %c0_i32_21 : i32
    %29 = arith.extui %28 : i1 to i32
    %c0_i32_22 = arith.constant 0 : i32
    %30 = arith.cmpi ne, %29, %c0_i32_22 : i32
    scf.if %30 {
      %c17 = arith.constant 17 : index
      %c0_50 = arith.constant 0 : index
      %c0_51 = arith.constant 0 : index
      %105 = vector.load %arg13[%c17, %c0_50, %c0_51] : memref<18x32x128xbf16, #tpu.memory_space<vmem>>, vector<1x32x128xbf16>
      tpu.vector_store %arg13[%c17, %c0_50, %c0_51], %15 {strides = array<i32>} : memref<18x32x128xbf16, #tpu.memory_space<vmem>>, vector<1x32x128xbf16>,
    } else {
    }
    %c0_23 = arith.constant 0 : index
    %c0_24 = arith.constant 0 : index
    %c0_25 = arith.constant 0 : index
    %31 = vector.load %arg8[%c0_23, %c0_24, %c0_25] : memref<3x3x128xf32, #tpu.memory_space<vmem>>, vector<3x3x128xf32>
    %cst_26 = arith.constant 0.000000e+00 : f32
    %32 = vector.broadcast %cst_26 : f32 to vector<16x16x128xf32>
    %c0_27 = arith.constant 0 : index
    %c0_28 = arith.constant 0 : index
    %c0_29 = arith.constant 0 : index
    %33 = vector.load %arg13[%c0_27, %c0_28, %c0_29] : memref<18x32x128xbf16, #tpu.memory_space<vmem>>, vector<16x32x128xbf16>
    %34 = arith.extf %33 : vector<16x32x128xbf16> to vector<16x32x128xf32>
    %35 = vector.extract_strided_slice %34 {offsets = [0, 7, 0], sizes = [16, 16, 128], strides = [1, 1, 1]} : vector<16x32x128xf32> to vector<16x16x128xf32>
    %36 = vector.extract_strided_slice %34 {offsets = [0, 8, 0], sizes = [16, 16, 128], strides = [1, 1, 1]} : vector<16x32x128xf32> to vector<16x16x128xf32>
    %37 = vector.extract_strided_slice %34 {offsets = [0, 9, 0], sizes = [16, 16, 128], strides = [1, 1, 1]} : vector<16x32x128xf32> to vector<16x16x128xf32>
    %38 = vector.extract_strided_slice %31 {offsets = [0, 0, 0], sizes = [1, 1, 128], strides = [1, 1, 1]} : vector<3x3x128xf32> to vector<1x1x128xf32>
    %39 = vector.broadcast %38 : vector<1x1x128xf32> to vector<16x16x128xf32>
    %40 = arith.mulf %35, %39 : vector<16x16x128xf32>
    %41 = arith.addf %32, %40 : vector<16x16x128xf32>
    %42 = vector.extract_strided_slice %31 {offsets = [0, 1, 0], sizes = [1, 1, 128], strides = [1, 1, 1]} : vector<3x3x128xf32> to vector<1x1x128xf32>
    %43 = vector.broadcast %42 : vector<1x1x128xf32> to vector<16x16x128xf32>
    %44 = arith.mulf %36, %43 : vector<16x16x128xf32>
    %45 = arith.addf %41, %44 : vector<16x16x128xf32>
    %46 = vector.extract_strided_slice %31 {offsets = [0, 2, 0], sizes = [1, 1, 128], strides = [1, 1, 1]} : vector<3x3x128xf32> to vector<1x1x128xf32>
    %47 = vector.broadcast %46 : vector<1x1x128xf32> to vector<16x16x128xf32>
    %48 = arith.mulf %37, %47 : vector<16x16x128xf32>
    %49 = arith.addf %45, %48 : vector<16x16x128xf32>
    %c1_30 = arith.constant 1 : index
    %c0_31 = arith.constant 0 : index
    %c0_32 = arith.constant 0 : index
    %50 = vector.load %arg13[%c1_30, %c0_31, %c0_32] : memref<18x32x128xbf16, #tpu.memory_space<vmem>>, vector<16x32x128xbf16>
    %51 = arith.extf %50 : vector<16x32x128xbf16> to vector<16x32x128xf32>
    %52 = vector.extract_strided_slice %51 {offsets = [0, 7, 0], sizes = [16, 16, 128], strides = [1, 1, 1]} : vector<16x32x128xf32> to vector<16x16x128xf32>
    %53 = vector.extract_strided_slice %51 {offsets = [0, 8, 0], sizes = [16, 16, 128], strides = [1, 1, 1]} : vector<16x32x128xf32> to vector<16x16x128xf32>
    %54 = vector.extract_strided_slice %51 {offsets = [0, 9, 0], sizes = [16, 16, 128], strides = [1, 1, 1]} : vector<16x32x128xf32> to vector<16x16x128xf32>
    %55 = vector.extract_strided_slice %31 {offsets = [1, 0, 0], sizes = [1, 1, 128], strides = [1, 1, 1]} : vector<3x3x128xf32> to vector<1x1x128xf32>
    %56 = vector.broadcast %55 : vector<1x1x128xf32> to vector<16x16x128xf32>
    %57 = arith.mulf %52, %56 : vector<16x16x128xf32>
    %58 = arith.addf %49, %57 : vector<16x16x128xf32>
    %59 = vector.extract_strided_slice %31 {offsets = [1, 1, 0], sizes = [1, 1, 128], strides = [1, 1, 1]} : vector<3x3x128xf32> to vector<1x1x128xf32>
    %60 = vector.broadcast %59 : vector<1x1x128xf32> to vector<16x16x128xf32>
    %61 = arith.mulf %53, %60 : vector<16x16x128xf32>
    %62 = arith.addf %58, %61 : vector<16x16x128xf32>
    %63 = vector.extract_strided_slice %31 {offsets = [1, 2, 0], sizes = [1, 1, 128], strides = [1, 1, 1]} : vector<3x3x128xf32> to vector<1x1x128xf32>
    %64 = vector.broadcast %63 : vector<1x1x128xf32> to vector<16x16x128xf32>
    %65 = arith.mulf %54, %64 : vector<16x16x128xf32>
    %66 = arith.addf %62, %65 : vector<16x16x128xf32>
    %c2 = arith.constant 2 : index
    %c0_33 = arith.constant 0 : index
    %c0_34 = arith.constant 0 : index
    %67 = vector.load %arg13[%c2, %c0_33, %c0_34] : memref<18x32x128xbf16, #tpu.memory_space<vmem>>, vector<16x32x128xbf16>
    %68 = arith.extf %67 : vector<16x32x128xbf16> to vector<16x32x128xf32>
    %69 = vector.extract_strided_slice %68 {offsets = [0, 7, 0], sizes = [16, 16, 128], strides = [1, 1, 1]} : vector<16x32x128xf32> to vector<16x16x128xf32>
    %70 = vector.extract_strided_slice %68 {offsets = [0, 8, 0], sizes = [16, 16, 128], strides = [1, 1, 1]} : vector<16x32x128xf32> to vector<16x16x128xf32>
    %71 = vector.extract_strided_slice %68 {offsets = [0, 9, 0], sizes = [16, 16, 128], strides = [1, 1, 1]} : vector<16x32x128xf32> to vector<16x16x128xf32>
    %72 = vector.extract_strided_slice %31 {offsets = [2, 0, 0], sizes = [1, 1, 128], strides = [1, 1, 1]} : vector<3x3x128xf32> to vector<1x1x128xf32>
    %73 = vector.broadcast %72 : vector<1x1x128xf32> to vector<16x16x128xf32>
    %74 = arith.mulf %69, %73 : vector<16x16x128xf32>
    %75 = arith.addf %66, %74 : vector<16x16x128xf32>
    %76 = vector.extract_strided_slice %31 {offsets = [2, 1, 0], sizes = [1, 1, 128], strides = [1, 1, 1]} : vector<3x3x128xf32> to vector<1x1x128xf32>
    %77 = vector.broadcast %76 : vector<1x1x128xf32> to vector<16x16x128xf32>
    %78 = arith.mulf %70, %77 : vector<16x16x128xf32>
    %79 = arith.addf %75, %78 : vector<16x16x128xf32>
    %80 = vector.extract_strided_slice %31 {offsets = [2, 2, 0], sizes = [1, 1, 128], strides = [1, 1, 1]} : vector<3x3x128xf32> to vector<1x1x128xf32>
    %81 = vector.broadcast %80 : vector<1x1x128xf32> to vector<16x16x128xf32>
    %82 = arith.mulf %71, %81 : vector<16x16x128xf32>
    %83 = arith.addf %79, %82 : vector<16x16x128xf32>
    %c0_35 = arith.constant 0 : index
    %c0_36 = arith.constant 0 : index
    %84 = vector.load %arg9[%c0_35, %c0_36] : memref<1x128xf32, #tpu.memory_space<vmem>>, vector<1x128xf32>
    %85 = vector.shape_cast %84 : vector<1x128xf32> to vector<1x1x128xf32>
    %86 = vector.broadcast %85 : vector<1x1x128xf32> to vector<16x16x128xf32>
    %87 = arith.addf %83, %86 : vector<16x16x128xf32>
    %cst_37 = arith.constant 0.000000e+00 : f32
    %cst_38 = arith.constant 6.000000e+00 : f32
    %88 = vector.broadcast %cst_37 : f32 to vector<16x16x128xf32>
    %89 = arith.maximumf %88, %87 : vector<16x16x128xf32>
    %90 = vector.broadcast %cst_38 : f32 to vector<16x16x128xf32>
    %91 = arith.minimumf %90, %89 : vector<16x16x128xf32>
    %92 = vector.shape_cast %91 : vector<16x16x128xf32> to vector<256x128xf32>
    %93 = arith.truncf %92 : vector<256x128xf32> to vector<256x128xbf16>
    %c0_39 = arith.constant 0 : index
    %c0_40 = arith.constant 0 : index
    %94 = vector.load %arg10[%c0_39, %c0_40] : memref<8x128xbf16, #tpu.memory_space<vmem>>, vector<8x128xbf16>
    %cst_41 = arith.constant dense<0.000000e+00> : vector<8x256xf32>
    %95 = tpu.matmul %94, %93, %cst_41 {dimension_numbers = #tpu.dot_dimension_numbers<[1], [1], [0], [0], [0, 0, 1, 0], [], []>} : vector<8x128xbf16>, vector<256x128xbf16>, vector<8x256xf32> -> vector<8x256xf32>
    %c0_42 = arith.constant 0 : index
    %c0_43 = arith.constant 0 : index
    %96 = vector.load %arg11[%c0_42, %c0_43] : memref<8x1xf32, #tpu.memory_space<vmem>>, vector<8x1xf32>
    %97 = vector.broadcast %96 : vector<8x1xf32> to vector<8x256xf32>
    %98 = arith.addf %95, %97 : vector<8x256xf32>
    %c0_44 = arith.constant 0 : index
    %c0_45 = arith.constant 0 : index
    %c0_46 = arith.constant 0 : index
    %99 = vector.load %arg5[%c0_44, %c0_45, %c0_46] : memref<1x8x256xf32, #tpu.memory_space<vmem>>, vector<1x8x256xf32>
    %100 = vector.shape_cast %99 : vector<1x8x256xf32> to vector<8x256xf32>
    %101 = arith.addf %98, %100 : vector<8x256xf32>
    %c0_47 = arith.constant 0 : index
    %c0_48 = arith.constant 0 : index
    %c0_49 = arith.constant 0 : index
    %102 = vector.load %arg12[%c0_47, %c0_48, %c0_49] : memref<1x8x256xf32, #tpu.memory_space<vmem>>, vector<1x8x256xf32>
    %103 = vector.shape_cast %102 : vector<1x8x256xf32> to vector<8x256xf32>
    %104 = vector.shape_cast %101 : vector<8x256xf32> to vector<1x8x256xf32>
    tpu.vector_store %arg12[%c0_47, %c0_48, %c0_49], %104 {strides = array<i32>} : memref<1x8x256xf32, #tpu.memory_space<vmem>>, vector<1x8x256xf32>,
    return
  }
  func.func @transform_0(%arg0: i32, %arg1: i32) -> (i32, i32, i32, i32) {
    %c16_i32 = arith.constant 16 : i32
    %0 = arith.muli %arg1, %c16_i32 : i32
    %c1_i32 = arith.constant 1 : i32
    %1 = arith.subi %0, %c1_i32 : i32
    %c0_i32 = arith.constant 0 : i32
    %2 = arith.maxsi %1, %c0_i32 : i32
    %c0_i32_0 = arith.constant 0 : i32
    %c0_i32_1 = arith.constant 0 : i32
    %c0_i32_2 = arith.constant 0 : i32
    return %arg0, %2, %c0_i32_0, %c0_i32_1 : i32, i32, i32, i32
  }
  func.func @transform_1(%arg0: i32, %arg1: i32) -> (i32, i32, i32, i32) {
    %c0_i32 = arith.constant 0 : i32
    %c0_i32_0 = arith.constant 0 : i32
    %c0_i32_1 = arith.constant 0 : i32
    return %arg0, %arg1, %c0_i32, %c0_i32_0 : i32, i32, i32, i32
  }
  func.func @transform_2(%arg0: i32, %arg1: i32) -> (i32, i32, i32, i32) {
    %c16_i32 = arith.constant 16 : i32
    %0 = arith.muli %arg1, %c16_i32 : i32
    %c16_i32_0 = arith.constant 16 : i32
    %1 = arith.addi %0, %c16_i32_0 : i32
    %c15_i32 = arith.constant 15 : i32
    %2 = arith.minsi %1, %c15_i32 : i32
    %c0_i32 = arith.constant 0 : i32
    %c0_i32_1 = arith.constant 0 : i32
    %c0_i32_2 = arith.constant 0 : i32
    return %arg0, %2, %c0_i32, %c0_i32_1 : i32, i32, i32, i32
  }
  func.func @transform_3(%arg0: i32, %arg1: i32) -> (i32, i32, i32) {
    %c0_i32 = arith.constant 0 : i32
    %c0_i32_0 = arith.constant 0 : i32
    return %arg0, %c0_i32, %arg1 : i32, i32, i32
  }
  func.func @transform_4(%arg0: i32, %arg1: i32) -> (i32, i32) {
    %c0_i32 = arith.constant 0 : i32
    %c0_i32_0 = arith.constant 0 : i32
    %c0_i32_1 = arith.constant 0 : i32
    return %c0_i32, %c0_i32_0 : i32, i32
  }
  func.func @transform_5(%arg0: i32, %arg1: i32) -> (i32, i32) {
    %c0_i32 = arith.constant 0 : i32
    %c0_i32_0 = arith.constant 0 : i32
    %c0_i32_1 = arith.constant 0 : i32
    return %c0_i32, %c0_i32_0 : i32, i32
  }
  func.func @transform_6(%arg0: i32, %arg1: i32) -> (i32, i32, i32) {
    %c0_i32 = arith.constant 0 : i32
    %c0_i32_0 = arith.constant 0 : i32
    %c0_i32_1 = arith.constant 0 : i32
    %c0_i32_2 = arith.constant 0 : i32
    return %c0_i32, %c0_i32_0, %c0_i32_1 : i32, i32, i32
  }
  func.func @transform_7(%arg0: i32, %arg1: i32) -> (i32, i32) {
    %c0_i32 = arith.constant 0 : i32
    %c0_i32_0 = arith.constant 0 : i32
    %c0_i32_1 = arith.constant 0 : i32
    return %c0_i32, %c0_i32_0 : i32, i32
  }
  func.func @transform_8(%arg0: i32, %arg1: i32) -> (i32, i32) {
    %c0_i32 = arith.constant 0 : i32
    %c0_i32_0 = arith.constant 0 : i32
    %c0_i32_1 = arith.constant 0 : i32
    return %c0_i32, %c0_i32_0 : i32, i32
  }
  func.func @transform_9(%arg0: i32, %arg1: i32) -> (i32, i32) {
    %c0_i32 = arith.constant 0 : i32
    %c0_i32_0 = arith.constant 0 : i32
    %c0_i32_1 = arith.constant 0 : i32
    return %c0_i32, %c0_i32_0 : i32, i32
  }
  func.func @transform_10(%arg0: i32, %arg1: i32) -> (i32, i32, i32) {
    %c0_i32 = arith.constant 0 : i32
    %c0_i32_0 = arith.constant 0 : i32
    return %arg0, %c0_i32, %arg1 : i32, i32, i32
  }
}

</mosaic_0001>

<bundles_post_ra>
// kernel: inverted_residual_forward.1
= control target key start
LH: loop header
LB: loop body
LE: loop exit
PB: predicated region body
PF: predicated region fallthrough
CT: control target
= control target key end

     0   :  { %s4185_s11 = smov 0   ;;  %s4187_s12 = smov 0   ;;  %s5595_s0 = inlined_call_operand.vmem [shape: bf16[4,16,16,8], index: 0, kind: input, shape index: {}, may-alias: {0,1,2}]   ;;  %s5596_s1 = inlined_call_operand.vmem [shape: bf16[4,16,16,8], index: 1, kind: input, shape index: {}, may-alias: {0,1,2}]   ;;  %s5597_s2 = inlined_call_operand.vmem [shape: bf16[4,16,16,8], index: 2, kind: input, shape index: {}, may-alias: {0,1,2}]   ;;  %s5598_s3 = inlined_call_operand.vmem [shape: f32[4,8,256], index: 3, kind: input, shape index: {}]   ;;  %s5599_s4 = inlined_call_operand.vmem [shape: bf16[8,128], index: 4, kind: input, shape index: {}]   ;;  %s5600_s5 = inlined_call_operand.vmem [shape: f32[1,128], index: 5, kind: input, shape index: {}]   ;;  %s5601_s6 = inlined_call_operand.vmem [shape: f32[3,3,128], index: 6, kind: input, shape index: {}]   ;;  %s5602_s7 = inlined_call_operand.vmem [shape: f32[1,128], index: 7, kind: input, shape index: {}]   ;;  %s5603_s8 = inlined_call_operand.vmem [shape: bf16[8,128], index: 8, kind: input, shape index: {}]   ;;  %s5604_s9 = inlined_call_operand.vmem [shape: f32[8,1], index: 9, kind: input, shape index: {}]   ;;  %s5605_s10 = inlined_call_operand.vmem [shape: f32[4,8,256], index: 10, kind: output, shape index: {}]  }
   0x1   :  { %s4189_s13 = smov 0  }
   0x2 LB: > { %s32_s14 = sadd.s32 1, %s4123_s12  ;;  %p3931_p0 = scmp.ge.s32.totalorder %s4127_s13, 1  ;;  %s4127_s13 = sphi %s4189_s13, %s20_s13   ;;  %s4123_s12 = sphi %s4187_s12, %s5613_s12   ;;  %s4119_s11 = sphi %s4185_s11, %s5612_s11  }
   0x3   : > { %p34_p1 = scmp.ge.s32.totalorder %s32_s14, 4  ;;  %p415_p2 = scmp.lt.s32.totalorder %s4127_s13, 5 }
   0x5   : > { %s5615_s14 = smov (%p34_p1, %s32_s14), 0  ;;  %p416_p3 = pnand %p3931_p0, %p415_p2 }
   0x6   : > { %v595_v0 = vld [vmem:[%s5599_s4] sm:$0xf] (!%p416_p3)  ;;  %vm732_vm0 = vcmask (!%p416_p3), 1043456   ;;  %p515_p4 = scmp.lt.s32.totalorder (!%p416_p3), %s4119_s11, 3  ;;  %vm683_vm1 = vcmask (!%p416_p3), 64512   ;;  %vm1058_vm2 = vcmask (!%p416_p3), 1043459   ;;  %v1436_v57 = vlaneseq (!%p416_p3) }
   0x7   : > { %419 = sbr.rel (%p416_p3) target bundleno = 874 (0x36a), region = 60  ;;  %4059 = vmatprep.subr.msk.bf16.mxu0 (!%p416_p3), %vm732_vm0, %v595_v0  ;;  %v734_v1 = vsel (!%p416_p3), %vm732_vm0, %v595_v0, 0  ;;  %vm1059_vm3 = vsmask.f32 (!%p416_p3), 7950  ;;  %vm1115_vm4 = vcmask (!%p416_p3), 1044484   ;;  %v4129_v28 = vmov (!%p416_p3), 0  }
   0x8   : > { %4026 = vmatpush3.bf16.msra.mxu0 (!%p416_p3), %v734_v1  ;;  %vm1116_vm5 = vsmask.f32 (!%p416_p3), 4352  ;;  %vm4246_vm6 = vmand (!%p416_p3), %vm1058_vm2, %vm1059_vm3  ;;  %v1067_v20 = vld [vmem:[#allocation2 + $0x20] sm:$0x8] (!%p416_p3)  ;;  %v1124_v21 = vld [vmem:[#allocation2 + $0x28] sm:$0x10] (!%p416_p3)  ;;  %4085 = vset.pattern.permute.xlu0 (!%p416_p3), %v4129_v28  ;;  %v1372_v1 = vunpack.c.l.bf16 (!%p416_p3), %v4129_v28 }
   0x9   : > { %vm4250_vm7 = vmand (!%p416_p3), %vm1115_vm4, %vm1116_vm5  ;;  %v1064_v22 = vld [vmem:[#allocation2 + $0x10] sm:$0x8] (!%p416_p3)  ;;  %v1068_v23 = vsel (!%p416_p3), %vm4246_vm6, 0, %v1067_v20  ;;  %v1121_v24 = vld [vmem:[#allocation2 + $0x18] sm:$0x10] (!%p416_p3)  ;;  %v1437_v58 = vshrl.u32 (!%p416_p3), %v1436_v57, 7 }
   0xa   : > { %v1125_v25 = vsel (!%p416_p3), %vm4250_vm7, 0, %v1124_v21  ;;  %v1065_v26 = vsel (!%p416_p3), %vm4246_vm6, 0, %v1064_v22  ;;  %1069 = vst [vmem:[#allocation2 + $0x20] sm:$0x8] (!%p416_p3), %v1068_v23  ;;  %v1122_v27 = vsel (!%p416_p3), %vm4250_vm7, 0, %v1121_v24  ;;  %vm1604_vm8 = vcmask (!%p416_p3), 1046528  }
   0xb   : > { %1126 = vst [vmem:[#allocation2 + $0x28] sm:$0x10] (!%p416_p3), %v1125_v25  ;;  %1066 = vst [vmem:[#allocation2 + $0x10] sm:$0x8] (!%p416_p3), %v1065_v26  ;;  %v1085_v29 = vld [vmem:[#allocation2 + $0x80] sm:$0x8] (!%p416_p3) }
   0xc   : > { %1123 = vst [vmem:[#allocation2 + $0x18] sm:$0x10] (!%p416_p3), %v1122_v27  ;;  %v1142_v30 = vld [vmem:[#allocation2 + $0x88] sm:$0x10] (!%p416_p3)  ;;  %v1086_v31 = vsel (!%p416_p3), %vm4246_vm6, 0, %v1085_v29  ;;  %v4290_v59 = vsub.s32 (!%p416_p3), 1, %v1437_v58 }
   0xd   : > { %v1143_v32 = vsel (!%p416_p3), %vm4250_vm7, 0, %v1142_v30  ;;  %1087 = vst [vmem:[#allocation2 + $0x80] sm:$0x8] (!%p416_p3), %v1086_v31  ;;  %v1091_v33 = vld [vmem:[#allocation2 + $0xa0] sm:$0x8] (!%p416_p3)  ;;  %v4300_v62 = vsub.s32 (!%p416_p3), 2, %v1437_v58 }
   0xe   : > { %s5617_s11 = smov (!%p515_p4, %s4119_s11), 3  ;;  %1144 = vst [vmem:[#allocation2 + $0x88] sm:$0x10] %v1143_v32  ;;  %v1148_v34 = vld [vmem:[#allocation2 + $0xa8] sm:$0x10]  ;;  %v1092_v36 = vsel %vm4246_vm6, 0, %v1091_v33 }
   0xf   : > { %s3985_s17 = sshll.u32 %s5617_s11, 7  ;;  %v1088_v35 = vld [vmem:[#allocation2 + $0x90] sm:$0x8]  ;;  %v1145_v37 = vld [vmem:[#allocation2 + $0x98] sm:$0x10]  ;;  %v1149_v38 = vsel %vm4250_vm7, 0, %v1148_v34 }
  0x10   : > { %s4212_s20 = scalar_lea.vmem %s5596_s1, %s3985_s17  ;;  %v1089_v39 = vsel %vm4246_vm6, 0, %v1088_v35  ;;  %1093 = vst [vmem:[#allocation2 + $0xa0] sm:$0x8] %v1092_v36  ;;  %v1146_v40 = vsel %vm4250_vm7, 0, %v1145_v37  ;;  %1150 = vst [vmem:[#allocation2 + $0xa8] sm:$0x10] %v1149_v38 }
  0x11   : > { %v4086_v2 = vld [vmem:[%s4212_s20] sm:$0xff]   ;;  %v4087_v3 = vld [vmem:[%s4212_s20 + $0x8] sm:$0xff]   ;;  %v4088_v4 = vld [vmem:[%s4212_s20 + $0x10] sm:$0xff]   ;;  %1090 = vst [vmem:[#allocation2 + $0x90] sm:$0x8] %v1089_v39  ;;  %vm1849_vm9 = vcmask 1045504  }
  0x12   : > { %4027 = vmatprep.mubr.msk.bf16.mxu0 %vm683_vm1, %v4086_v2  ;;  %v4089_v5 = vld [vmem:[%s4212_s20 + $0x18] sm:$0xff]   ;;  %v4090_v6 = vld [vmem:[%s4212_s20 + $0x20] sm:$0xff]   ;;  %v4091_v7 = vld [vmem:[%s4212_s20 + $0x28] sm:$0xff]   ;;  %1147 = vst [vmem:[#allocation2 + $0x98] sm:$0x10] %v1146_v40  ;;  %v1373_v2 = vunpack.c.h.bf16 %v4129_v28  ;;  %vm3594_vm10 = vcmask 1040384  }
  0x13   : > { %4028 = vmatmul.mubr.msk.bf16.vlgmr.msra.gmra.mrb[0].mxu0 %vm683_vm1, %v4087_v3  ;;  %v4092_v8 = vld [vmem:[%s4212_s20 + $0x30] sm:$0xff]   ;;  %v4093_v9 = vld [vmem:[%s4212_s20 + $0x38] sm:$0xff]   ;;  %v4094_v10 = vld [vmem:[%s4212_s20 + $0x40] sm:$0xff]   ;;  %s3988_s21 = sshll.u32 %s5617_s11, 4 }
  0x14   : > { %4031 = vmatprep.mubr.msk.bf16.mxu0 %vm683_vm1, %v4088_v4  ;;  %v4095_v11 = vld [vmem:[%s4212_s20 + $0x48] sm:$0xff]   ;;  %v4096_v12 = vld [vmem:[%s4212_s20 + $0x50] sm:$0xff]   ;;  %v4097_v13 = vld [vmem:[%s4212_s20 + $0x58] sm:$0xff]   ;;  %s550_s24 = scalar_lea.vmem %s5598_s3, %s3988_s21  ;;  %s560_s26 = scalar_lea.vmem %s5605_s10, %s3988_s21 }
  0x15   : > { %v4098_v14 = vld [vmem:[%s4212_s20 + $0x60] sm:$0xff]   ;;  %v4099_v15 = vld [vmem:[%s4212_s20 + $0x68] sm:$0xff]   ;;  %v4100_v16 = vld [vmem:[%s4212_s20 + $0x70] sm:$0xff]  }
  0x16   : > { %v4101_v17 = vld [vmem:[%s4212_s20 + $0x78] sm:$0xff]   ;;  %v1070_v41 = vld [vmem:[#allocation2 + $0x30] sm:$0x8]  ;;  %v1061_v45 = vld [vmem:[#allocation2] sm:$0x8] }
  0x17   : > { %v1127_v42 = vld [vmem:[#allocation2 + $0x38] sm:$0x10]  ;;  %v1071_v43 = vsel %vm4246_vm6, 0, %v1070_v41  ;;  %v1118_v46 = vld [vmem:[#allocation2 + $0x8] sm:$0x10]  ;;  %v1062_v47 = vsel %vm4246_vm6, 0, %v1061_v45 }
  0x18   : > { %v1128_v44 = vsel %vm4250_vm7, 0, %v1127_v42  ;;  %1072 = vst [vmem:[#allocation2 + $0x30] sm:$0x8] %v1071_v43  ;;  %v1119_v48 = vsel %vm4250_vm7, 0, %v1118_v46  ;;  %1063 = vst [vmem:[#allocation2] sm:$0x8] %v1062_v47 }
  0x19   : > { %1129 = vst [vmem:[#allocation2 + $0x38] sm:$0x10] %v1128_v44  ;;  %1120 = vst [vmem:[#allocation2 + $0x8] sm:$0x10] %v1119_v48  ;;  %v1094_v49 = vld [vmem:[#allocation2 + $0xb0] sm:$0x8] }
  0x1a   : > { %v1151_v50 = vld [vmem:[#allocation2 + $0xb8] sm:$0x10]  ;;  %1252 = vst [vmem:[#allocation2] sm:$0xff] %v4129_v28  ;;  %1253 = vst [vmem:[#allocation2 + $0x8] sm:$0xff] %v4129_v28  ;;  %v1095_v51 = vsel %vm4246_vm6, 0, %v1094_v49 }
  0x1b   : > { %4032 = vmatmul.mubr.msk.bf16.gmra.mrb[4].mxu0 %vm683_vm1, %v4089_v5  ;;  %v1152_v52 = vsel %vm4250_vm7, 0, %v1151_v50  ;;  %1096 = vst [vmem:[#allocation2 + $0xb0] sm:$0x8] %v1095_v51  ;;  %v1073_v53 = vld [vmem:[#allocation2 + $0x40] sm:$0x8]  ;;  %v1438_v5 = vsub.s32 0, %v1437_v58 }
  0x1c   : > { %4035 = vmatprep.mubr.msk.bf16.mxu0 %vm683_vm1, %v4090_v6  ;;  %1153 = vst [vmem:[#allocation2 + $0xb8] sm:$0x10] %v1152_v52  ;;  %v1130_v54 = vld [vmem:[#allocation2 + $0x48] sm:$0x10]  ;;  %v1074_v55 = vsel %vm4246_vm6, 0, %v1073_v53 }
  0x1d   : > { %v1131_v56 = vsel %vm4250_vm7, 0, %v1130_v54  ;;  %1075 = vst [vmem:[#allocation2 + $0x40] sm:$0x8] %v1074_v55  ;;  %v1337_v60 = vld [vmem:[%s5601_s6] sm:$0x7] }
  0x1e   : > { %1132 = vst [vmem:[#allocation2 + $0x48] sm:$0x10] %v1131_v56  ;;  %v4298_v61 = vld [vmem:[%s5600_s5] ss:$0 sm:$0xff]  ;;  %v4303_v0 = vrot.slane %v1337_v60, %v4290_v59  ;;  %v1338_v37 = vld [vmem:[%s5601_s6 + $0x4] sm:$0x7] }
  0x1f   : > { %v1339_v44 = vld [vmem:[%s5601_s6 + $0x8] sm:$0x7]  ;;  %v4331_v51 = vrot.slane %v1338_v37, %v1438_v5  ;;  %v4334_v52 = vrot.slane %v1338_v37, %v4290_v59  ;;  %v4337_v53 = vrot.slane %v1338_v37, %v4300_v62 }
  0x20   : > { %v4339_v55 = vrot.slane %v1339_v44, %v1438_v5 }
  0x23   : > { %4036 = vmatmul.mubr.msk.bf16.gmra.mrb[8].mxu0 %vm683_vm1, %v4091_v7 }
  0x24   : > { %4039 = vmatprep.mubr.msk.bf16.mxu0 %vm683_vm1, %v4092_v8  ;;  %v4308_v8 = vrot.slane %v1337_v60, %v4300_v62 }
  0x26   : > { %v1753_v21 = vmul.f32 %v4308_v8, %v1373_v2  ;;  %v1754_v24 = vmul.f32 %v4308_v8, %v1372_v1 }
  0x28   : > { %v1850_v39 = vrot.slane %v1753_v21, 2  ;;  %v1851_v45 = vrot.slane %v1754_v24, 2  ;;  %v4353_v21 = vrot.slane %v1339_v44, %v4300_v62 }
  0x2b   : > { %4040 = vmatmul.mubr.msk.bf16.gmra.mrb[12].mxu0 %vm683_vm1, %v4093_v9 }
  0x2c   : > { %4043 = vmatprep.mubr.msk.bf16.mxu0 %vm683_vm1, %v4094_v10 }
  0x33   : > { %4044 = vmatmul.mubr.msk.bf16.gmra.mrb[16].mxu0 %vm683_vm1, %v4095_v11 }
  0x34   : > { %4047 = vmatprep.mubr.msk.bf16.mxu0 %vm683_vm1, %v4096_v12 }
  0x3b   : > { %4048 = vmatmul.mubr.msk.bf16.gmra.mrb[20].mxu0 %vm683_vm1, %v4097_v13 }
  0x3c   : > { %4051 = vmatprep.mubr.msk.bf16.mxu0 %vm683_vm1, %v4098_v14  ;;  %v1540_v14 = vmul.f32 %v4303_v0, %v1373_v2 }
  0x3e   : > { %v1605_v28 = vrot.slane %v1540_v14, 1  ;;  %v1854_v14 = vsel %vm1849_vm9, %v1851_v45, %v1850_v39 }
  0x43   : > { %4052 = vmatmul.mubr.msk.bf16.gmra.mrb[24].mxu0 %vm683_vm1, %v4099_v15  ;;  %v1541_v15 = vmul.f32 %v4303_v0, %v1372_v1 }
  0x44   : > { %4055 = vmatprep.mubr.msk.bf16.mxu0 %vm683_vm1, %v4100_v16 }
  0x45   : > { %v1606_v29 = vrot.slane %v1541_v15, 1 }
  0x47   : > { %v1607_v49 = vsel %vm1604_vm8, %v1605_v28, %v1606_v29 }
  0x4b   : > { %4056 = vmatmul.mubr.msk.bf16.gmra.mrb[28].mxu0 %vm683_vm1, %v4101_v17  ;;  %v4314_v17 = vrot.slane %v1337_v60, %v1438_v5 }
  0x4d   : > { %v1440_v33 = vmul.f32 %v4314_v17, %v1372_v1  ;;  %v1441_v38 = vmul.f32 %v4314_v17, %v1373_v2  ;;  %v1852_v1 = vsel %vm1849_vm9, %v1850_v39, %v1851_v45  ;;  %v1097_v2 = vld [vmem:[#allocation2 + $0xc0] sm:$0x8] }
  0x4f   : > { %v1701_v56 = vadd.f32 %v1605_v28, %v1440_v33  ;;  %v1703_v57 = vadd.f32 %v1606_v29, %v1440_v33 }
  0xe6   : > { %v4029_v63 = vpop.f32.mrb[0].mxu0 }
  0xe7   : > { %v779_v3 = vadd.f32 %v4029_v63, %v4298_v61  ;;  %v770_v4 = vpop.f32.mrb[1].mxu0  ;;  %v1702_v63 = vadd.f32 %v1607_v49, %v1441_v38 }
  0xe8   : > { %v771_v6 = vadd.f32 %v4298_v61, %v770_v4  ;;  %v4030_v7 = vpop.f32.mrb[2].mxu0 }
  0xe9   : > { %v899_v9 = vmax.f32 %v779_v3, 0.0  ;;  %v782_v10 = vadd.f32 %v4030_v7, %v4298_v61  ;;  %v773_v11 = vpop.f32.mrb[3].mxu0  ;;  %v1154_v3 = vld [vmem:[#allocation2 + $0xc8] sm:$0x10] }
  0xea   : > { %v897_v12 = vmax.f32 %v771_v6, 0.0  ;;  %v774_v13 = vadd.f32 %v4298_v61, %v773_v11 }
  0xeb   : > { %v900_v16 = vmax.f32 %v782_v10, 0.0  ;;  %v931_v22 = vmin.f32 %v899_v9, 6.0  ;;  %v1098_v9 = vsel %vm4246_vm6, 0, %v1097_v2  ;;  %v1155_v10 = vsel %vm4250_vm7, 0, %v1154_v3 }
  0xec   : > { %v898_v20 = vmax.f32 %v774_v13, 0.0  ;;  %v929_v25 = vmin.f32 %v897_v12, 6.0  ;;  %v4348_v13 = vrot.slane %v1339_v44, %v4290_v59  ;;  %1099 = vst [vmem:[#allocation2 + $0xc0] sm:$0x8] %v1098_v9  ;;  %1156 = vst [vmem:[#allocation2 + $0xc8] sm:$0x10] %v1155_v10 }
  0xed   : > { %v932_v23 = vmin.f32 %v900_v16, 6.0 }
  0xee   : > { %v930_v26 = vmin.f32 %v898_v20, 6.0  ;;  %v4033_v27 = vpop.f32.mrb[4].mxu0 }
  0xef   : > { %v962_v30 = vpack.c.bf16 %v932_v23, %v931_v22  ;;  %v795_v31 = vadd.f32 %v4033_v27, %v4298_v61  ;;  %v786_v32 = vpop.f32.mrb[5].mxu0  ;;  %v1978_v22 = vadd.f32 %v1850_v39, %v1701_v56  ;;  %v1979_v27 = vadd.f32 %v1852_v1, %v1702_v63 }
  0xf0   : > { %v961_v34 = vpack.c.bf16 %v930_v26, %v929_v25  ;;  %v787_v35 = vadd.f32 %v4298_v61, %v786_v32  ;;  %v4034_v36 = vpop.f32.mrb[6].mxu0 }
  0xf1   : > { %v994_v40 = vrot.slane %v962_v30, 4  ;;  %v903_v41 = vmax.f32 %v795_v31, 0.0  ;;  %v798_v42 = vadd.f32 %v4034_v36, %v4298_v61  ;;  %v789_v43 = vpop.f32.mrb[7].mxu0  ;;  %v1980_v30 = vadd.f32 %v1854_v14, %v1703_v57 }
  0xf2   : > { %v993_v46 = vrot.slane %v961_v34, 4  ;;  %v901_v47 = vmax.f32 %v787_v35, 0.0  ;;  %v790_v48 = vadd.f32 %v4298_v61, %v789_v43 }
  0xf3   : > { %1028 = vst [vmem:[#allocation2 + $0x28] ss:$-4 sps:$4 sm:$0xff] %v994_v40   ;;  %v904_v50 = vmax.f32 %v798_v42, 0.0  ;;  %v935_v58 = vmin.f32 %v903_v41, 6.0 }
  0xf4   : > { %1026 = vst [vmem:[#allocation2 + $0x18] ss:$-4 sps:$4 sm:$0xff] %v993_v46   ;;  %v902_v54 = vmax.f32 %v790_v48, 0.0  ;;  %v933_v4 = vmin.f32 %v901_v47, 6.0 }
  0xf5   : > { %v936_v60 = vmin.f32 %v904_v50, 6.0 }
  0xf6   : > { %v934_v6 = vmin.f32 %v902_v54, 6.0  ;;  %v4037_v7 = vpop.f32.mrb[8].mxu0 }
  0xf7   : > { %v964_v5 = vpack.c.bf16 %v936_v60, %v935_v58  ;;  %v811_v11 = vadd.f32 %v4037_v7, %v4298_v61  ;;  %v802_v12 = vpop.f32.mrb[9].mxu0 }
  0xf8   : > { %v963_v15 = vpack.c.bf16 %v934_v6, %v933_v4  ;;  %v803_v16 = vadd.f32 %v4298_v61, %v802_v12  ;;  %v4038_v20 = vpop.f32.mrb[10].mxu0 }
  0xf9   : > { %v996_v23 = vrot.slane %v964_v5, 4  ;;  %v907_v24 = vmax.f32 %v811_v11, 0.0  ;;  %v814_v25 = vadd.f32 %v4038_v20, %v4298_v61  ;;  %v805_v26 = vpop.f32.mrb[11].mxu0 }
  0xfa   : > { %v995_v59 = vrot.slane %v963_v15, 4  ;;  %v905_v28 = vmax.f32 %v803_v16, 0.0  ;;  %v806_v29 = vadd.f32 %v4298_v61, %v805_v26  ;;  %v2711_v31 = vld [vmem:[#allocation2 + $0x20] sm:$0xff]  ;;  %v4357_v32 = vld [vmem:[#allocation2 + $0x28] sm:$0xff] }
  0xfb   : > { %1032 = vst [vmem:[#allocation2 + $0x48] ss:$-4 sps:$4 sm:$0xff] %v996_v23   ;;  %v939_v33 = vmin.f32 %v907_v24, 6.0  ;;  %v908_v34 = vmax.f32 %v814_v25, 0.0  ;;  %v4359_v62 = vld [vmem:[#allocation2 + $0x10] sm:$0xff]  ;;  %v4361_v35 = vld [vmem:[#allocation2 + $0x18] sm:$0xff]  ;;  %v4363_v36 = vunpack.c.l.bf16 %v2711_v31  ;;  %v4365_v37 = vunpack.c.h.bf16 %v2711_v31 }
  0xfc   : > { %1030 = vst [vmem:[#allocation2 + $0x38] ss:$-4 sps:$4 sm:$0xff] %v995_v59   ;;  %v937_v38 = vmin.f32 %v905_v28, 6.0  ;;  %v906_v39 = vmax.f32 %v806_v29, 0.0  ;;  %v2058_v40 = vunpack.c.l.bf16 %v4359_v62  ;;  %v4369_v41 = vunpack.c.h.bf16 %v4359_v62 }
  0xfd   : > { %v940_v42 = vmin.f32 %v908_v34, 6.0  ;;  %v4372_v43 = vunpack.c.l.bf16 %v4361_v35  ;;  %v5606_v44 = vunpack.c.h.bf16 %v4361_v35  ;;  %v4376_v45 = vunpack.c.l.bf16 %v4357_v32 }
  0xfe   : > { %v938_v46 = vmin.f32 %v906_v39, 6.0  ;;  %v4041_v47 = vpop.f32.mrb[12].mxu0  ;;  %v2126_v48 = vmul.f32 %v4331_v51, %v2058_v40  ;;  %v2127_v49 = vmul.f32 %v4331_v51, %v4369_v41  ;;  %v2226_v50 = vmul.f32 %v4334_v52, %v4369_v41 }
  0xff   : > { %v966_v54 = vpack.c.bf16 %v940_v42, %v939_v33  ;;  %v827_v56 = vadd.f32 %v4041_v47, %v4298_v61  ;;  %v818_v57 = vpop.f32.mrb[13].mxu0  ;;  %v2128_v58 = vmul.f32 %v4331_v51, %v4372_v43  ;;  %v2227_v60 = vmul.f32 %v4334_v52, %v4372_v43 }
 0x100   : > { %v965_v63 = vpack.c.bf16 %v938_v46, %v937_v38  ;;  %v819_v1 = vadd.f32 %v4298_v61, %v818_v57  ;;  %v4042_v2 = vpop.f32.mrb[14].mxu0  ;;  %v2174_v3 = vadd.f32 %v2126_v48, %v1978_v22  ;;  %v2175_v4 = vadd.f32 %v2127_v49, %v1979_v27 }
 0x101   : > { %v998_v6 = vrot.slane %v966_v54, 4  ;;  %v911_v7 = vmax.f32 %v827_v56, 0.0  ;;  %v830_v9 = vadd.f32 %v4042_v2, %v4298_v61  ;;  %v821_v10 = vpop.f32.mrb[15].mxu0  ;;  %v2176_v5 = vadd.f32 %v2128_v58, %v1980_v30 }
 0x102   : > { %v997_v11 = vrot.slane %v965_v63, 4  ;;  %v909_v12 = vmax.f32 %v819_v1, 0.0  ;;  %v822_v14 = vadd.f32 %v4298_v61, %v821_v10  ;;  %v2290_v15 = vrot.slane %v2226_v50, 1 }
 0x103   : > { %1036 = vst [vmem:[#allocation2 + $0x68] ss:$-4 sps:$4 sm:$0xff] %v998_v6   ;;  %v943_v16 = vmin.f32 %v911_v7, 6.0  ;;  %v912_v20 = vmax.f32 %v830_v9, 0.0  ;;  %v2291_v23 = vrot.slane %v2227_v60, 1  ;;  %v2438_v24 = vmul.f32 %v4337_v53, %v4369_v41 }
 0x104   : > { %1034 = vst [vmem:[#allocation2 + $0x58] ss:$-4 sps:$4 sm:$0xff] %v997_v11   ;;  %v941_v22 = vmin.f32 %v909_v12, 6.0  ;;  %v910_v25 = vmax.f32 %v822_v14, 0.0  ;;  %v2386_v26 = vadd.f32 %v2290_v15, %v2174_v3  ;;  %v2439_v27 = vmul.f32 %v4337_v53, %v4372_v43 }
 0x105   : > { %v944_v59 = vmin.f32 %v912_v20, 6.0  ;;  %v2292_v28 = vsel %vm1604_vm8, %v2290_v15, %v2291_v23  ;;  %v2388_v29 = vadd.f32 %v2291_v23, %v2176_v5  ;;  %v2440_v30 = vmul.f32 %v4337_v53, %v5606_v44 }
 0x106   : > { %v942_v31 = vmin.f32 %v910_v25, 6.0  ;;  %v4045_v33 = vpop.f32.mrb[16].mxu0  ;;  %v2387_v34 = vadd.f32 %v2292_v28, %v2175_v4  ;;  %v2534_v38 = vrot.slane %v2438_v24, 2  ;;  %v2535_v39 = vrot.slane %v2439_v27, 2 }
 0x107   : > { %v968_v42 = vpack.c.bf16 %v944_v59, %v943_v16  ;;  %v843_v46 = vadd.f32 %v4045_v33, %v4298_v61  ;;  %v834_v47 = vpop.f32.mrb[17].mxu0  ;;  %v2537_v48 = vrot.slane %v2440_v30, 2  ;;  %v4403_v49 = vunpack.c.h.bf16 %v4357_v32 }
 0x108   : > { %v967_v50 = vpack.c.bf16 %v942_v31, %v941_v22  ;;  %v835_v54 = vadd.f32 %v4298_v61, %v834_v47  ;;  %v4046_v56 = vpop.f32.mrb[18].mxu0  ;;  %v2536_v57 = vsel %vm1849_vm9, %v2534_v38, %v2535_v39  ;;  %v2662_v58 = vadd.f32 %v2534_v38, %v2386_v26 }
 0x109   : > { %v1000_v60 = vrot.slane %v968_v42, 4  ;;  %v915_v63 = vmax.f32 %v843_v46, 0.0  ;;  %v846_v1 = vadd.f32 %v4046_v56, %v4298_v61  ;;  %v837_v2 = vpop.f32.mrb[19].mxu0  ;;  %v2538_v3 = vsel %vm1849_vm9, %v2535_v39, %v2537_v48 }
 0x10a   : > { %v999_v4 = vrot.slane %v967_v50, 4  ;;  %v913_v6 = vmax.f32 %v835_v54, 0.0  ;;  %v838_v7 = vadd.f32 %v4298_v61, %v837_v2  ;;  %v2663_v32 = vadd.f32 %v2536_v57, %v2387_v34 }
 0x10b   : > { %1040 = vst [vmem:[#allocation2 + $0x88] ss:$-4 sps:$4 sm:$0xff] %v1000_v60   ;;  %v947_v9 = vmin.f32 %v915_v63, 6.0  ;;  %v916_v10 = vmax.f32 %v846_v1, 0.0  ;;  %v2664_v5 = vadd.f32 %v2538_v3, %v2388_v29  ;;  %v2811_v11 = vmul.f32 %v4339_v55, %v4363_v36 }
 0x10c   : > { %1038 = vst [vmem:[#allocation2 + $0x78] ss:$-4 sps:$4 sm:$0xff] %v999_v4   ;;  %v945_v12 = vmin.f32 %v913_v6, 6.0  ;;  %v914_v14 = vmax.f32 %v838_v7, 0.0  ;;  %v2812_v15 = vmul.f32 %v4339_v55, %v4365_v37  ;;  %v2813_v16 = vmul.f32 %v4339_v55, %v4376_v45 }
 0x10d   : > { %v948_v20 = vmin.f32 %v916_v10, 6.0  ;;  %v2859_v23 = vadd.f32 %v2811_v11, %v2662_v58  ;;  %v2911_v24 = vmul.f32 %v4348_v13, %v4365_v37  ;;  %v4420_v22 = vmul.f32 %v4348_v13, %v4376_v45 }
 0x10e   : > { %v946_v25 = vmin.f32 %v914_v14, 6.0  ;;  %v4049_v26 = vpop.f32.mrb[20].mxu0  ;;  %v4422_v27 = vadd.f32 %v2812_v15, %v2663_v32  ;;  %v4424_v59 = vadd.f32 %v2813_v16, %v2664_v5  ;;  %v4428_v28 = vmul.f32 %v4353_v21, %v4365_v37 }
 0x10f   : > { %v970_v29 = vpack.c.bf16 %v948_v20, %v947_v9  ;;  %v859_v30 = vadd.f32 %v4049_v26, %v4298_v61  ;;  %v850_v31 = vpop.f32.mrb[21].mxu0  ;;  %v2975_v33 = vrot.slane %v2911_v24, 1  ;;  %v2976_v34 = vrot.slane %v4420_v22, 1 }
 0x110   : > { %v969_v38 = vpack.c.bf16 %v946_v25, %v945_v12  ;;  %v851_v39 = vadd.f32 %v4298_v61, %v850_v31  ;;  %v4050_v42 = vpop.f32.mrb[22].mxu0  ;;  %v4435_v46 = vmul.f32 %v4353_v21, %v4376_v45  ;;  %v4439_v47 = vmul.f32 %v4353_v21, %v4403_v49 }
 0x111   : > { %v1002_v48 = vrot.slane %v970_v29, 4  ;;  %v919_v50 = vmax.f32 %v859_v30, 0.0  ;;  %v862_v54 = vadd.f32 %v4050_v42, %v4298_v61  ;;  %v853_v56 = vpop.f32.mrb[23].mxu0  ;;  %v4445_v57 = vsel %vm1604_vm8, %v2975_v33, %v2976_v34 }
 0x112   : > { %v1001_v58 = vrot.slane %v969_v38, 4  ;;  %v917_v60 = vmax.f32 %v851_v39, 0.0  ;;  %v854_v63 = vadd.f32 %v4298_v61, %v853_v56  ;;  %v1356_v1 = vld [vmem:[#allocation2 + $0x80] sm:$0xff]  ;;  %v1357_v2 = vld [vmem:[#allocation2 + $0x88] sm:$0xff]  ;;  %v4448_v3 = vadd.f32 %v2975_v33, %v2859_v23 }
 0x113   : > { %1044 = vst [vmem:[#allocation2 + $0xa8] ss:$-4 sps:$4 sm:$0xff] %v1002_v48   ;;  %v951_v4 = vmin.f32 %v919_v50, 6.0  ;;  %v920_v6 = vmax.f32 %v862_v54, 0.0  ;;  %v1404_v7 = vunpack.c.l.bf16 %v1356_v1  ;;  %v1405_v32 = vunpack.c.h.bf16 %v1356_v1 }
 0x114   : > { %1042 = vst [vmem:[#allocation2 + $0x98] ss:$-4 sps:$4 sm:$0xff] %v1001_v58   ;;  %v949_v9 = vmin.f32 %v917_v60, 6.0  ;;  %v918_v10 = vmax.f32 %v854_v63, 0.0  ;;  %v1406_v5 = vunpack.c.l.bf16 %v1357_v2  ;;  %v1407_v11 = vunpack.c.h.bf16 %v1357_v2 }
 0x115   : > { %v952_v12 = vmin.f32 %v920_v6, 6.0  ;;  %v1464_v14 = vmul.f32 %v4314_v17, %v1404_v7  ;;  %v1465_v15 = vmul.f32 %v4314_v17, %v1405_v32  ;;  %v1556_v16 = vmul.f32 %v4303_v0, %v1405_v32 }
 0x116   : > { %v950_v20 = vmin.f32 %v918_v10, 6.0  ;;  %v4053_v23 = vpop.f32.mrb[24].mxu0  ;;  %v1466_v24 = vmul.f32 %v4314_v17, %v1406_v5  ;;  %v1557_v25 = vmul.f32 %v4303_v0, %v1406_v5  ;;  %v1777_v26 = vmul.f32 %v4308_v8, %v1405_v32 }
 0x117   : > { %v972_v29 = vpack.c.bf16 %v952_v12, %v951_v4  ;;  %v875_v30 = vadd.f32 %v4053_v23, %v4298_v61  ;;  %v866_v31 = vpop.f32.mrb[25].mxu0  ;;  %v1629_v33 = vrot.slane %v1556_v16, 1  ;;  %v1778_v38 = vmul.f32 %v4308_v8, %v1406_v5 }
 0x118   : > { %v971_v39 = vpack.c.bf16 %v950_v20, %v949_v9  ;;  %v867_v42 = vadd.f32 %v4298_v61, %v866_v31  ;;  %v4054_v48 = vpop.f32.mrb[26].mxu0  ;;  %v1630_v50 = vrot.slane %v1557_v25, 1  ;;  %v1779_v54 = vmul.f32 %v4308_v8, %v1407_v11 }
 0x119   : > { %v1004_v56 = vrot.slane %v972_v29, 4  ;;  %v923_v58 = vmax.f32 %v875_v30, 0.0  ;;  %v878_v60 = vadd.f32 %v4054_v48, %v4298_v61  ;;  %v869_v63 = vpop.f32.mrb[27].mxu0  ;;  %v1725_v1 = vadd.f32 %v1629_v33, %v1464_v14 }
 0x11a   : > { %v1003_v2 = vrot.slane %v971_v39, 4  ;;  %v921_v4 = vmax.f32 %v867_v42, 0.0  ;;  %v870_v6 = vadd.f32 %v4298_v61, %v869_v63  ;;  %v1631_v7 = vsel %vm1604_vm8, %v1629_v33, %v1630_v50 }
 0x11b   : > { %1048 = vst [vmem:[#allocation2 + $0xc8] ss:$-4 sps:$4 sm:$0xff] %v1004_v56   ;;  %v955_v32 = vmin.f32 %v923_v58, 6.0  ;;  %v924_v9 = vmax.f32 %v878_v60, 0.0  ;;  %v1726_v10 = vadd.f32 %v1631_v7, %v1465_v15  ;;  %v1727_v5 = vadd.f32 %v1630_v50, %v1466_v24  ;;  %v4463_v12 = vld [vmem:[#allocation2 + $0x90] sm:$0xff]  ;;  %v4465_v11 = vld [vmem:[#allocation2 + $0x98] sm:$0xff] }
 0x11c   : > { %1046 = vst [vmem:[#allocation2 + $0xb8] ss:$-4 sps:$4 sm:$0xff] %v1003_v2   ;;  %v953_v16 = vmin.f32 %v921_v4, 6.0  ;;  %v922_v20 = vmax.f32 %v870_v6, 0.0  ;;  %v1890_v23 = vrot.slane %v1777_v26, 2  ;;  %v1891_v14 = vrot.slane %v1778_v38, 2 }
 0x11d   : > { %v956_v25 = vmin.f32 %v924_v9, 6.0  ;;  %v1893_v29 = vrot.slane %v1779_v54, 2  ;;  %v2090_v30 = vunpack.c.l.bf16 %v4463_v12  ;;  %v4469_v31 = vunpack.c.h.bf16 %v4463_v12 }
 0x11e   : > { %v954_v33 = vmin.f32 %v922_v20, 6.0  ;;  %v4057_v39 = vpop.f32.mrb[28].mxu0  ;;  %v1892_v15 = vsel %vm1849_vm9, %v1890_v23, %v1891_v14  ;;  %v2002_v24 = vadd.f32 %v1890_v23, %v1725_v1  ;;  %v4473_v42 = vunpack.c.l.bf16 %v4465_v11 }
 0x11f   : > { %v974_v48 = vpack.c.bf16 %v956_v25, %v955_v32  ;;  %v891_v50 = vadd.f32 %v4057_v39, %v4298_v61  ;;  %v882_v26 = vpop.f32.mrb[29].mxu0  ;;  %v1894_v38 = vsel %vm1849_vm9, %v1891_v14, %v1893_v29  ;;  %v2003_v54 = vadd.f32 %v1892_v15, %v1726_v10 }
 0x120   : > { %v973_v56 = vpack.c.bf16 %v954_v33, %v953_v16  ;;  %v883_v58 = vadd.f32 %v4298_v61, %v882_v26  ;;  %v4058_v60 = vpop.f32.mrb[30].mxu0  ;;  %v2004_v63 = vadd.f32 %v1894_v38, %v1727_v5  ;;  %v2093_v2 = vunpack.c.h.bf16 %v4465_v11 }
 0x121   : > { %v1006_v4 = vrot.slane %v974_v48, 4  ;;  %v927_v6 = vmax.f32 %v891_v50, 0.0  ;;  %v894_v1 = vadd.f32 %v4058_v60, %v4298_v61  ;;  %v885_v7 = vpop.f32.mrb[31].mxu0  ;;  %v2150_v32 = vmul.f32 %v4331_v51, %v2090_v30  ;;  %v2727_v48 = vld [vmem:[#allocation2 + $0xa0] sm:$0xff] }
 0x122   : > { %v1005_v9 = vrot.slane %v973_v56, 4  ;;  %v925_v20 = vmax.f32 %v883_v58, 0.0  ;;  %v886_v10 = vadd.f32 %v4298_v61, %v885_v7  ;;  %v2151_v16 = vmul.f32 %v4331_v51, %v4469_v31 }
 0x123   : > { %1052 = vst [vmem:[#allocation2 + $0xe8] ss:$-4 sps:$4 sm:$0xff] %v1006_v4   ;;  %v959_v5 = vmin.f32 %v927_v6, 6.0  ;;  %v928_v23 = vmax.f32 %v894_v1, 0.0  ;;  %v2152_v14 = vmul.f32 %v4331_v51, %v4473_v42  ;;  %v2198_v25 = vadd.f32 %v2150_v32, %v2002_v24 }
 0x124   : > { %1050 = vst [vmem:[#allocation2 + $0xd8] ss:$-4 sps:$4 sm:$0xff] %v1005_v9   ;;  %v957_v29 = vmin.f32 %v925_v20, 6.0  ;;  %v926_v33 = vmax.f32 %v886_v10, 0.0  ;;  %v2199_v39 = vadd.f32 %v2151_v16, %v2003_v54  ;;  %v2242_v15 = vmul.f32 %v4334_v52, %v4469_v31  ;;  %v2728_v20 = vld [vmem:[#allocation2 + $0xa8] sm:$0xff] }
 0x125   : > { %v960_v50 = vmin.f32 %v928_v23, 6.0  ;;  %v2200_v61 = vadd.f32 %v2152_v14, %v2004_v63  ;;  %v2243_v26 = vmul.f32 %v4334_v52, %v4473_v42  ;;  %v2462_v38 = vmul.f32 %v4337_v53, %v4469_v31 }
 0x126   : > { %v958_v56 = vmin.f32 %v926_v33, 6.0  ;;  %v2314_v58 = vrot.slane %v2242_v15, 1  ;;  %v2463_v24 = vmul.f32 %v4337_v53, %v4473_v42  ;;  %v2464_v54 = vmul.f32 %v4337_v53, %v2093_v2 }
 0x127   : > { %v976_v60 = vpack.c.bf16 %v960_v50, %v959_v5  ;;  %v2315_v4 = vrot.slane %v2243_v26, 1  ;;  %v2574_v6 = vrot.slane %v2462_v38, 2  ;;  %v4499_v1 = vunpack.c.l.bf16 %v2727_v48 }
 0x128   : > { %v975_v63 = vpack.c.bf16 %v958_v56, %v957_v29  ;;  %v2410_v7 = vadd.f32 %v2314_v58, %v2198_v25  ;;  %v2575_v32 = vrot.slane %v2463_v24, 2  ;;  %v2577_v9 = vrot.slane %v2464_v54, 2 }
 0x129   : > { %v1008_v10 = vrot.slane %v976_v60, 4  ;;  %v2316_v16 = vsel %vm1604_vm8, %v2314_v58, %v2315_v4  ;;  %v2412_v23 = vadd.f32 %v2315_v4, %v2200_v61  ;;  %v4502_v14 = vunpack.c.h.bf16 %v2727_v48 }
 0x12a   : > { %v1007_v33 = vrot.slane %v975_v63, 4  ;;  %v2411_v15 = vadd.f32 %v2316_v16, %v2199_v39  ;;  %v2576_v44 = vsel %vm1849_vm9, %v2574_v6, %v2575_v32  ;;  %v2578_v5 = vsel %vm1849_vm9, %v2575_v32, %v2577_v9 }
 0x12b   : > { %1056 = vst [vmem:[#allocation2 + $0x108] ss:$-4 sps:$4 sm:$0xff] %v1008_v10   ;;  %v2686_v50 = vadd.f32 %v2574_v6, %v2410_v7  ;;  %v2688_v26 = vadd.f32 %v2578_v5, %v2412_v23  ;;  %v4506_v29 = vunpack.c.l.bf16 %v2728_v20  ;;  %v4508_v25 = vunpack.c.h.bf16 %v2728_v20 }
 0x12c   : > { %1054 = vst [vmem:[#allocation2 + $0xf8] ss:$-4 sps:$4 sm:$0xff] %v1007_v33   ;;  %v2687_v38 = vadd.f32 %v2576_v44, %v2411_v15  ;;  %v2835_v61 = vmul.f32 %v4339_v55, %v4499_v1  ;;  %v2836_v48 = vmul.f32 %v4339_v55, %v4502_v14  ;;  %v2927_v39 = vmul.f32 %v4348_v13, %v4502_v14 }
 0x12d   : > { %v2837_v56 = vmul.f32 %v4339_v55, %v4506_v29  ;;  %v2928_v58 = vmul.f32 %v4348_v13, %v4506_v29  ;;  %v3147_v24 = vmul.f32 %v4353_v21, %v4502_v14  ;;  %v3148_v44 = vmul.f32 %v4353_v21, %v4506_v29 }
 0x12e   : > { %v2883_v54 = vadd.f32 %v2835_v61, %v2686_v50  ;;  %v2884_v60 = vadd.f32 %v2836_v48, %v2687_v38  ;;  %v2999_v4 = vrot.slane %v2927_v39, 1  ;;  %v3149_v6 = vmul.f32 %v4353_v21, %v4508_v25  ;;  %v4538_v48 = vld [vmem:[%s5602_s7] ss:$0 sm:$0xff] }
 0x12f   : > { %v2885_v63 = vadd.f32 %v2837_v56, %v2688_v26  ;;  %v3000_v7 = vrot.slane %v2928_v58, 1  ;;  %v3259_v32 = vrot.slane %v3147_v24, 2  ;;  %v3260_v9 = vrot.slane %v3148_v44, 2 }
 0x130   : > { %v3095_v20 = vadd.f32 %v2999_v4, %v2883_v54  ;;  %v3262_v10 = vrot.slane %v3149_v6, 2  ;;  %v3072_v16 = vadd.f32 %v4445_v57, %v4422_v27  ;;  %v3073_v23 = vadd.f32 %v2976_v34, %v4424_v59 }
 0x131   : > { %v3001_v33 = vsel %vm1604_vm8, %v2999_v4, %v3000_v7  ;;  %v3097_v15 = vadd.f32 %v3000_v7, %v2885_v63  ;;  %v3261_v5 = vsel %vm1849_vm9, %v3259_v32, %v3260_v9  ;;  %v3219_v50 = vrot.slane %v4428_v28, 2 }
 0x132   : > { %v3096_v26 = vadd.f32 %v3001_v33, %v2884_v60  ;;  %v3263_v38 = vsel %vm1849_vm9, %v3260_v9, %v3262_v10  ;;  %v3371_v61 = vadd.f32 %v3259_v32, %v3095_v20  ;;  %v3220_v27 = vrot.slane %v4435_v46, 2 }
 0x133   : > { %v3373_v22 = vadd.f32 %v3263_v38, %v3097_v15  ;;  %v3222_v59 = vrot.slane %v4439_v47, 2  ;;  %v3347_v34 = vadd.f32 %v3219_v50, %v4448_v3  ;;  %v1467_v28 = vmul.f32 %v2090_v30, %v4314_v17 }
 0x134   : > { %v3372_v57 = vadd.f32 %v3261_v5, %v3096_v26  ;;  %v3426_v39 = vadd.f32 %v4538_v48, %v3371_v61  ;;  %v3221_v56 = vsel %vm1849_vm9, %v3219_v50, %v3220_v27  ;;  %v1468_v58 = vmul.f32 %v4469_v31, %v4314_v17 }
 0x135   : > { %v3428_v46 = vadd.f32 %v4538_v48, %v3373_v22  ;;  %v3223_v24 = vsel %vm1849_vm9, %v3220_v27, %v3222_v59  ;;  %v3348_v47 = vadd.f32 %v3221_v56, %v3072_v16  ;;  %v3402_v3 = vadd.f32 %v4538_v48, %v3347_v34 }
 0x136   : > { %v3427_v44 = vadd.f32 %v4538_v48, %v3372_v57  ;;  %v3474_v12 = vmax.f32 %v3426_v39, 0.0  ;;  %v3349_v30 = vadd.f32 %v3223_v24, %v3073_v23  ;;  %v1469_v54 = vmul.f32 %v4473_v42, %v4314_v17 }
 0x137   : > { %v3476_v60 = vmax.f32 %v3428_v46, 0.0  ;;  %v3403_v4 = vadd.f32 %v4538_v48, %v3348_v47  ;;  %v3450_v6 = vmax.f32 %v3402_v3, 0.0  ;;  %v1558_v63 = vmul.f32 %v4469_v31, %v4303_v0 }
 0x138   : > { %v3475_v7 = vmax.f32 %v3427_v44, 0.0  ;;  %v3522_v32 = vmin.f32 %v3474_v12, 6.0  ;;  %v3404_v9 = vadd.f32 %v4538_v48, %v3349_v30  ;;  %v1559_v20 = vmul.f32 %v4473_v42, %v4303_v0 }
 0x139   : > { %v3524_v10 = vmin.f32 %v3476_v60, 6.0  ;;  %v3451_v16 = vmax.f32 %v3403_v4, 0.0  ;;  %v3498_v23 = vmin.f32 %v3450_v6, 6.0  ;;  %v1632_v33 = vrot.slane %v1558_v63, 1 }
 0x13a   : > { %v3523_v15 = vmin.f32 %v3475_v7, 6.0  ;;  %v3635_v5 = vrot.slane %v3522_v32, 7  ;;  %v3452_v50 = vmax.f32 %v3404_v9, 0.0  ;;  %v1633_v26 = vrot.slane %v1559_v20, 1 }
 0x13b   : > { %v3638_v38 = vrot.slane %v3524_v10, 7  ;;  %v3499_v61 = vmin.f32 %v3451_v16, 6.0  ;;  %v3595_v27 = vrot.slane %v3498_v23, 7  ;;  %v1728_v22 = vadd.f32 %v1632_v33, %v1467_v28  ;;  %v2729_v16 = vld [vmem:[#allocation2 + $0xb0] sm:$0xff] }
 0x13c   : > { %v3636_v59 = vrot.slane %v3523_v15, 7  ;;  %v3500_v34 = vmin.f32 %v3452_v50, 6.0  ;;  %v1634_v57 = vsel %vm1604_vm8, %v1632_v33, %v1633_v26  ;;  %v1730_v39 = vadd.f32 %v1633_v26, %v1469_v54 }
 0x13d   : > { %v3596_v56 = vrot.slane %v3499_v61, 7  ;;  %v1729_v46 = vadd.f32 %v1634_v57, %v1468_v58  ;;  %v1780_v24 = vmul.f32 %v4469_v31, %v4308_v8  ;;  %v1781_v47 = vmul.f32 %v4473_v42, %v4308_v8 }
 0x13e   : > { %v3637_v3 = vsel %vm3594_vm10, %v3635_v5, %v3636_v59  ;;  %v3639_v44 = vsel %vm3594_vm10, %v3636_v59, %v3638_v38  ;;  %v3598_v12 = vrot.slane %v3500_v34, 7  ;;  %v1782_v28 = vmul.f32 %v2093_v2, %v4308_v8 }
 0x13f   : > { %v3715_v30 = vpack.c.bf16 %v3639_v44, %v3637_v3  ;;  %v3597_v54 = vsel %vm3594_vm10, %v3595_v27, %v3596_v56  ;;  %v1895_v60 = vrot.slane %v1780_v24, 2  ;;  %v1896_v58 = vrot.slane %v1781_v47, 2  ;;  %v2730_v27 = vld [vmem:[#allocation2 + $0xb8] sm:$0xff] }
 0x140   : > { %v3599_v4 = vsel %vm3594_vm10, %v3596_v56, %v3598_v12  ;;  %v1898_v31 = vrot.slane %v1782_v28, 2  ;;  %v2153_v42 = vmul.f32 %v4499_v1, %v4331_v51  ;;  %v2154_v6 = vmul.f32 %v4502_v14, %v4331_v51 }
 0x141   : > { %4007 = vmatprep.subr.bf16.mxu1 %v3715_v30  ;;  %v3707_v63 = vpack.c.bf16 %v3599_v4, %v3597_v54  ;;  %v1897_v7 = vsel %vm1849_vm9, %v1895_v60, %v1896_v58  ;;  %v2005_v11 = vadd.f32 %v1895_v60, %v1728_v22  ;;  %v2155_v2 = vmul.f32 %v4506_v29, %v4331_v51 }
 0x142   : > { %v1899_v32 = vsel %vm1849_vm9, %v1896_v58, %v1898_v31  ;;  %v2006_v9 = vadd.f32 %v1897_v7, %v1729_v46  ;;  %v2244_v20 = vmul.f32 %v4502_v14, %v4334_v52  ;;  %v2245_v10 = vmul.f32 %v4506_v29, %v4334_v52 }
 0x143   : > { %4008 = vmatpush3.bf16.xpose.msra.mxu1 %v3707_v63  ;;  %v2007_v23 = vadd.f32 %v1899_v32, %v1730_v39  ;;  %v2201_v33 = vadd.f32 %v2153_v42, %v2005_v11  ;;  %v2465_v15 = vmul.f32 %v4502_v14, %v4337_v53  ;;  %v2466_v5 = vmul.f32 %v4506_v29, %v4337_v53 }
 0x144   : > { %v2202_v50 = vadd.f32 %v2154_v6, %v2006_v9  ;;  %v2317_v26 = vrot.slane %v2244_v20, 1  ;;  %v2318_v38 = vrot.slane %v2245_v10, 1  ;;  %v2467_v61 = vmul.f32 %v4508_v25, %v4337_v53 }
 0x145   : > { %v2203_v22 = vadd.f32 %v2155_v2, %v2007_v23  ;;  %v2579_v59 = vrot.slane %v2465_v15, 2  ;;  %v2580_v34 = vrot.slane %v2466_v5, 2  ;;  %v4592_v57 = vunpack.c.l.bf16 %v2729_v16 }
 0x146   : > { %v2319_v39 = vsel %vm1604_vm8, %v2317_v26, %v2318_v38  ;;  %v2413_v56 = vadd.f32 %v2317_v26, %v2201_v33  ;;  %v2582_v46 = vrot.slane %v2467_v61, 2  ;;  %v4595_v24 = vunpack.c.h.bf16 %v2729_v16 }
 0x147   : > { %v2414_v47 = vadd.f32 %v2319_v39, %v2202_v50  ;;  %v2415_v3 = vadd.f32 %v2318_v38, %v2203_v22  ;;  %v2581_v44 = vsel %vm1849_vm9, %v2579_v59, %v2580_v34  ;;  %v4598_v12 = vunpack.c.l.bf16 %v2730_v27 }
 0x148   : > { %v2583_v28 = vsel %vm1849_vm9, %v2580_v34, %v2582_v46  ;;  %v2689_v30 = vadd.f32 %v2579_v59, %v2413_v56  ;;  %v4601_v54 = vunpack.c.h.bf16 %v2730_v27  ;;  %v2838_v60 = vmul.f32 %v4339_v55, %v4592_v57 }
 0x149   : > { %v2690_v58 = vadd.f32 %v2581_v44, %v2414_v47  ;;  %v2691_v4 = vadd.f32 %v2583_v28, %v2415_v3  ;;  %v2839_v31 = vmul.f32 %v4339_v55, %v4595_v24  ;;  %v2840_v42 = vmul.f32 %v4339_v55, %v4598_v12 }
 0x14a   : > { %v2886_v6 = vadd.f32 %v2838_v60, %v2689_v30  ;;  %v2929_v63 = vmul.f32 %v4348_v13, %v4595_v24  ;;  %v2930_v7 = vmul.f32 %v4348_v13, %v4598_v12  ;;  %v3150_v11 = vmul.f32 %v4353_v21, %v4595_v24 }
 0x14b   : > { %v2887_v2 = vadd.f32 %v2839_v31, %v2690_v58  ;;  %v2888_v32 = vadd.f32 %v2840_v42, %v2691_v4  ;;  %v3151_v9 = vmul.f32 %v4353_v21, %v4598_v12  ;;  %v3152_v20 = vmul.f32 %v4353_v21, %v4601_v54 }
 0x14c   : > { %v3002_v10 = vrot.slane %v2929_v63, 1  ;;  %v3003_v16 = vrot.slane %v2930_v7, 1  ;;  %v3264_v23 = vrot.slane %v3150_v11, 2  ;;  %v1443_v33 = vmul.f32 %v2058_v40, %v4314_v17 }
 0x14d   : > { %v3265_v15 = vrot.slane %v3151_v9, 2  ;;  %v3267_v5 = vrot.slane %v3152_v20, 2  ;;  %v1444_v50 = vmul.f32 %v4369_v41, %v4314_v17  ;;  %v1445_v26 = vmul.f32 %v4372_v43, %v4314_v17 }
 0x14e   : > { %v3004_v38 = vsel %vm1604_vm8, %v3002_v10, %v3003_v16  ;;  %v3098_v61 = vadd.f32 %v3002_v10, %v2886_v6  ;;  %v3100_v27 = vadd.f32 %v3003_v16, %v2888_v32  ;;  %v1542_v22 = vmul.f32 %v4369_v41, %v4303_v0 }
 0x14f   : > { %v3099_v59 = vadd.f32 %v3004_v38, %v2887_v2  ;;  %v3266_v34 = vsel %vm1849_vm9, %v3264_v23, %v3265_v15  ;;  %v3268_v62 = vsel %vm1849_vm9, %v3265_v15, %v3267_v5  ;;  %v1543_v40 = vmul.f32 %v4372_v43, %v4303_v0 }
 0x150   : > { %v3374_v39 = vadd.f32 %v3264_v23, %v3098_v61  ;;  %v3376_v56 = vadd.f32 %v3268_v62, %v3100_v27  ;;  %v1608_v46 = vrot.slane %v1542_v22, 1  ;;  %v1756_v47 = vmul.f32 %v4369_v41, %v4308_v8 }
 0x151   : > { %v3375_v3 = vadd.f32 %v3266_v34, %v3099_v59  ;;  %v1609_v44 = vrot.slane %v1543_v40, 1  ;;  %v1757_v28 = vmul.f32 %v4372_v43, %v4308_v8  ;;  %v5611_v30 = vunpack.c.h.bf16 %v4361_v35  ;;  %v2713_v34 = vld [vmem:[#allocation2 + $0x30] sm:$0xff] }
 0x152   : > { %v3429_v58 = vadd.f32 %v4538_v48, %v3374_v39  ;;  %v3431_v4 = vadd.f32 %v4538_v48, %v3376_v56  ;;  %v1704_v31 = vadd.f32 %v1608_v46, %v1443_v33  ;;  %v1855_v42 = vrot.slane %v1756_v47, 2 }
 0x153   : > { %v1758_v60 = vmul.f32 %v5611_v30, %v4308_v8  ;;  %v3430_v6 = vadd.f32 %v4538_v48, %v3375_v3  ;;  %v1610_v63 = vsel %vm1604_vm8, %v1608_v46, %v1609_v44  ;;  %v1706_v41 = vadd.f32 %v1609_v44, %v1445_v26 }
 0x154   : > { %v1856_v7 = vrot.slane %v1757_v28, 2  ;;  %v3477_v11 = vmax.f32 %v3429_v58, 0.0  ;;  %v3479_v2 = vmax.f32 %v3431_v4, 0.0  ;;  %v1705_v32 = vadd.f32 %v1610_v63, %v1444_v50  ;;  %v2714_v58 = vld [vmem:[#allocation2 + $0x38] sm:$0xff] }
 0x155   : > { %v1858_v43 = vrot.slane %v1758_v60, 2  ;;  %v3478_v9 = vmax.f32 %v3430_v6, 0.0  ;;  %v1981_v20 = vadd.f32 %v1855_v42, %v1704_v31  ;;  %v2129_v10 = vmul.f32 %v4363_v36, %v4331_v51 }
 0x156   : > { %v1857_v35 = vsel %vm1849_vm9, %v1855_v42, %v1856_v7  ;;  %v3525_v16 = vmin.f32 %v3477_v11, 6.0  ;;  %v3527_v23 = vmin.f32 %v3479_v2, 6.0  ;;  %v2130_v26 = vmul.f32 %v4365_v37, %v4331_v51 }
 0x157   : > { %v1859_v33 = vsel %vm1849_vm9, %v1856_v7, %v1858_v43  ;;  %v1982_v15 = vadd.f32 %v1857_v35, %v1705_v32  ;;  %v3526_v5 = vmin.f32 %v3478_v9, 6.0  ;;  %v2131_v50 = vmul.f32 %v4376_v45, %v4331_v51 }
 0x158   : > { %v1983_v38 = vadd.f32 %v1859_v33, %v1706_v41  ;;  %v3640_v61 = vrot.slane %v3525_v16, 7  ;;  %v3643_v27 = vrot.slane %v3527_v23, 7  ;;  %v2177_v22 = vadd.f32 %v2129_v10, %v1981_v20 }
 0x159   : > { %v2228_v59 = vmul.f32 %v4365_v37, %v4334_v52  ;;  %v3641_v62 = vrot.slane %v3526_v5, 7  ;;  %v2178_v40 = vadd.f32 %v2130_v26, %v1982_v15  ;;  %v2229_v56 = vmul.f32 %v4376_v45, %v4334_v52 }
 0x15a   : > { %v2179_v39 = vadd.f32 %v2131_v50, %v1983_v38  ;;  %v2441_v47 = vmul.f32 %v4365_v37, %v4337_v53  ;;  %v2442_v3 = vmul.f32 %v4376_v45, %v4337_v53  ;;  %v2443_v44 = vmul.f32 %v4403_v49, %v4337_v53 }
 0x15b   : > { %v2293_v46 = vrot.slane %v2228_v59, 1  ;;  %v3642_v28 = vsel %vm3594_vm10, %v3640_v61, %v3641_v62  ;;  %v3644_v30 = vsel %vm3594_vm10, %v3641_v62, %v3643_v27  ;;  %v2294_v60 = vrot.slane %v2229_v56, 1 }
 0x15c   : > { %v4664_v4 = vunpack.c.l.bf16 %v2713_v34  ;;  %v3716_v31 = vpack.c.bf16 %v3644_v30, %v3642_v28  ;;  %v2539_v6 = vrot.slane %v2441_v47, 2  ;;  %v2540_v63 = vrot.slane %v2442_v3, 2 }
 0x15d   : > { %v2389_v42 = vadd.f32 %v2293_v46, %v2177_v22  ;;  %v2295_v41 = vsel %vm1604_vm8, %v2293_v46, %v2294_v60  ;;  %v2391_v7 = vadd.f32 %v2294_v60, %v2179_v39  ;;  %v2542_v11 = vrot.slane %v2443_v44, 2 }
 0x15e   : > { %v4667_v2 = vunpack.c.h.bf16 %v2713_v34  ;;  %4009 = vmatprep.subr.bf16.mxu1 %v3716_v31  ;;  %v2390_v32 = vadd.f32 %v2295_v41, %v2178_v40  ;;  %v2541_v43 = vsel %vm1849_vm9, %v2539_v6, %v2540_v63  ;;  %v4670_v35 = vunpack.c.l.bf16 %v2714_v58 }
 0x15f   : > { %v2665_v9 = vadd.f32 %v2539_v6, %v2389_v42  ;;  %v2543_v20 = vsel %vm1849_vm9, %v2540_v63, %v2542_v11  ;;  %v4673_v10 = vunpack.c.h.bf16 %v2714_v58  ;;  %v2814_v16 = vmul.f32 %v4339_v55, %v4664_v4 }
 0x160   : > { %v2815_v23 = vmul.f32 %v4339_v55, %v4667_v2  ;;  %v2666_v33 = vadd.f32 %v2541_v43, %v2390_v32  ;;  %v2667_v15 = vadd.f32 %v2543_v20, %v2391_v7  ;;  %v2816_v5 = vmul.f32 %v4339_v55, %v4670_v35 }
 0x161   : > { %v2913_v38 = vmul.f32 %v4348_v13, %v4667_v2  ;;  %v2862_v26 = vadd.f32 %v2814_v16, %v2665_v9  ;;  %v2914_v50 = vmul.f32 %v4348_v13, %v4670_v35  ;;  %v3126_v61 = vmul.f32 %v4353_v21, %v4667_v2 }
 0x162   : > { %v3127_v27 = vmul.f32 %v4353_v21, %v4670_v35  ;;  %v2863_v22 = vadd.f32 %v2815_v23, %v2666_v33  ;;  %v2864_v59 = vadd.f32 %v2816_v5, %v2667_v15  ;;  %v3128_v62 = vmul.f32 %v4353_v21, %v4673_v10 }
 0x163   : > { %v2978_v34 = vrot.slane %v2913_v38, 1  ;;  %v2979_v40 = vrot.slane %v2914_v50, 1  ;;  %v3224_v39 = vrot.slane %v3126_v61, 2  ;;  %v1470_v46 = vmul.f32 %v4499_v1, %v4314_v17 }
 0x164   : > { %v3225_v56 = vrot.slane %v3127_v27, 2  ;;  %v3227_v3 = vrot.slane %v3128_v62, 2  ;;  %v1471_v44 = vmul.f32 %v4502_v14, %v4314_v17  ;;  %v1472_v28 = vmul.f32 %v4506_v29, %v4314_v17 }
 0x165   : > { %v3074_v47 = vadd.f32 %v2978_v34, %v2862_v26  ;;  %v2980_v30 = vsel %vm1604_vm8, %v2978_v34, %v2979_v40  ;;  %v3076_v60 = vadd.f32 %v2979_v40, %v2864_v59  ;;  %v1560_v31 = vmul.f32 %v4502_v14, %v4303_v0 }
 0x166   : > { %v3226_v58 = vsel %vm1849_vm9, %v3224_v39, %v3225_v56  ;;  %v3075_v42 = vadd.f32 %v2980_v30, %v2863_v22  ;;  %v3228_v6 = vsel %vm1849_vm9, %v3225_v56, %v3227_v3  ;;  %v1561_v63 = vmul.f32 %v4506_v29, %v4303_v0 }
 0x167   : > { %v3350_v1 = vadd.f32 %v3224_v39, %v3074_v47  ;;  %v3352_v41 = vadd.f32 %v3228_v6, %v3076_v60  ;;  %v1635_v7 = vrot.slane %v1560_v31, 1  ;;  %v1783_v11 = vmul.f32 %v4502_v14, %v4308_v8 }
 0x168   : > { %v1784_v32 = vmul.f32 %v4506_v29, %v4308_v8  ;;  %v3351_v43 = vadd.f32 %v3226_v58, %v3075_v42  ;;  %v1636_v20 = vrot.slane %v1561_v63, 1  ;;  %v1785_v16 = vmul.f32 %v4508_v25, %v4308_v8 }
 0x169   : > { %v3405_v9 = vadd.f32 %v4538_v48, %v3350_v1  ;;  %v3407_v23 = vadd.f32 %v4538_v48, %v3352_v41  ;;  %v1731_v33 = vadd.f32 %v1635_v7, %v1470_v46  ;;  %v1900_v15 = vrot.slane %v1783_v11, 2  ;;  %v2731_v41 = vld [vmem:[#allocation2 + $0xc0] sm:$0xff] }
 0x16a   : > { %v1901_v5 = vrot.slane %v1784_v32, 2  ;;  %v3406_v38 = vadd.f32 %v4538_v48, %v3351_v43  ;;  %v1637_v14 = vsel %vm1604_vm8, %v1635_v7, %v1636_v20  ;;  %v1733_v50 = vadd.f32 %v1636_v20, %v1472_v28  ;;  %v2732_v43 = vld [vmem:[#allocation2 + $0xc8] sm:$0xff] }
 0x16b   : > { %v3453_v26 = vmax.f32 %v3405_v9, 0.0  ;;  %v3455_v61 = vmax.f32 %v3407_v23, 0.0  ;;  %v1732_v29 = vadd.f32 %v1637_v14, %v1471_v44  ;;  %v1903_v22 = vrot.slane %v1785_v16, 2 }
 0x16c   : > { %v1902_v27 = vsel %vm1849_vm9, %v1900_v15, %v1901_v5  ;;  %v3454_v59 = vmax.f32 %v3406_v38, 0.0  ;;  %v2008_v62 = vadd.f32 %v1900_v15, %v1731_v33  ;;  %v2156_v25 = vmul.f32 %v4592_v57, %v4331_v51 }
 0x16d   : > { %v3501_v34 = vmin.f32 %v3453_v26, 6.0  ;;  %v3503_v40 = vmin.f32 %v3455_v61, 6.0  ;;  %v1904_v39 = vsel %vm1849_vm9, %v1901_v5, %v1903_v22  ;;  %v2009_v56 = vadd.f32 %v1902_v27, %v1732_v29 }
 0x16e   : > { %v2157_v46 = vmul.f32 %v4595_v24, %v4331_v51  ;;  %v3502_v47 = vmin.f32 %v3454_v59, 6.0  ;;  %v2010_v28 = vadd.f32 %v1904_v39, %v1733_v50  ;;  %v2158_v44 = vmul.f32 %v4598_v12, %v4331_v51 }
 0x16f   : > { %v3600_v3 = vrot.slane %v3501_v34, 7  ;;  %v3603_v30 = vrot.slane %v3503_v40, 7  ;;  %v2204_v60 = vadd.f32 %v2156_v25, %v2008_v62  ;;  %v2246_v31 = vmul.f32 %v4595_v24, %v4334_v52 }
 0x170   : > { %v2205_v58 = vadd.f32 %v2157_v46, %v2009_v56  ;;  %v3601_v42 = vrot.slane %v3502_v47, 7  ;;  %v2206_v6 = vadd.f32 %v2158_v44, %v2010_v28  ;;  %v2247_v1 = vmul.f32 %v4598_v12, %v4334_v52 }
 0x171   : > { %v2468_v63 = vmul.f32 %v4595_v24, %v4337_v53  ;;  %v2320_v7 = vrot.slane %v2246_v31, 1  ;;  %v2469_v11 = vmul.f32 %v4598_v12, %v4337_v53  ;;  %v2470_v32 = vmul.f32 %v4601_v54, %v4337_v53 }
 0x172   : > { %v4732_v9 = vunpack.c.l.bf16 %v2731_v41  ;;  %v3602_v20 = vsel %vm3594_vm10, %v3600_v3, %v3601_v42  ;;  %v3604_v16 = vsel %vm3594_vm10, %v3601_v42, %v3603_v30  ;;  %v2321_v23 = vrot.slane %v2247_v1, 1 }
 0x173   : > { %v2584_v33 = vrot.slane %v2468_v63, 2  ;;  %v3708_v15 = vpack.c.bf16 %v3604_v16, %v3602_v20  ;;  %v2416_v5 = vadd.f32 %v2320_v7, %v2204_v60  ;;  %v2585_v38 = vrot.slane %v2469_v11, 2 }
 0x174   : > { %v2587_v26 = vrot.slane %v2470_v32, 2  ;;  %v2322_v14 = vsel %vm1604_vm8, %v2320_v7, %v2321_v23  ;;  %v2418_v50 = vadd.f32 %v2321_v23, %v2206_v6  ;;  %v4737_v61 = vunpack.c.h.bf16 %v2731_v41 }
 0x175   : > { %v4739_v29 = vunpack.c.l.bf16 %v2732_v43  ;;  %4010 = vmatpush3.bf16.xpose.msra.mxu1 %v3708_v15  ;;  %v2417_v27 = vadd.f32 %v2322_v14, %v2205_v58  ;;  %v2586_v22 = vsel %vm1849_vm9, %v2584_v33, %v2585_v38  ;;  %v2692_v34 = vadd.f32 %v2584_v33, %v2416_v5 }
 0x176   : > { %v2588_v59 = vsel %vm1849_vm9, %v2585_v38, %v2587_v26  ;;  %v4743_v25 = vunpack.c.h.bf16 %v2732_v43  ;;  %v2841_v40 = vmul.f32 %v4339_v55, %v4732_v9  ;;  %v2842_v39 = vmul.f32 %v4339_v55, %v4737_v61 }
 0x177   : > { %v2694_v62 = vadd.f32 %v2588_v59, %v2418_v50  ;;  %v2693_v56 = vadd.f32 %v2586_v22, %v2417_v27  ;;  %v2843_v46 = vmul.f32 %v4339_v55, %v4739_v29  ;;  %v2931_v47 = vmul.f32 %v4348_v13, %v4737_v61 }
 0x178   : > { %v2932_v3 = vmul.f32 %v4348_v13, %v4739_v29  ;;  %v2889_v28 = vadd.f32 %v2841_v40, %v2692_v34  ;;  %v3153_v44 = vmul.f32 %v4353_v21, %v4737_v61  ;;  %v3154_v30 = vmul.f32 %v4353_v21, %v4739_v29 }
 0x179   : > { %v3155_v60 = vmul.f32 %v4353_v21, %v4743_v25  ;;  %v2890_v58 = vadd.f32 %v2842_v39, %v2693_v56  ;;  %v2891_v31 = vadd.f32 %v2843_v46, %v2694_v62  ;;  %v3005_v42 = vrot.slane %v2931_v47, 1 }
 0x17a   : > { %v3006_v6 = vrot.slane %v2932_v3, 1  ;;  %v3269_v1 = vrot.slane %v3153_v44, 2  ;;  %v3270_v63 = vrot.slane %v3154_v30, 2  ;;  %v1446_v7 = vmul.f32 %v4363_v36, %v4314_v17 }
 0x17b   : > { %v3272_v41 = vrot.slane %v3155_v60, 2  ;;  %v3101_v32 = vadd.f32 %v3005_v42, %v2889_v28  ;;  %v1447_v20 = vmul.f32 %v4365_v37, %v4314_v17  ;;  %v1448_v15 = vmul.f32 %v4376_v45, %v4314_v17 }
 0x17c   : > { %v3007_v11 = vsel %vm1604_vm8, %v3005_v42, %v3006_v6  ;;  %v3103_v43 = vadd.f32 %v3006_v6, %v2891_v31  ;;  %v3271_v23 = vsel %vm1849_vm9, %v3269_v1, %v3270_v63  ;;  %v1544_v36 = vmul.f32 %v4365_v37, %v4303_v0 }
 0x17d   : > { %v3102_v16 = vadd.f32 %v3007_v11, %v2890_v58  ;;  %v3273_v33 = vsel %vm1849_vm9, %v3270_v63, %v3272_v41  ;;  %v3377_v5 = vadd.f32 %v3269_v1, %v3101_v32  ;;  %v1545_v26 = vmul.f32 %v4376_v45, %v4303_v0 }
 0x17e   : > { %v3379_v38 = vadd.f32 %v3273_v33, %v3103_v43  ;;  %v1759_v50 = vmul.f32 %v4365_v37, %v4308_v8  ;;  %v1760_v27 = vmul.f32 %v4376_v45, %v4308_v8  ;;  %v1761_v22 = vmul.f32 %v4403_v49, %v4308_v8 }
 0x17f   : > { %v3378_v14 = vadd.f32 %v3271_v23, %v3102_v16  ;;  %v3432_v59 = vadd.f32 %v4538_v48, %v3377_v5  ;;  %v1611_v62 = vrot.slane %v1544_v36, 1  ;;  %v1612_v40 = vrot.slane %v1545_v26, 1 }
 0x180   : > { %v3434_v34 = vadd.f32 %v4538_v48, %v3379_v38  ;;  %v1860_v56 = vrot.slane %v1759_v50, 2  ;;  %v1861_v46 = vrot.slane %v1760_v27, 2  ;;  %v1863_v47 = vrot.slane %v1761_v22, 2 }
 0x181   : > { %v3433_v39 = vadd.f32 %v4538_v48, %v3378_v14  ;;  %v3480_v3 = vmax.f32 %v3432_v59, 0.0  ;;  %v1613_v37 = vsel %vm1604_vm8, %v1611_v62, %v1612_v40  ;;  %v1707_v44 = vadd.f32 %v1611_v62, %v1446_v7  ;;  %v2715_v14 = vld [vmem:[#allocation2 + $0x40] sm:$0xff] }
 0x182   : > { %v3482_v28 = vmax.f32 %v3434_v34, 0.0  ;;  %v1708_v30 = vadd.f32 %v1613_v37, %v1447_v20  ;;  %v1709_v60 = vadd.f32 %v1612_v40, %v1448_v15  ;;  %v1862_v49 = vsel %vm1849_vm9, %v1860_v56, %v1861_v46 }
 0x183   : > { %v3481_v45 = vmax.f32 %v3433_v39, 0.0  ;;  %v3528_v58 = vmin.f32 %v3480_v3, 6.0  ;;  %v1864_v42 = vsel %vm1849_vm9, %v1861_v46, %v1863_v47  ;;  %v1984_v6 = vadd.f32 %v1860_v56, %v1707_v44  ;;  %v2716_v56 = vld [vmem:[#allocation2 + $0x48] sm:$0xff] }
 0x184   : > { %v3530_v31 = vmin.f32 %v3482_v28, 6.0  ;;  %v1985_v63 = vadd.f32 %v1862_v49, %v1708_v30  ;;  %v1986_v41 = vadd.f32 %v1864_v42, %v1709_v60  ;;  %v2132_v11 = vmul.f32 %v4664_v4, %v4331_v51 }
 0x185   : > { %v3529_v1 = vmin.f32 %v3481_v45, 6.0  ;;  %v3645_v32 = vrot.slane %v3528_v58, 7  ;;  %v2133_v7 = vmul.f32 %v4667_v2, %v4331_v51  ;;  %v2134_v20 = vmul.f32 %v4670_v35, %v4331_v51 }
 0x186   : > { %v3648_v43 = vrot.slane %v3530_v31, 7  ;;  %v2180_v23 = vadd.f32 %v2132_v11, %v1984_v6  ;;  %v2230_v33 = vmul.f32 %v4667_v2, %v4334_v52  ;;  %v2231_v15 = vmul.f32 %v4670_v35, %v4334_v52 }
 0x187   : > { %v3646_v16 = vrot.slane %v3529_v1, 7  ;;  %v2181_v5 = vadd.f32 %v2133_v7, %v1985_v63  ;;  %v2182_v38 = vadd.f32 %v2134_v20, %v1986_v41  ;;  %v2444_v36 = vmul.f32 %v4667_v2, %v4337_v53  ;;  %v1100_v41 = vld [vmem:[#allocation2 + $0xd0] sm:$0x8]  ;;  %v1157_v20 = vld [vmem:[#allocation2 + $0xd8] sm:$0x10] }
 0x188   : > { %v2445_v26 = vmul.f32 %v4670_v35, %v4337_v53  ;;  %v2296_v22 = vrot.slane %v2230_v33, 1  ;;  %v2297_v59 = vrot.slane %v2231_v15, 1  ;;  %v2446_v62 = vmul.f32 %v4673_v10, %v4337_v53 }
 0x189   : > { %v3647_v50 = vsel %vm3594_vm10, %v3645_v32, %v3646_v16  ;;  %v3649_v27 = vsel %vm3594_vm10, %v3646_v16, %v3648_v43  ;;  %v2544_v40 = vrot.slane %v2444_v36, 2  ;;  %v4805_v28 = vunpack.c.l.bf16 %v2715_v14 }
 0x18a   : > { %v3717_v34 = vpack.c.bf16 %v3649_v27, %v3647_v50  ;;  %v2545_v39 = vrot.slane %v2445_v26, 2  ;;  %v2298_v46 = vsel %vm1604_vm8, %v2296_v22, %v2297_v59  ;;  %v2392_v47 = vadd.f32 %v2296_v22, %v2180_v23 }
 0x18b   : > { %v2394_v3 = vadd.f32 %v2297_v59, %v2182_v38  ;;  %v2393_v37 = vadd.f32 %v2298_v46, %v2181_v5  ;;  %v2547_v45 = vrot.slane %v2446_v62, 2  ;;  %v4808_v30 = vunpack.c.h.bf16 %v2715_v14 }
 0x18c   : > { %4011 = vmatprep.subr.bf16.mxu1 %v3717_v34  ;;  %v2546_v44 = vsel %vm1849_vm9, %v2544_v40, %v2545_v39  ;;  %v2668_v60 = vadd.f32 %v2544_v40, %v2392_v47  ;;  %v4810_v49 = vunpack.c.l.bf16 %v2716_v56  ;;  %v4812_v58 = vunpack.c.h.bf16 %v2716_v56 }
 0x18d   : > { %v2817_v31 = vmul.f32 %v4339_v55, %v4805_v28  ;;  %v2548_v42 = vsel %vm1849_vm9, %v2545_v39, %v2547_v45  ;;  %v2669_v6 = vadd.f32 %v2546_v44, %v2393_v37  ;;  %v2818_v1 = vmul.f32 %v4339_v55, %v4808_v30 }
 0x18e   : > { %v2915_v63 = vmul.f32 %v4348_v13, %v4808_v30  ;;  %v2670_v11 = vadd.f32 %v2548_v42, %v2394_v3  ;;  %v2819_v32 = vmul.f32 %v4339_v55, %v4810_v49  ;;  %v2916_v7 = vmul.f32 %v4348_v13, %v4810_v49 }
 0x18f   : > { %v2865_v43 = vadd.f32 %v2817_v31, %v2668_v60  ;;  %v2866_v16 = vadd.f32 %v2818_v1, %v2669_v6  ;;  %v3129_v33 = vmul.f32 %v4353_v21, %v4808_v30  ;;  %v3130_v15 = vmul.f32 %v4353_v21, %v4810_v49 }
 0x190   : > { %v2981_v23 = vrot.slane %v2915_v63, 1  ;;  %v2867_v5 = vadd.f32 %v2819_v32, %v2670_v11  ;;  %v2982_v38 = vrot.slane %v2916_v7, 1  ;;  %v3131_v36 = vmul.f32 %v4353_v21, %v4812_v58 }
 0x191   : > { %v1101_v26 = vsel %vm4246_vm6, 0, %v1100_v41  ;;  %v3229_v50 = vrot.slane %v3129_v33, 2  ;;  %v3230_v27 = vrot.slane %v3130_v15, 2  ;;  %v1158_v22 = vsel %vm4250_vm7, 0, %v1157_v20 }
 0x192   : > { %v3077_v14 = vadd.f32 %v2981_v23, %v2865_v43  ;;  %1102 = vst [vmem:[#allocation2 + $0xd0] sm:$0x8] %v1101_v26  ;;  %v2983_v59 = vsel %vm1604_vm8, %v2981_v23, %v2982_v38  ;;  %v3079_v34 = vadd.f32 %v2982_v38, %v2867_v5  ;;  %v3232_v62 = vrot.slane %v3131_v36, 2  ;;  %1159 = vst [vmem:[#allocation2 + $0xd8] sm:$0x10] %v1158_v22 }
 0x193   : > { %v1473_v40 = vmul.f32 %v4592_v57, %v4314_v17  ;;  %v3078_v39 = vadd.f32 %v2983_v59, %v2866_v16  ;;  %v3231_v56 = vsel %vm1849_vm9, %v3229_v50, %v3230_v27  ;;  %v1474_v47 = vmul.f32 %v4595_v24, %v4314_v17 }
 0x194   : > { %v3353_v46 = vadd.f32 %v3229_v50, %v3077_v14  ;;  %v3233_v3 = vsel %vm1849_vm9, %v3230_v27, %v3232_v62  ;;  %v1475_v37 = vmul.f32 %v4598_v12, %v4314_v17  ;;  %v1562_v44 = vmul.f32 %v4595_v24, %v4303_v0 }
 0x195   : > { %v1563_v45 = vmul.f32 %v4598_v12, %v4303_v0  ;;  %v3354_v60 = vadd.f32 %v3231_v56, %v3078_v39  ;;  %v3355_v57 = vadd.f32 %v3233_v3, %v3079_v34  ;;  %v1786_v42 = vmul.f32 %v4595_v24, %v4308_v8 }
 0x196   : > { %v3408_v31 = vadd.f32 %v4538_v48, %v3353_v46  ;;  %v1638_v6 = vrot.slane %v1562_v44, 1  ;;  %v1787_v63 = vmul.f32 %v4598_v12, %v4308_v8  ;;  %v1788_v41 = vmul.f32 %v4601_v54, %v4308_v8 }
 0x197   : > { %v1639_v1 = vrot.slane %v1563_v45, 1  ;;  %v3409_v11 = vadd.f32 %v4538_v48, %v3354_v60  ;;  %v3410_v32 = vadd.f32 %v4538_v48, %v3355_v57  ;;  %v1905_v7 = vrot.slane %v1786_v42, 2 }
 0x198   : > { %v3456_v43 = vmax.f32 %v3408_v31, 0.0  ;;  %v1734_v16 = vadd.f32 %v1638_v6, %v1473_v40  ;;  %v1906_v33 = vrot.slane %v1787_v63, 2  ;;  %v1908_v36 = vrot.slane %v1788_v41, 2 }
 0x199   : > { %v1640_v20 = vsel %vm1604_vm8, %v1638_v6, %v1639_v1  ;;  %v1736_v23 = vadd.f32 %v1639_v1, %v1475_v37  ;;  %v3457_v24 = vmax.f32 %v3409_v11, 0.0  ;;  %v3458_v15 = vmax.f32 %v3410_v32, 0.0  ;;  %v2733_v45 = vld [vmem:[#allocation2 + $0xd0] sm:$0xff]  ;;  %v2734_v6 = vld [vmem:[#allocation2 + $0xd8] sm:$0xff] }
 0x19a   : > { %v3504_v5 = vmin.f32 %v3456_v43, 6.0  ;;  %v1735_v38 = vadd.f32 %v1640_v20, %v1474_v47  ;;  %v1907_v12 = vsel %vm1849_vm9, %v1905_v7, %v1906_v33  ;;  %v2011_v26 = vadd.f32 %v1905_v7, %v1734_v16 }
 0x19b   : > { %v2159_v54 = vmul.f32 %v4732_v9, %v4331_v51  ;;  %v3505_v14 = vmin.f32 %v3457_v24, 6.0  ;;  %v3506_v48 = vmin.f32 %v3458_v15, 6.0  ;;  %v1909_v22 = vsel %vm1849_vm9, %v1906_v33, %v1908_v36 }
 0x19c   : > { %v3605_v50 = vrot.slane %v3504_v5, 7  ;;  %v2012_v27 = vadd.f32 %v1907_v12, %v1735_v38  ;;  %v2160_v59 = vmul.f32 %v4737_v61, %v4331_v51  ;;  %v2161_v34 = vmul.f32 %v4739_v29, %v4331_v51 }
 0x19d   : > { %v2207_v62 = vadd.f32 %v2159_v54, %v2011_v26  ;;  %v3606_v40 = vrot.slane %v3505_v14, 7  ;;  %v3608_v39 = vrot.slane %v3506_v48, 7  ;;  %v2013_v56 = vadd.f32 %v1909_v22, %v1736_v23 }
 0x19e   : > { %v2248_v46 = vmul.f32 %v4737_v61, %v4334_v52  ;;  %v2208_v47 = vadd.f32 %v2160_v59, %v2012_v27  ;;  %v2249_v3 = vmul.f32 %v4739_v29, %v4334_v52  ;;  %v2471_v37 = vmul.f32 %v4737_v61, %v4337_v53  ;;  %v1076_v59 = vld [vmem:[#allocation2 + $0x50] sm:$0x8] }
 0x19f   : > { %v2472_v44 = vmul.f32 %v4739_v29, %v4337_v53  ;;  %v3607_v60 = vsel %vm3594_vm10, %v3605_v50, %v3606_v40  ;;  %v3609_v57 = vsel %vm3594_vm10, %v3606_v40, %v3608_v39  ;;  %v2209_v31 = vadd.f32 %v2161_v34, %v2013_v56  ;;  %v1133_v56 = vld [vmem:[#allocation2 + $0x58] sm:$0x10] }
 0x1a0   : > { %v2323_v42 = vrot.slane %v2248_v46, 1  ;;  %v3709_v1 = vpack.c.bf16 %v3609_v57, %v3607_v60  ;;  %v2324_v63 = vrot.slane %v2249_v3, 1  ;;  %v2473_v41 = vmul.f32 %v4743_v25, %v4337_v53 }
 0x1a1   : > { %v2589_v11 = vrot.slane %v2471_v37, 2  ;;  %v2590_v43 = vrot.slane %v2472_v44, 2  ;;  %v4878_v7 = vunpack.c.l.bf16 %v2733_v45  ;;  %v4880_v20 = vunpack.c.h.bf16 %v2733_v45 }
 0x1a2   : > { %v2419_v32 = vadd.f32 %v2323_v42, %v2207_v62  ;;  %4012 = vmatpush3.bf16.xpose.msra.mxu1 %v3709_v1  ;;  %v2325_v16 = vsel %vm1604_vm8, %v2323_v42, %v2324_v63  ;;  %v2421_v23 = vadd.f32 %v2324_v63, %v2209_v31  ;;  %v2592_v33 = vrot.slane %v2473_v41, 2 }
 0x1a3   : > { %v4883_v24 = vunpack.c.l.bf16 %v2734_v6  ;;  %v2420_v15 = vadd.f32 %v2325_v16, %v2208_v47  ;;  %v2591_v5 = vsel %vm1849_vm9, %v2589_v11, %v2590_v43  ;;  %v4886_v12 = vunpack.c.h.bf16 %v2734_v6 }
 0x1a4   : > { %v2695_v38 = vadd.f32 %v2589_v11, %v2419_v32  ;;  %v2593_v36 = vsel %vm1849_vm9, %v2590_v43, %v2592_v33  ;;  %v2844_v26 = vmul.f32 %v4339_v55, %v4878_v7  ;;  %v2845_v54 = vmul.f32 %v4339_v55, %v4880_v20 }
 0x1a5   : > { %v2846_v14 = vmul.f32 %v4339_v55, %v4883_v24  ;;  %v2696_v48 = vadd.f32 %v2591_v5, %v2420_v15  ;;  %v2697_v50 = vadd.f32 %v2593_v36, %v2421_v23  ;;  %v2933_v27 = vmul.f32 %v4348_v13, %v4880_v20 }
 0x1a6   : > { %v2934_v22 = vmul.f32 %v4348_v13, %v4883_v24  ;;  %v2892_v34 = vadd.f32 %v2844_v26, %v2695_v38  ;;  %v3156_v62 = vmul.f32 %v4353_v21, %v4880_v20  ;;  %v3157_v40 = vmul.f32 %v4353_v21, %v4883_v24 }
 0x1a7   : > { %v3158_v39 = vmul.f32 %v4353_v21, %v4886_v12  ;;  %v2893_v46 = vadd.f32 %v2845_v54, %v2696_v48  ;;  %v2894_v47 = vadd.f32 %v2846_v14, %v2697_v50  ;;  %v3008_v3 = vrot.slane %v2933_v27, 1 }
 0x1a8   : > { %v3009_v37 = vrot.slane %v2934_v22, 1  ;;  %v3274_v44 = vrot.slane %v3156_v62, 2  ;;  %v3275_v45 = vrot.slane %v3157_v40, 2  ;;  %v1077_v57 = vsel %vm4246_vm6, 0, %v1076_v59 }
 0x1a9   : > { %v3277_v60 = vrot.slane %v3158_v39, 2  ;;  %v3104_v42 = vadd.f32 %v3008_v3, %v2892_v34  ;;  %1078 = vst [vmem:[#allocation2 + $0x50] sm:$0x8] %v1077_v57  ;;  %v1134_v1 = vsel %vm4250_vm7, 0, %v1133_v56  ;;  %v1449_v32 = vmul.f32 %v4664_v4, %v4314_v17  ;;  %v4927_v4 = vld [vmem:[%s5602_s7] ss:$0 sm:$0xff] }
 0x1aa   : > { %v3010_v31 = vsel %vm1604_vm8, %v3008_v3, %v3009_v37  ;;  %v3106_v6 = vadd.f32 %v3009_v37, %v2894_v47  ;;  %v3276_v41 = vsel %vm1849_vm9, %v3274_v44, %v3275_v45  ;;  %1135 = vst [vmem:[#allocation2 + $0x58] sm:$0x10] %v1134_v1  ;;  %v1450_v23 = vmul.f32 %v4667_v2, %v4314_v17 }
 0x1ab   : > { %v3105_v63 = vadd.f32 %v3010_v31, %v2893_v46  ;;  %v3278_v11 = vsel %vm1849_vm9, %v3275_v45, %v3277_v60  ;;  %v3380_v43 = vadd.f32 %v3274_v44, %v3104_v42  ;;  %v1451_v33 = vmul.f32 %v4670_v35, %v4314_v17 }
 0x1ac   : > { %v3382_v16 = vadd.f32 %v3278_v11, %v3106_v6  ;;  %v1546_v5 = vmul.f32 %v4667_v2, %v4303_v0  ;;  %v1547_v38 = vmul.f32 %v4670_v35, %v4303_v0  ;;  %v1762_v36 = vmul.f32 %v4667_v2, %v4308_v8 }
 0x1ad   : > { %v3381_v15 = vadd.f32 %v3276_v41, %v3105_v63  ;;  %v3435_v26 = vadd.f32 %v4927_v4, %v3380_v43  ;;  %v1763_v14 = vmul.f32 %v4670_v35, %v4308_v8  ;;  %v1764_v48 = vmul.f32 %v4673_v10, %v4308_v8 }
 0x1ae   : > { %v3437_v54 = vadd.f32 %v4927_v4, %v3382_v16  ;;  %v1614_v27 = vrot.slane %v1546_v5, 1  ;;  %v1615_v22 = vrot.slane %v1547_v38, 1  ;;  %v1865_v2 = vrot.slane %v1762_v36, 2 }
 0x1af   : > { %v3436_v50 = vadd.f32 %v4927_v4, %v3381_v15  ;;  %v3483_v59 = vmax.f32 %v3435_v26, 0.0  ;;  %v1866_v62 = vrot.slane %v1763_v14, 2  ;;  %v1868_v40 = vrot.slane %v1764_v48, 2 }
 0x1b0   : > { %v3485_v34 = vmax.f32 %v3437_v54, 0.0  ;;  %v1616_v56 = vsel %vm1604_vm8, %v1614_v27, %v1615_v22  ;;  %v1710_v46 = vadd.f32 %v1614_v27, %v1449_v32  ;;  %v1712_v47 = vadd.f32 %v1615_v22, %v1451_v33  ;;  %v2717_v15 = vld [vmem:[#allocation2 + $0x50] sm:$0xff] }
 0x1b1   : > { %v3484_v39 = vmax.f32 %v3436_v50, 0.0  ;;  %v3531_v3 = vmin.f32 %v3483_v59, 6.0  ;;  %v1711_v35 = vadd.f32 %v1616_v56, %v1450_v23  ;;  %v1867_v44 = vsel %vm1849_vm9, %v1865_v2, %v1866_v62  ;;  %v2718_v27 = vld [vmem:[#allocation2 + $0x58] sm:$0xff] }
 0x1b2   : > { %v3533_v37 = vmin.f32 %v3485_v34, 6.0  ;;  %v1869_v45 = vsel %vm1849_vm9, %v1866_v62, %v1868_v40  ;;  %v1987_v60 = vadd.f32 %v1865_v2, %v1710_v46  ;;  %v2135_v57 = vmul.f32 %v4805_v28, %v4331_v51 }
 0x1b3   : > { %v3532_v10 = vmin.f32 %v3484_v39, 6.0  ;;  %v3650_v31 = vrot.slane %v3531_v3, 7  ;;  %v1988_v6 = vadd.f32 %v1867_v44, %v1711_v35  ;;  %v1989_v1 = vadd.f32 %v1869_v45, %v1712_v47 }
 0x1b4   : > { %v3653_v42 = vrot.slane %v3533_v37, 7  ;;  %v2136_v41 = vmul.f32 %v4808_v30, %v4331_v51  ;;  %v2137_v11 = vmul.f32 %v4810_v49, %v4331_v51  ;;  %v2183_v32 = vadd.f32 %v2135_v57, %v1987_v60 }
 0x1b5   : > { %v3651_v63 = vrot.slane %v3532_v10, 7  ;;  %v2232_v43 = vmul.f32 %v4808_v30, %v4334_v52  ;;  %v2233_v16 = vmul.f32 %v4810_v49, %v4334_v52  ;;  %v2447_v23 = vmul.f32 %v4808_v30, %v4337_v53 }
 0x1b6   : > { %v2448_v33 = vmul.f32 %v4810_v49, %v4337_v53  ;;  %v2184_v36 = vadd.f32 %v2136_v41, %v1988_v6  ;;  %v2185_v26 = vadd.f32 %v2137_v11, %v1989_v1  ;;  %v2449_v50 = vmul.f32 %v4812_v58, %v4337_v53  ;;  %v1103_v6 = vld [vmem:[#allocation2 + $0xe0] sm:$0x8] }
 0x1b7   : > { %v3652_v5 = vsel %vm3594_vm10, %v3650_v31, %v3651_v63  ;;  %v3654_v38 = vsel %vm3594_vm10, %v3651_v63, %v3653_v42  ;;  %v2299_v14 = vrot.slane %v2232_v43, 1  ;;  %v2300_v48 = vrot.slane %v2233_v16, 1 }
 0x1b8   : > { %v3718_v54 = vpack.c.bf16 %v3654_v38, %v3652_v5  ;;  %v2549_v22 = vrot.slane %v2447_v23, 2  ;;  %v2550_v2 = vrot.slane %v2448_v33, 2  ;;  %v4957_v59 = vunpack.c.l.bf16 %v2717_v15 }
 0x1b9   : > { %v4959_v34 = vunpack.c.h.bf16 %v2717_v15  ;;  %v2301_v62 = vsel %vm1604_vm8, %v2299_v14, %v2300_v48  ;;  %v2395_v40 = vadd.f32 %v2299_v14, %v2183_v32  ;;  %v2397_v39 = vadd.f32 %v2300_v48, %v2185_v26  ;;  %v1160_v32 = vld [vmem:[#allocation2 + $0xe8] sm:$0x10] }
 0x1ba   : > { %4013 = vmatprep.subr.bf16.mxu1 %v3718_v54  ;;  %v2552_v56 = vrot.slane %v2449_v50, 2  ;;  %v2396_v46 = vadd.f32 %v2301_v62, %v2184_v36  ;;  %v2551_v47 = vsel %vm1849_vm9, %v2549_v22, %v2550_v2  ;;  %v4963_v3 = vunpack.c.l.bf16 %v2718_v27 }
 0x1bb   : > { %v4965_v37 = vunpack.c.h.bf16 %v2718_v27  ;;  %v2671_v44 = vadd.f32 %v2549_v22, %v2395_v40  ;;  %v2820_v10 = vmul.f32 %v4339_v55, %v4957_v59  ;;  %v2821_v45 = vmul.f32 %v4339_v55, %v4959_v34 }
 0x1bc   : > { %v2553_v35 = vsel %vm1849_vm9, %v2550_v2, %v2552_v56  ;;  %v2672_v60 = vadd.f32 %v2551_v47, %v2396_v46  ;;  %v2822_v31 = vmul.f32 %v4339_v55, %v4963_v3  ;;  %v2917_v42 = vmul.f32 %v4348_v13, %v4959_v34 }
 0x1bd   : > { %v2673_v57 = vadd.f32 %v2553_v35, %v2397_v39  ;;  %v2868_v1 = vadd.f32 %v2820_v10, %v2671_v44  ;;  %v2918_v63 = vmul.f32 %v4348_v13, %v4963_v3  ;;  %v3132_v41 = vmul.f32 %v4353_v21, %v4959_v34 }
 0x1be   : > { %v3133_v11 = vmul.f32 %v4353_v21, %v4963_v3  ;;  %v2869_v43 = vadd.f32 %v2821_v45, %v2672_v60  ;;  %v2984_v23 = vrot.slane %v2917_v42, 1  ;;  %v3134_v33 = vmul.f32 %v4353_v21, %v4965_v37 }
 0x1bf   : > { %v2870_v16 = vadd.f32 %v2822_v31, %v2673_v57  ;;  %v2985_v15 = vrot.slane %v2918_v63, 1  ;;  %v3234_v5 = vrot.slane %v3132_v41, 2  ;;  %v1104_v36 = vsel %vm4246_vm6, 0, %v1103_v6 }
 0x1c0   : > { %v3235_v38 = vrot.slane %v3133_v11, 2  ;;  %v3080_v26 = vadd.f32 %v2984_v23, %v2868_v1  ;;  %v3237_v54 = vrot.slane %v3134_v33, 2  ;;  %1105 = vst [vmem:[#allocation2 + $0xe0] sm:$0x8] %v1104_v36  ;;  %v1161_v14 = vsel %vm4250_vm7, 0, %v1160_v32 }
 0x1c1   : > { %v1476_v48 = vmul.f32 %v4732_v9, %v4314_v17  ;;  %v2986_v50 = vsel %vm1604_vm8, %v2984_v23, %v2985_v15  ;;  %v3082_v27 = vadd.f32 %v2985_v15, %v2870_v16  ;;  %1162 = vst [vmem:[#allocation2 + $0xe8] sm:$0x10] %v1161_v14  ;;  %v1477_v2 = vmul.f32 %v4737_v61, %v4314_v17 }
 0x1c2   : > { %v3236_v22 = vsel %vm1849_vm9, %v3234_v5, %v3235_v38  ;;  %v3081_v62 = vadd.f32 %v2986_v50, %v2869_v43  ;;  %v3238_v40 = vsel %vm1849_vm9, %v3235_v38, %v3237_v54  ;;  %v3356_v39 = vadd.f32 %v3234_v5, %v3080_v26 }
 0x1c3   : > { %v1478_v56 = vmul.f32 %v4739_v29, %v4314_v17  ;;  %v3358_v46 = vadd.f32 %v3238_v40, %v3082_v27  ;;  %v1564_v9 = vmul.f32 %v4737_v61, %v4303_v0  ;;  %v1565_v47 = vmul.f32 %v4739_v29, %v4303_v0 }
 0x1c4   : > { %v1789_v35 = vmul.f32 %v4737_v61, %v4308_v8  ;;  %v3357_v44 = vadd.f32 %v3236_v22, %v3081_v62  ;;  %v3411_v10 = vadd.f32 %v4927_v4, %v3356_v39  ;;  %v1790_v45 = vmul.f32 %v4739_v29, %v4308_v8 }
 0x1c5   : > { %v1791_v60 = vmul.f32 %v4743_v25, %v4308_v8  ;;  %v3413_v57 = vadd.f32 %v4927_v4, %v3358_v46  ;;  %v1641_v31 = vrot.slane %v1564_v9, 1  ;;  %v1642_v42 = vrot.slane %v1565_v47, 1 }
 0x1c6   : > { %v1910_v6 = vrot.slane %v1789_v35, 2  ;;  %v3412_v1 = vadd.f32 %v4927_v4, %v3357_v44  ;;  %v3459_v63 = vmax.f32 %v3411_v10, 0.0  ;;  %v1911_v41 = vrot.slane %v1790_v45, 2 }
 0x1c7   : > { %v1913_v11 = vrot.slane %v1791_v60, 2  ;;  %v3461_v61 = vmax.f32 %v3413_v57, 0.0  ;;  %v1643_v32 = vsel %vm1604_vm8, %v1641_v31, %v1642_v42  ;;  %v1737_v43 = vadd.f32 %v1641_v31, %v1476_v48  ;;  %v2735_v44 = vld [vmem:[#allocation2 + $0xe0] sm:$0xff] }
 0x1c8   : > { %v1739_v16 = vadd.f32 %v1642_v42, %v1478_v56  ;;  %v3460_v23 = vmax.f32 %v3412_v1, 0.0  ;;  %v3507_v29 = vmin.f32 %v3459_v63, 6.0  ;;  %v1738_v33 = vadd.f32 %v1643_v32, %v1477_v2  ;;  %v2736_v63 = vld [vmem:[#allocation2 + $0xe8] sm:$0xff] }
 0x1c9   : > { %v1912_v25 = vsel %vm1849_vm9, %v1910_v6, %v1911_v41  ;;  %v3509_v15 = vmin.f32 %v3461_v61, 6.0  ;;  %v1914_v5 = vsel %vm1849_vm9, %v1911_v41, %v1913_v11  ;;  %v2014_v38 = vadd.f32 %v1910_v6, %v1737_v43 }
 0x1ca   : > { %v2162_v36 = vmul.f32 %v4878_v7, %v4331_v51  ;;  %v3508_v26 = vmin.f32 %v3460_v23, 6.0  ;;  %v3610_v54 = vrot.slane %v3507_v29, 7  ;;  %v2015_v14 = vadd.f32 %v1912_v25, %v1738_v33 }
 0x1cb   : > { %v2016_v50 = vadd.f32 %v1914_v5, %v1739_v16  ;;  %v3613_v27 = vrot.slane %v3509_v15, 7  ;;  %v2163_v48 = vmul.f32 %v4880_v20, %v4331_v51  ;;  %v2164_v22 = vmul.f32 %v4883_v24, %v4331_v51 }
 0x1cc   : > { %v2210_v2 = vadd.f32 %v2162_v36, %v2014_v38  ;;  %v3611_v62 = vrot.slane %v3508_v26, 7  ;;  %v2250_v40 = vmul.f32 %v4880_v20, %v4334_v52  ;;  %v2251_v39 = vmul.f32 %v4883_v24, %v4334_v52 }
 0x1cd   : > { %v2474_v56 = vmul.f32 %v4880_v20, %v4337_v53  ;;  %v2211_v46 = vadd.f32 %v2163_v48, %v2015_v14  ;;  %v2212_v9 = vadd.f32 %v2164_v22, %v2016_v50  ;;  %v2475_v47 = vmul.f32 %v4883_v24, %v4337_v53  ;;  %v1079_v22 = vld [vmem:[#allocation2 + $0x60] sm:$0x8] }
 0x1ce   : > { %v2476_v35 = vmul.f32 %v4886_v12, %v4337_v53  ;;  %v3612_v10 = vsel %vm3594_vm10, %v3610_v54, %v3611_v62  ;;  %v3614_v45 = vsel %vm3594_vm10, %v3611_v62, %v3613_v27  ;;  %v2326_v60 = vrot.slane %v2250_v40, 1 }
 0x1cf   : > { %v2327_v57 = vrot.slane %v2251_v39, 1  ;;  %v3710_v31 = vpack.c.bf16 %v3614_v45, %v3612_v10  ;;  %v2594_v42 = vrot.slane %v2474_v56, 2  ;;  %v2595_v6 = vrot.slane %v2475_v47, 2 }
 0x1d0   : > { %v2597_v1 = vrot.slane %v2476_v35, 2  ;;  %v2422_v11 = vadd.f32 %v2326_v60, %v2210_v2  ;;  %v5032_v32 = vunpack.c.l.bf16 %v2735_v44  ;;  %v5036_v29 = vunpack.c.h.bf16 %v2735_v44  ;;  %v1136_v2 = vld [vmem:[#allocation2 + $0x68] sm:$0x10] }
 0x1d1   : > { %v2328_v41 = vsel %vm1604_vm8, %v2326_v60, %v2327_v57  ;;  %v2424_v61 = vadd.f32 %v2327_v57, %v2212_v9  ;;  %4014 = vmatpush3.bf16.xpose.msra.mxu1 %v3710_v31  ;;  %v2596_v16 = vsel %vm1849_vm9, %v2594_v42, %v2595_v6  ;;  %v5038_v15 = vunpack.c.l.bf16 %v2736_v63 }
 0x1d2   : > { %v2423_v43 = vadd.f32 %v2328_v41, %v2211_v46  ;;  %v2598_v23 = vsel %vm1849_vm9, %v2595_v6, %v2597_v1  ;;  %v2698_v33 = vadd.f32 %v2594_v42, %v2422_v11  ;;  %v5040_v5 = vunpack.c.h.bf16 %v2736_v63 }
 0x1d3   : > { %v2700_v25 = vadd.f32 %v2598_v23, %v2424_v61  ;;  %v2847_v36 = vmul.f32 %v4339_v55, %v5032_v32  ;;  %v2848_v26 = vmul.f32 %v4339_v55, %v5036_v29  ;;  %v2935_v54 = vmul.f32 %v4348_v13, %v5036_v29 }
 0x1d4   : > { %v2699_v38 = vadd.f32 %v2596_v16, %v2423_v43  ;;  %v2849_v14 = vmul.f32 %v4339_v55, %v5038_v15  ;;  %v2936_v50 = vmul.f32 %v4348_v13, %v5038_v15  ;;  %v3159_v27 = vmul.f32 %v4353_v21, %v5036_v29 }
 0x1d5   : > { %v3160_v48 = vmul.f32 %v4353_v21, %v5038_v15  ;;  %v2895_v62 = vadd.f32 %v2847_v36, %v2698_v33  ;;  %v3011_v39 = vrot.slane %v2935_v54, 1  ;;  %v3161_v56 = vmul.f32 %v4353_v21, %v5040_v5 }
 0x1d6   : > { %v2896_v40 = vadd.f32 %v2848_v26, %v2699_v38  ;;  %v2897_v46 = vadd.f32 %v2849_v14, %v2700_v25  ;;  %v3012_v9 = vrot.slane %v2936_v50, 1  ;;  %v3279_v47 = vrot.slane %v3159_v27, 2 }
 0x1d7   : > { %v3280_v35 = vrot.slane %v3160_v48, 2  ;;  %v3107_v44 = vadd.f32 %v3011_v39, %v2895_v62  ;;  %v3282_v10 = vrot.slane %v3161_v56, 2  ;;  %v1080_v45 = vsel %vm4246_vm6, 0, %v1079_v22 }
 0x1d8   : > { %v1137_v60 = vsel %vm4250_vm7, 0, %v1136_v2  ;;  %v3013_v57 = vsel %vm1604_vm8, %v3011_v39, %v3012_v9  ;;  %v3109_v31 = vadd.f32 %v3012_v9, %v2897_v46  ;;  %1081 = vst [vmem:[#allocation2 + $0x60] sm:$0x8] %v1080_v45  ;;  %v1452_v6 = vmul.f32 %v4805_v28, %v4314_v17 }
 0x1d9   : > { %v3281_v42 = vsel %vm1849_vm9, %v3279_v47, %v3280_v35  ;;  %1138 = vst [vmem:[#allocation2 + $0x68] sm:$0x10] %v1137_v60  ;;  %v3108_v1 = vadd.f32 %v3013_v57, %v2896_v40  ;;  %v3283_v63 = vsel %vm1849_vm9, %v3280_v35, %v3282_v10  ;;  %v3383_v41 = vadd.f32 %v3279_v47, %v3107_v44 }
 0x1da   : > { %v1453_v11 = vmul.f32 %v4808_v30, %v4314_v17  ;;  %v3385_v61 = vadd.f32 %v3283_v63, %v3109_v31  ;;  %v1454_v43 = vmul.f32 %v4810_v49, %v4314_v17  ;;  %v1548_v16 = vmul.f32 %v4808_v30, %v4303_v0 }
 0x1db   : > { %v1549_v23 = vmul.f32 %v4810_v49, %v4303_v0  ;;  %v3384_v33 = vadd.f32 %v3281_v42, %v3108_v1  ;;  %v3438_v28 = vadd.f32 %v4927_v4, %v3383_v41  ;;  %v1765_v25 = vmul.f32 %v4808_v30, %v4308_v8 }
 0x1dc   : > { %v1766_v38 = vmul.f32 %v4810_v49, %v4308_v8  ;;  %v3440_v36 = vadd.f32 %v4927_v4, %v3385_v61  ;;  %v1617_v26 = vrot.slane %v1548_v16, 1  ;;  %v1767_v14 = vmul.f32 %v4812_v58, %v4308_v8 }
 0x1dd   : > { %v1618_v54 = vrot.slane %v1549_v23, 1  ;;  %v3439_v50 = vadd.f32 %v4927_v4, %v3384_v33  ;;  %v3486_v27 = vmax.f32 %v3438_v28, 0.0  ;;  %v1870_v48 = vrot.slane %v1765_v25, 2 }
 0x1de   : > { %v1871_v22 = vrot.slane %v1766_v38, 2  ;;  %v3488_v2 = vmax.f32 %v3440_v36, 0.0  ;;  %v1713_v40 = vadd.f32 %v1617_v26, %v1452_v6  ;;  %v1873_v47 = vrot.slane %v1767_v14, 2 }
 0x1df   : > { %v1619_v62 = vsel %vm1604_vm8, %v1617_v26, %v1618_v54  ;;  %v1715_v30 = vadd.f32 %v1618_v54, %v1454_v43  ;;  %v3487_v39 = vmax.f32 %v3439_v50, 0.0  ;;  %v3534_v56 = vmin.f32 %v3486_v27, 6.0  ;;  %v2719_v33 = vld [vmem:[#allocation2 + $0x60] sm:$0xff] }
 0x1e0   : > { %v1714_v49 = vadd.f32 %v1619_v62, %v1453_v11  ;;  %v1872_v46 = vsel %vm1849_vm9, %v1870_v48, %v1871_v22  ;;  %v3536_v9 = vmin.f32 %v3488_v2, 6.0  ;;  %v1990_v35 = vadd.f32 %v1870_v48, %v1713_v40  ;;  %v2720_v26 = vld [vmem:[#allocation2 + $0x68] sm:$0xff] }
 0x1e1   : > { %v2138_v58 = vmul.f32 %v4957_v59, %v4331_v51  ;;  %v3535_v44 = vmin.f32 %v3487_v39, 6.0  ;;  %v3655_v10 = vrot.slane %v3534_v56, 7  ;;  %v2139_v60 = vmul.f32 %v4959_v34, %v4331_v51 }
 0x1e2   : > { %v1991_v45 = vadd.f32 %v1872_v46, %v1714_v49  ;;  %v3658_v57 = vrot.slane %v3536_v9, 7  ;;  %v1874_v31 = vsel %vm1849_vm9, %v1871_v22, %v1873_v47  ;;  %v2140_v42 = vmul.f32 %v4963_v3, %v4331_v51 }
 0x1e3   : > { %v2186_v6 = vadd.f32 %v2138_v58, %v1990_v35  ;;  %v3656_v1 = vrot.slane %v3535_v44, 7  ;;  %v1992_v63 = vadd.f32 %v1874_v31, %v1715_v30  ;;  %v2234_v11 = vmul.f32 %v4959_v34, %v4334_v52 }
 0x1e4   : > { %v2187_v41 = vadd.f32 %v2139_v60, %v1991_v45  ;;  %v2235_v61 = vmul.f32 %v4963_v3, %v4334_v52  ;;  %v2450_v43 = vmul.f32 %v4959_v34, %v4337_v53  ;;  %v2451_v16 = vmul.f32 %v4963_v3, %v4337_v53 }
 0x1e5   : > { %v2452_v23 = vmul.f32 %v4965_v37, %v4337_v53  ;;  %v3657_v28 = vsel %vm3594_vm10, %v3655_v10, %v3656_v1  ;;  %v3659_v25 = vsel %vm3594_vm10, %v3656_v1, %v3658_v57  ;;  %v2188_v38 = vadd.f32 %v2140_v42, %v1992_v63  ;;  %v1106_v42 = vld [vmem:[#allocation2 + $0xf0] sm:$0x8] }
 0x1e6   : > { %v2302_v36 = vrot.slane %v2234_v11, 1  ;;  %v3719_v54 = vpack.c.bf16 %v3659_v25, %v3657_v28  ;;  %v2303_v14 = vrot.slane %v2235_v61, 1  ;;  %v2554_v50 = vrot.slane %v2450_v43, 2 }
 0x1e7   : > { %v2555_v27 = vrot.slane %v2451_v16, 2  ;;  %v2557_v22 = vrot.slane %v2452_v23, 2  ;;  %v5105_v2 = vunpack.c.l.bf16 %v2719_v33  ;;  %v5107_v62 = vunpack.c.h.bf16 %v2719_v33 }
 0x1e8   : > { %v2398_v48 = vadd.f32 %v2302_v36, %v2186_v6  ;;  %4015 = vmatprep.subr.bf16.mxu1 %v3719_v54  ;;  %v2304_v40 = vsel %vm1604_vm8, %v2302_v36, %v2303_v14  ;;  %v2400_v30 = vadd.f32 %v2303_v14, %v2188_v38  ;;  %v5111_v56 = vunpack.c.l.bf16 %v2720_v26  ;;  %v1163_v6 = vld [vmem:[#allocation2 + $0xf8] sm:$0x10] }
 0x1e9   : > { %v2556_v39 = vsel %vm1849_vm9, %v2554_v50, %v2555_v27  ;;  %v2399_v49 = vadd.f32 %v2304_v40, %v2187_v41  ;;  %v2558_v46 = vsel %vm1849_vm9, %v2555_v27, %v2557_v22  ;;  %v5114_v47 = vunpack.c.h.bf16 %v2720_v26 }
 0x1ea   : > { %v2674_v9 = vadd.f32 %v2554_v50, %v2398_v48  ;;  %v2676_v35 = vadd.f32 %v2558_v46, %v2400_v30  ;;  %v2823_v58 = vmul.f32 %v4339_v55, %v5105_v2  ;;  %v2824_v44 = vmul.f32 %v4339_v55, %v5107_v62 }
 0x1eb   : > { %v2825_v10 = vmul.f32 %v4339_v55, %v5111_v56  ;;  %v2675_v45 = vadd.f32 %v2556_v39, %v2399_v49  ;;  %v2919_v60 = vmul.f32 %v4348_v13, %v5107_v62  ;;  %v2920_v57 = vmul.f32 %v4348_v13, %v5111_v56 }
 0x1ec   : > { %v3135_v31 = vmul.f32 %v4353_v21, %v5107_v62  ;;  %v2871_v1 = vadd.f32 %v2823_v58, %v2674_v9  ;;  %v3136_v41 = vmul.f32 %v4353_v21, %v5111_v56  ;;  %v3137_v11 = vmul.f32 %v4353_v21, %v5114_v47 }
 0x1ed   : > { %v2873_v63 = vadd.f32 %v2825_v10, %v2676_v35  ;;  %v2872_v61 = vadd.f32 %v2824_v44, %v2675_v45  ;;  %v2987_v43 = vrot.slane %v2919_v60, 1  ;;  %v2988_v16 = vrot.slane %v2920_v57, 1 }
 0x1ee   : > { %v3239_v23 = vrot.slane %v3135_v31, 2  ;;  %v3240_v33 = vrot.slane %v3136_v41, 2  ;;  %v3242_v28 = vrot.slane %v3137_v11, 2  ;;  %v1107_v25 = vsel %vm4246_vm6, 0, %v1106_v42 }
 0x1ef   : > { %v1164_v38 = vsel %vm4250_vm7, 0, %v1163_v6  ;;  %v2989_v36 = vsel %vm1604_vm8, %v2987_v43, %v2988_v16  ;;  %v3083_v26 = vadd.f32 %v2987_v43, %v2871_v1  ;;  %v3085_v54 = vadd.f32 %v2988_v16, %v2873_v63  ;;  %1108 = vst [vmem:[#allocation2 + $0xf0] sm:$0x8] %v1107_v25 }
 0x1f0   : > { %1165 = vst [vmem:[#allocation2 + $0xf8] sm:$0x10] %v1164_v38  ;;  %v1479_v14 = vmul.f32 %v4878_v7, %v4314_v17  ;;  %v3084_v50 = vadd.f32 %v2989_v36, %v2872_v61  ;;  %v3241_v27 = vsel %vm1849_vm9, %v3239_v23, %v3240_v33  ;;  %v3243_v48 = vsel %vm1849_vm9, %v3240_v33, %v3242_v28 }
 0x1f1   : > { %v1480_v22 = vmul.f32 %v4880_v20, %v4314_v17  ;;  %v3359_v40 = vadd.f32 %v3239_v23, %v3083_v26  ;;  %v3361_v30 = vadd.f32 %v3243_v48, %v3085_v54  ;;  %v1481_v39 = vmul.f32 %v4883_v24, %v4314_v17 }
 0x1f2   : > { %v1566_v49 = vmul.f32 %v4880_v20, %v4303_v0  ;;  %v3360_v46 = vadd.f32 %v3241_v27, %v3084_v50  ;;  %v1567_v7 = vmul.f32 %v4883_v24, %v4303_v0  ;;  %v1792_v9 = vmul.f32 %v4880_v20, %v4308_v8 }
 0x1f3   : > { %v1793_v35 = vmul.f32 %v4883_v24, %v4308_v8  ;;  %v3414_v58 = vadd.f32 %v4927_v4, %v3359_v40  ;;  %v3416_v44 = vadd.f32 %v4927_v4, %v3361_v30  ;;  %v1794_v45 = vmul.f32 %v4886_v12, %v4308_v8 }
 0x1f4   : > { %v1644_v10 = vrot.slane %v1566_v49, 1  ;;  %v3415_v60 = vadd.f32 %v4927_v4, %v3360_v46  ;;  %v1645_v57 = vrot.slane %v1567_v7, 1  ;;  %v1915_v31 = vrot.slane %v1792_v9, 2 }
 0x1f5   : > { %v1916_v42 = vrot.slane %v1793_v35, 2  ;;  %v3462_v6 = vmax.f32 %v3414_v58, 0.0  ;;  %v3464_v1 = vmax.f32 %v3416_v44, 0.0  ;;  %v1918_v20 = vrot.slane %v1794_v45, 2 }
 0x1f6   : > { %v1740_v63 = vadd.f32 %v1644_v10, %v1479_v14  ;;  %v3463_v41 = vmax.f32 %v3415_v60, 0.0  ;;  %v1646_v24 = vsel %vm1604_vm8, %v1644_v10, %v1645_v57  ;;  %v1742_v11 = vadd.f32 %v1645_v57, %v1481_v39  ;;  %v2737_v46 = vld [vmem:[#allocation2 + $0xf0] sm:$0xff] }
 0x1f7   : > { %v1917_v61 = vsel %vm1849_vm9, %v1915_v31, %v1916_v42  ;;  %v3510_v43 = vmin.f32 %v3462_v6, 6.0  ;;  %v3512_v16 = vmin.f32 %v3464_v1, 6.0  ;;  %v1741_v23 = vadd.f32 %v1646_v24, %v1480_v22  ;;  %v2738_v44 = vld [vmem:[#allocation2 + $0xf8] sm:$0xff] }
 0x1f8   : > { %v1919_v12 = vsel %vm1849_vm9, %v1916_v42, %v1918_v20  ;;  %v3511_v33 = vmin.f32 %v3463_v41, 6.0  ;;  %v2017_v28 = vadd.f32 %v1915_v31, %v1740_v63  ;;  %v2165_v38 = vmul.f32 %v5032_v32, %v4331_v51 }
 0x1f9   : > { %v2019_v25 = vadd.f32 %v1919_v12, %v1742_v11  ;;  %v3615_v36 = vrot.slane %v3510_v43, 7  ;;  %v3618_v26 = vrot.slane %v3512_v16, 7  ;;  %v2018_v54 = vadd.f32 %v1917_v61, %v1741_v23 }
 0x1fa   : > { %v2166_v14 = vmul.f32 %v5036_v29, %v4331_v51  ;;  %v3616_v50 = vrot.slane %v3511_v33, 7  ;;  %v2167_v27 = vmul.f32 %v5038_v15, %v4331_v51  ;;  %v2213_v48 = vadd.f32 %v2165_v38, %v2017_v28 }
 0x1fb   : > { %v2252_v22 = vmul.f32 %v5036_v29, %v4334_v52  ;;  %v2253_v30 = vmul.f32 %v5038_v15, %v4334_v52  ;;  %v2477_v39 = vmul.f32 %v5036_v29, %v4337_v53  ;;  %v2478_v49 = vmul.f32 %v5038_v15, %v4337_v53 }
 0x1fc   : > { %v2214_v40 = vadd.f32 %v2166_v14, %v2018_v54  ;;  %v3617_v7 = vsel %vm3594_vm10, %v3615_v36, %v3616_v50  ;;  %v3619_v9 = vsel %vm3594_vm10, %v3616_v50, %v3618_v26  ;;  %v2215_v35 = vadd.f32 %v2167_v27, %v2019_v25  ;;  %v1082_v54 = vld [vmem:[#allocation2 + $0x70] sm:$0x8] }
 0x1fd   : > { %v2329_v58 = vrot.slane %v2252_v22, 1  ;;  %v3711_v10 = vpack.c.bf16 %v3619_v9, %v3617_v7  ;;  %v2330_v45 = vrot.slane %v2253_v30, 1  ;;  %v2479_v60 = vmul.f32 %v5040_v5, %v4337_v53  ;;  %v1139_v22 = vld [vmem:[#allocation2 + $0x78] sm:$0x10] }
 0x1fe   : > { %v2599_v57 = vrot.slane %v2477_v39, 2  ;;  %v2600_v42 = vrot.slane %v2478_v49, 2  ;;  %v5179_v6 = vunpack.c.l.bf16 %v2737_v46  ;;  %v5181_v1 = vunpack.c.h.bf16 %v2737_v46 }
 0x1ff   : > { %v2425_v31 = vadd.f32 %v2329_v58, %v2213_v48  ;;  %4016 = vmatpush3.bf16.xpose.msra.mxu1 %v3711_v10  ;;  %v2331_v63 = vsel %vm1604_vm8, %v2329_v58, %v2330_v45  ;;  %v2427_v20 = vadd.f32 %v2330_v45, %v2215_v35  ;;  %v2602_v41 = vrot.slane %v2479_v60, 2 }
 0x200   : > { %v5184_v24 = vunpack.c.l.bf16 %v2738_v44  ;;  %v2426_v11 = vadd.f32 %v2331_v63, %v2214_v40  ;;  %v2601_v61 = vsel %vm1849_vm9, %v2599_v57, %v2600_v42  ;;  %v5187_v16 = vunpack.c.h.bf16 %v2738_v44 }
 0x201   : > { %v2701_v43 = vadd.f32 %v2599_v57, %v2425_v31  ;;  %v2603_v23 = vsel %vm1849_vm9, %v2600_v42, %v2602_v41  ;;  %v2850_v12 = vmul.f32 %v4339_v55, %v5179_v6  ;;  %v2851_v33 = vmul.f32 %v4339_v55, %v5181_v1 }
 0x202   : > { %v2852_v28 = vmul.f32 %v4339_v55, %v5184_v24  ;;  %v2702_v25 = vadd.f32 %v2601_v61, %v2426_v11  ;;  %v2703_v38 = vadd.f32 %v2603_v23, %v2427_v20  ;;  %v2937_v36 = vmul.f32 %v4348_v13, %v5181_v1  ;;  %v5222_v61 = vld [vmem:[%s5603_s8] sm:$0xf] }
 0x203   : > { %v2938_v26 = vmul.f32 %v4348_v13, %v5184_v24  ;;  %v2898_v14 = vadd.f32 %v2850_v12, %v2701_v43  ;;  %v3162_v50 = vmul.f32 %v4353_v21, %v5181_v1  ;;  %v3163_v27 = vmul.f32 %v4353_v21, %v5184_v24  ;;  %4023 = vmatprep.mubr.bf16.mxu1 %v5222_v61 }
 0x204   : > { %v3164_v48 = vmul.f32 %v4353_v21, %v5187_v16  ;;  %v2899_v40 = vadd.f32 %v2851_v33, %v2702_v25  ;;  %v2900_v30 = vadd.f32 %v2852_v28, %v2703_v38  ;;  %v3014_v39 = vrot.slane %v2937_v36, 1 }
 0x205   : > { %v3015_v49 = vrot.slane %v2938_v26, 1  ;;  %v3284_v46 = vrot.slane %v3162_v50, 2  ;;  %v3285_v7 = vrot.slane %v3163_v27, 2  ;;  %v1083_v35 = vsel %vm4246_vm6, 0, %v1082_v54 }
 0x206   : > { %v3287_v9 = vrot.slane %v3164_v48, 2  ;;  %v3110_v44 = vadd.f32 %v3014_v39, %v2898_v14  ;;  %1084 = vst [vmem:[#allocation2 + $0x70] sm:$0x8] %v1083_v35  ;;  %v1140_v45 = vsel %vm4250_vm7, 0, %v1139_v22  ;;  %v1455_v42 = vmul.f32 %v4957_v59, %v4314_v17 }
 0x207   : > { %v3016_v58 = vsel %vm1604_vm8, %v3014_v39, %v3015_v49  ;;  %v3112_v10 = vadd.f32 %v3015_v49, %v2900_v30  ;;  %v3286_v57 = vsel %vm1849_vm9, %v3284_v46, %v3285_v7  ;;  %1141 = vst [vmem:[#allocation2 + $0x78] sm:$0x10] %v1140_v45  ;;  %v1456_v41 = vmul.f32 %v4959_v34, %v4314_v17 }
 0x208   : > { %v3111_v60 = vadd.f32 %v3016_v58, %v2899_v40  ;;  %v3288_v31 = vsel %vm1849_vm9, %v3285_v7, %v3287_v9  ;;  %v3386_v63 = vadd.f32 %v3284_v46, %v3110_v44  ;;  %v1457_v11 = vmul.f32 %v4963_v3, %v4314_v17  ;;  %v3724_v44 = vld [vmem:[%s5604_s9] sm:$0xff] }
 0x209   : > { %v3388_v20 = vadd.f32 %v3288_v31, %v3112_v10  ;;  %v1550_v23 = vmul.f32 %v4959_v34, %v4303_v0  ;;  %v1551_v59 = vmul.f32 %v4963_v3, %v4303_v0  ;;  %v1768_v12 = vmul.f32 %v4959_v34, %v4308_v8  ;;  %3727 = vperm.xlu0 %4085, %v3724_v44  }
 0x20a   : > { %v3387_v43 = vadd.f32 %v3286_v57, %v3111_v60  ;;  %v3441_v33 = vadd.f32 %v4927_v4, %v3386_v63  ;;  %v1769_v25 = vmul.f32 %v4963_v3, %v4308_v8  ;;  %v1770_v38 = vmul.f32 %v4965_v37, %v4308_v8 }
 0x20b   : > { %v3443_v28 = vadd.f32 %v4927_v4, %v3388_v20  ;;  %v1620_v26 = vrot.slane %v1550_v23, 1  ;;  %v1621_v54 = vrot.slane %v1551_v59, 1  ;;  %v1875_v14 = vrot.slane %v1768_v12, 2 }
 0x20c   : > { %v3442_v36 = vadd.f32 %v4927_v4, %v3387_v43  ;;  %v3489_v50 = vmax.f32 %v3441_v33, 0.0  ;;  %v1876_v34 = vrot.slane %v1769_v25, 2  ;;  %v1878_v48 = vrot.slane %v1770_v38, 2 }
 0x20d   : > { %v3491_v27 = vmax.f32 %v3443_v28, 0.0  ;;  %v1622_v40 = vsel %vm1604_vm8, %v1620_v26, %v1621_v54  ;;  %v1716_v30 = vadd.f32 %v1620_v26, %v1455_v42  ;;  %v1718_v39 = vadd.f32 %v1621_v54, %v1457_v11  ;;  %v2721_v59 = vld [vmem:[#allocation2 + $0x70] sm:$0xff] }
 0x20e   : > { %v3490_v22 = vmax.f32 %v3442_v36, 0.0  ;;  %v3537_v49 = vmin.f32 %v3489_v50, 6.0  ;;  %v1717_v3 = vadd.f32 %v1622_v40, %v1456_v41  ;;  %v1877_v7 = vsel %vm1849_vm9, %v1875_v14, %v1876_v34 }
 0x20f   : > { %v3539_v46 = vmin.f32 %v3491_v27, 6.0  ;;  %v1879_v9 = vsel %vm1849_vm9, %v1876_v34, %v1878_v48  ;;  %v1993_v35 = vadd.f32 %v1875_v14, %v1716_v30  ;;  %v2141_v58 = vmul.f32 %v5105_v2, %v4331_v51  ;;  %v2722_v14 = vld [vmem:[#allocation2 + $0x78] sm:$0xff] }
 0x210   : > { %v3538_v37 = vmin.f32 %v3490_v22, 6.0  ;;  %v3660_v10 = vrot.slane %v3537_v49, 7  ;;  %v1994_v60 = vadd.f32 %v1877_v7, %v1717_v3  ;;  %v1995_v57 = vadd.f32 %v1879_v9, %v1718_v39 }
 0x211   : > { %v3663_v45 = vrot.slane %v3539_v46, 7  ;;  %v2142_v42 = vmul.f32 %v5107_v62, %v4331_v51  ;;  %v2143_v63 = vmul.f32 %v5111_v56, %v4331_v51  ;;  %v2189_v20 = vadd.f32 %v2141_v58, %v1993_v35 }
 0x212   : > { %v3661_v31 = vrot.slane %v3538_v37, 7  ;;  %v2236_v41 = vmul.f32 %v5107_v62, %v4334_v52  ;;  %v2237_v11 = vmul.f32 %v5111_v56, %v4334_v52  ;;  %v2453_v43 = vmul.f32 %v5107_v62, %v4337_v53 }
 0x213   : > { %v2454_v23 = vmul.f32 %v5111_v56, %v4337_v53  ;;  %v2190_v28 = vadd.f32 %v2142_v42, %v1994_v60  ;;  %v2191_v25 = vadd.f32 %v2143_v63, %v1995_v57  ;;  %v2455_v54 = vmul.f32 %v5114_v47, %v4337_v53  ;;  %v1109_v57 = vld [vmem:[#allocation2 + $0x100] sm:$0x8] }
 0x214   : > { %v3662_v12 = vsel %vm3594_vm10, %v3660_v10, %v3661_v31  ;;  %v3664_v33 = vsel %vm3594_vm10, %v3661_v31, %v3663_v45  ;;  %v2305_v36 = vrot.slane %v2236_v41, 1  ;;  %v2306_v26 = vrot.slane %v2237_v11, 1  ;;  %v1166_v41 = vld [vmem:[#allocation2 + $0x108] sm:$0x10] }
 0x215   : > { %v3720_v38 = vpack.c.bf16 %v3664_v33, %v3662_v12  ;;  %v2559_v50 = vrot.slane %v2453_v43, 2  ;;  %v2560_v27 = vrot.slane %v2454_v23, 2  ;;  %v5262_v34 = vunpack.c.l.bf16 %v2721_v59 }
 0x216   : > { %v5264_v48 = vunpack.c.h.bf16 %v2721_v59  ;;  %v2307_v22 = vsel %vm1604_vm8, %v2305_v36, %v2306_v26  ;;  %v2401_v40 = vadd.f32 %v2305_v36, %v2189_v20  ;;  %v2403_v30 = vadd.f32 %v2306_v26, %v2191_v25 }
 0x217   : > { %4017 = vmatprep.subr.bf16.mxu1 %v3720_v38  ;;  %v2562_v39 = vrot.slane %v2455_v54, 2  ;;  %v2402_v49 = vadd.f32 %v2307_v22, %v2190_v28  ;;  %v2561_v46 = vsel %vm1849_vm9, %v2559_v50, %v2560_v27  ;;  %v5268_v3 = vunpack.c.l.bf16 %v2722_v14 }
 0x218   : > { %v5270_v7 = vunpack.c.h.bf16 %v2722_v14  ;;  %v2677_v9 = vadd.f32 %v2559_v50, %v2401_v40  ;;  %v2826_v35 = vmul.f32 %v4339_v55, %v5262_v34  ;;  %v2827_v58 = vmul.f32 %v4339_v55, %v5264_v48 }
 0x219   : > { %v2563_v37 = vsel %vm1849_vm9, %v2560_v27, %v2562_v39  ;;  %v2678_v44 = vadd.f32 %v2561_v46, %v2402_v49  ;;  %v2828_v45 = vmul.f32 %v4339_v55, %v5268_v3  ;;  %v2921_v60 = vmul.f32 %v4348_v13, %v5264_v48 }
 0x21a   : > { %v2679_v10 = vadd.f32 %v2563_v37, %v2403_v30  ;;  %v2874_v31 = vadd.f32 %v2826_v35, %v2677_v9  ;;  %v2922_v42 = vmul.f32 %v4348_v13, %v5268_v3  ;;  %v3138_v63 = vmul.f32 %v4353_v21, %v5264_v48 }
 0x21b   : > { %v3139_v20 = vmul.f32 %v4353_v21, %v5268_v3  ;;  %v2875_v11 = vadd.f32 %v2827_v58, %v2678_v44  ;;  %v2990_v23 = vrot.slane %v2921_v60, 1  ;;  %v3140_v59 = vmul.f32 %v4353_v21, %v5270_v7 }
 0x21c   : > { %v2876_v43 = vadd.f32 %v2828_v45, %v2679_v10  ;;  %v2991_v12 = vrot.slane %v2922_v42, 1  ;;  %v3244_v33 = vrot.slane %v3138_v63, 2  ;;  %v1110_v25 = vsel %vm4246_vm6, 0, %v1109_v57 }
 0x21d   : > { %v3245_v28 = vrot.slane %v3139_v20, 2  ;;  %v3086_v38 = vadd.f32 %v2990_v23, %v2874_v31  ;;  %v3247_v36 = vrot.slane %v3140_v59, 2  ;;  %1111 = vst [vmem:[#allocation2 + $0x100] sm:$0x8] %v1110_v25  ;;  %v1167_v26 = vsel %vm4250_vm7, 0, %v1166_v41 }
 0x21e   : > { %v1482_v54 = vmul.f32 %v5032_v32, %v4314_v17  ;;  %v2992_v14 = vsel %vm1604_vm8, %v2990_v23, %v2991_v12  ;;  %v3088_v50 = vadd.f32 %v2991_v12, %v2876_v43  ;;  %1168 = vst [vmem:[#allocation2 + $0x108] sm:$0x10] %v1167_v26  ;;  %v1483_v22 = vmul.f32 %v5036_v29, %v4314_v17 }
 0x21f   : > { %v3246_v27 = vsel %vm1849_vm9, %v3244_v33, %v3245_v28  ;;  %v3087_v40 = vadd.f32 %v2992_v14, %v2875_v11  ;;  %v3248_v30 = vsel %vm1849_vm9, %v3245_v28, %v3247_v36  ;;  %v3362_v39 = vadd.f32 %v3244_v33, %v3086_v38 }
 0x220   : > { %v1484_v49 = vmul.f32 %v5038_v15, %v4314_v17  ;;  %v3364_v46 = vadd.f32 %v3248_v30, %v3088_v50  ;;  %v1568_v32 = vmul.f32 %v5036_v29, %v4303_v0  ;;  %v1569_v37 = vmul.f32 %v5038_v15, %v4303_v0 }
 0x221   : > { %v1795_v9 = vmul.f32 %v5036_v29, %v4308_v8  ;;  %v3363_v35 = vadd.f32 %v3246_v27, %v3087_v40  ;;  %v3417_v58 = vadd.f32 %v4927_v4, %v3362_v39  ;;  %v1796_v44 = vmul.f32 %v5038_v15, %v4308_v8 }
 0x222   : > { %v1797_v10 = vmul.f32 %v5040_v5, %v4308_v8  ;;  %v3419_v45 = vadd.f32 %v4927_v4, %v3364_v46  ;;  %v1647_v60 = vrot.slane %v1568_v32, 1  ;;  %v1648_v57 = vrot.slane %v1569_v37, 1 }
 0x223   : > { %v1920_v31 = vrot.slane %v1795_v9, 2  ;;  %v3418_v42 = vadd.f32 %v4927_v4, %v3363_v35  ;;  %v3465_v63 = vmax.f32 %v3417_v58, 0.0  ;;  %v1921_v20 = vrot.slane %v1796_v44, 2 }
 0x224   : > { %v1923_v41 = vrot.slane %v1797_v10, 2  ;;  %v3467_v29 = vmax.f32 %v3419_v45, 0.0  ;;  %v1649_v11 = vsel %vm1604_vm8, %v1647_v60, %v1648_v57  ;;  %v1743_v43 = vadd.f32 %v1647_v60, %v1482_v54  ;;  %v5334_v35 = vld [vmem:[#allocation2 + $0x100] sm:$0xff] }
 0x225   : > { %v1745_v23 = vadd.f32 %v1648_v57, %v1484_v49  ;;  %v3466_v59 = vmax.f32 %v3418_v42, 0.0  ;;  %v3513_v15 = vmin.f32 %v3465_v63, 6.0  ;;  %v1744_v12 = vadd.f32 %v1649_v11, %v1483_v22  ;;  %v5338_v63 = vld [vmem:[#allocation2 + $0x108] sm:$0xff] }
 0x226   : > { %v1922_v5 = vsel %vm1849_vm9, %v1920_v31, %v1921_v20  ;;  %v3515_v33 = vmin.f32 %v3467_v29, 6.0  ;;  %v1924_v28 = vsel %vm1849_vm9, %v1921_v20, %v1923_v41  ;;  %v2020_v25 = vadd.f32 %v1920_v31, %v1743_v43 }
 0x227   : > { %v2168_v4 = vmul.f32 %v5179_v6, %v4331_v51  ;;  %v3514_v38 = vmin.f32 %v3466_v59, 6.0  ;;  %v3620_v36 = vrot.slane %v3513_v15, 7  ;;  %v2021_v26 = vadd.f32 %v1922_v5, %v1744_v12 }
 0x228   : > { %v2022_v14 = vadd.f32 %v1924_v28, %v1745_v23  ;;  %v3623_v50 = vrot.slane %v3515_v33, 7  ;;  %v2169_v54 = vmul.f32 %v5181_v1, %v4331_v51  ;;  %v2170_v27 = vmul.f32 %v5184_v24, %v4331_v51 }
 0x229   : > { %v2216_v22 = vadd.f32 %v2168_v4, %v2020_v25  ;;  %v3621_v40 = vrot.slane %v3514_v38, 7  ;;  %v2254_v30 = vmul.f32 %v5181_v1, %v4334_v52  ;;  %v2255_v39 = vmul.f32 %v5184_v24, %v4334_v52 }
 0x22a   : > { %v2480_v49 = vmul.f32 %v5181_v1, %v4337_v53  ;;  %v2217_v46 = vadd.f32 %v2169_v54, %v2021_v26  ;;  %v2218_v32 = vadd.f32 %v2170_v27, %v2022_v14  ;;  %v2481_v37 = vmul.f32 %v5184_v24, %v4337_v53 }
 0x22b   : > { %v2482_v9 = vmul.f32 %v5187_v16, %v4337_v53  ;;  %v3622_v58 = vsel %vm3594_vm10, %v3620_v36, %v3621_v40  ;;  %v3624_v44 = vsel %vm3594_vm10, %v3621_v40, %v3623_v50  ;;  %v2332_v10 = vrot.slane %v2254_v30, 1 }
 0x22c   : > { %v2333_v45 = vrot.slane %v2255_v39, 1  ;;  %v3712_v60 = vpack.c.bf16 %v3624_v44, %v3622_v58  ;;  %v2604_v57 = vrot.slane %v2480_v49, 2  ;;  %v2605_v31 = vrot.slane %v2481_v37, 2 }
 0x22d   : > { %v2607_v42 = vrot.slane %v2482_v9, 2  ;;  %v2428_v41 = vadd.f32 %v2332_v10, %v2216_v22  ;;  %v2799_v11 = vunpack.c.l.bf16 %v5334_v35  ;;  %v5345_v15 = vunpack.c.h.bf16 %v5334_v35 }
 0x22e   : > { %v2334_v20 = vsel %vm1604_vm8, %v2332_v10, %v2333_v45  ;;  %v2430_v29 = vadd.f32 %v2333_v45, %v2218_v32  ;;  %4018 = vmatpush3.bf16.xpose.msra.mxu1 %v3712_v60  ;;  %v2606_v23 = vsel %vm1849_vm9, %v2604_v57, %v2605_v31  ;;  %v5348_v33 = vunpack.c.l.bf16 %v5338_v63 }
 0x22f   : > { %v2429_v43 = vadd.f32 %v2334_v20, %v2217_v46  ;;  %v2608_v59 = vsel %vm1849_vm9, %v2605_v31, %v2607_v42  ;;  %v2704_v12 = vadd.f32 %v2604_v57, %v2428_v41  ;;  %v2802_v28 = vunpack.c.h.bf16 %v5338_v63 }
 0x230   : > { %v2706_v5 = vadd.f32 %v2608_v59, %v2430_v29  ;;  %v2853_v4 = vmul.f32 %v4339_v55, %v2799_v11  ;;  %v2854_v38 = vmul.f32 %v4339_v55, %v5345_v15  ;;  %v2939_v36 = vmul.f32 %v4348_v13, %v5345_v15 }
 0x231   : > { %v2705_v25 = vadd.f32 %v2606_v23, %v2429_v43  ;;  %v2855_v26 = vmul.f32 %v4339_v55, %v5348_v33  ;;  %v2940_v14 = vmul.f32 %v4348_v13, %v5348_v33  ;;  %v3165_v50 = vmul.f32 %v4353_v21, %v5345_v15 }
 0x232   : > { %v3166_v54 = vmul.f32 %v4353_v21, %v5348_v33  ;;  %v2901_v27 = vadd.f32 %v2853_v4, %v2704_v12  ;;  %v3017_v40 = vrot.slane %v2939_v36, 1  ;;  %v3167_v30 = vmul.f32 %v4353_v21, %v2802_v28  ;;  %v5389_v12 = vld [vmem:[%s5602_s7] ss:$0 sm:$0xff] }
 0x233   : > { %v2902_v22 = vadd.f32 %v2854_v38, %v2705_v25  ;;  %v2903_v39 = vadd.f32 %v2855_v26, %v2706_v5  ;;  %v3018_v49 = vrot.slane %v2940_v14, 1  ;;  %v3289_v46 = vrot.slane %v3165_v50, 2 }
 0x234   : > { %v3290_v32 = vrot.slane %v3166_v54, 2  ;;  %v3113_v37 = vadd.f32 %v3017_v40, %v2901_v27  ;;  %v3292_v9 = vrot.slane %v3167_v30, 2  ;;  %v1458_v58 = vmul.f32 %v5105_v2, %v4314_v17 }
 0x235   : > { %v1459_v44 = vmul.f32 %v5107_v62, %v4314_v17  ;;  %v3019_v10 = vsel %vm1604_vm8, %v3017_v40, %v3018_v49  ;;  %v3115_v45 = vadd.f32 %v3018_v49, %v2903_v39  ;;  %v1460_v57 = vmul.f32 %v5111_v56, %v4314_v17 }
 0x236   : > { %v3291_v60 = vsel %vm1849_vm9, %v3289_v46, %v3290_v32  ;;  %v3114_v31 = vadd.f32 %v3019_v10, %v2902_v22  ;;  %v3293_v42 = vsel %vm1849_vm9, %v3290_v32, %v3292_v9  ;;  %v3389_v20 = vadd.f32 %v3289_v46, %v3113_v37 }
 0x237   : > { %v1552_v41 = vmul.f32 %v5107_v62, %v4303_v0  ;;  %v3391_v29 = vadd.f32 %v3293_v42, %v3115_v45  ;;  %v1553_v2 = vmul.f32 %v5111_v56, %v4303_v0  ;;  %v1771_v43 = vmul.f32 %v5107_v62, %v4308_v8 }
 0x238   : > { %v1772_v23 = vmul.f32 %v5111_v56, %v4308_v8  ;;  %v3390_v59 = vadd.f32 %v3291_v60, %v3114_v31  ;;  %v3444_v5 = vadd.f32 %v5389_v12, %v3389_v20  ;;  %v1773_v4 = vmul.f32 %v5114_v47, %v4308_v8 }
 0x239   : > { %v1623_v25 = vrot.slane %v1552_v41, 1  ;;  %v3446_v38 = vadd.f32 %v5389_v12, %v3391_v29  ;;  %v1624_v36 = vrot.slane %v1553_v2, 1  ;;  %v1880_v26 = vrot.slane %v1771_v43, 2 }
 0x23a   : > { %v1881_v62 = vrot.slane %v1772_v23, 2  ;;  %v3445_v14 = vadd.f32 %v5389_v12, %v3390_v59  ;;  %v3492_v56 = vmax.f32 %v3444_v5, 0.0  ;;  %v1883_v54 = vrot.slane %v1773_v4, 2  ;;  %v5415_v4 = vld [vmem:[#allocation2 + $0x80] sm:$0xff] }
 0x23b   : > { %v1719_v50 = vadd.f32 %v1623_v25, %v1458_v58  ;;  %v3494_v27 = vmax.f32 %v3446_v38, 0.0  ;;  %v1625_v22 = vsel %vm1604_vm8, %v1623_v25, %v1624_v36  ;;  %v1721_v40 = vadd.f32 %v1624_v36, %v1460_v57 }
 0x23c   : > { %v1882_v30 = vsel %vm1849_vm9, %v1880_v26, %v1881_v62  ;;  %v3493_v39 = vmax.f32 %v3445_v14, 0.0  ;;  %v3540_v49 = vmin.f32 %v3492_v56, 6.0  ;;  %v1720_v46 = vadd.f32 %v1625_v22, %v1459_v44 }
 0x23d   : > { %v1884_v47 = vsel %vm1849_vm9, %v1881_v62, %v1883_v54  ;;  %v3542_v32 = vmin.f32 %v3494_v27, 6.0  ;;  %v1996_v37 = vadd.f32 %v1880_v26, %v1719_v50  ;;  %v2144_v10 = vmul.f32 %v5262_v34, %v4331_v51  ;;  %v5419_v27 = vld [vmem:[#allocation2 + $0x88] sm:$0xff] }
 0x23e   : > { %v1998_v9 = vadd.f32 %v1884_v47, %v1721_v40  ;;  %v3541_v45 = vmin.f32 %v3493_v39, 6.0  ;;  %v3665_v58 = vrot.slane %v3540_v49, 7  ;;  %v1997_v60 = vadd.f32 %v1882_v30, %v1720_v46 }
 0x23f   : > { %v2145_v31 = vmul.f32 %v5264_v48, %v4331_v51  ;;  %v3668_v57 = vrot.slane %v3542_v32, 7  ;;  %v2146_v42 = vmul.f32 %v5268_v3, %v4331_v51  ;;  %v2192_v20 = vadd.f32 %v2144_v10, %v1996_v37 }
 0x240   : > { %v2238_v44 = vmul.f32 %v5264_v48, %v4334_v52  ;;  %v3666_v41 = vrot.slane %v3541_v45, 7  ;;  %v2239_v2 = vmul.f32 %v5268_v3, %v4334_v52  ;;  %v2456_v43 = vmul.f32 %v5264_v48, %v4337_v53 }
 0x241   : > { %v2193_v29 = vadd.f32 %v2145_v31, %v1997_v60  ;;  %v2194_v23 = vadd.f32 %v2146_v42, %v1998_v9  ;;  %v2457_v5 = vmul.f32 %v5268_v3, %v4337_v53  ;;  %v2458_v25 = vmul.f32 %v5270_v7, %v4337_v53  ;;  %v1112_v42 = vld [vmem:[#allocation2 + $0x110] sm:$0x8] }
 0x242   : > { %v2308_v59 = vrot.slane %v2238_v44, 1  ;;  %v3667_v38 = vsel %vm3594_vm10, %v3665_v58, %v3666_v41  ;;  %v3669_v36 = vsel %vm3594_vm10, %v3666_v41, %v3668_v57  ;;  %v2309_v26 = vrot.slane %v2239_v2, 1  ;;  %v1169_v2 = vld [vmem:[#allocation2 + $0x118] sm:$0x10] }
 0x243   : > { %v2564_v62 = vrot.slane %v2456_v43, 2  ;;  %v3721_v14 = vpack.c.bf16 %v3669_v36, %v3667_v38  ;;  %v2565_v50 = vrot.slane %v2457_v5, 2  ;;  %v2567_v54 = vrot.slane %v2458_v25, 2 }
 0x244   : > { %v2404_v56 = vadd.f32 %v2308_v59, %v2192_v20  ;;  %v2310_v22 = vsel %vm1604_vm8, %v2308_v59, %v2309_v26  ;;  %v2406_v40 = vadd.f32 %v2309_v26, %v2194_v23  ;;  %v2767_v30 = vunpack.c.l.bf16 %v5415_v4 }
 0x245   : > { %v5424_v39 = vunpack.c.h.bf16 %v5415_v4  ;;  %4019 = vmatprep.subr.bf16.mxu1 %v3721_v14  ;;  %v2405_v49 = vadd.f32 %v2310_v22, %v2193_v29  ;;  %v2566_v46 = vsel %vm1849_vm9, %v2564_v62, %v2565_v50  ;;  %v2568_v47 = vsel %vm1849_vm9, %v2565_v50, %v2567_v54 }
 0x246   : > { %v2680_v32 = vadd.f32 %v2564_v62, %v2404_v56  ;;  %v2682_v37 = vadd.f32 %v2568_v47, %v2406_v40  ;;  %v5429_v9 = vunpack.c.l.bf16 %v5419_v27  ;;  %v2770_v10 = vunpack.c.h.bf16 %v5419_v27 }
 0x247   : > { %v2829_v45 = vmul.f32 %v4339_v55, %v2767_v30  ;;  %v2681_v58 = vadd.f32 %v2566_v46, %v2405_v49  ;;  %v2830_v60 = vmul.f32 %v4339_v55, %v5424_v39  ;;  %v2923_v31 = vmul.f32 %v4348_v13, %v5424_v39  ;;  %v5458_v49 = vld [vmem:[#allocation2] sm:$0xff] }
 0x248   : > { %v3141_v57 = vmul.f32 %v4353_v21, %v5424_v39  ;;  %v2831_v20 = vmul.f32 %v4339_v55, %v5429_v9  ;;  %v2924_v41 = vmul.f32 %v4348_v13, %v5429_v9  ;;  %v3142_v29 = vmul.f32 %v4353_v21, %v5429_v9 }
 0x249   : > { %v2877_v44 = vadd.f32 %v2829_v45, %v2680_v32  ;;  %v2878_v43 = vadd.f32 %v2830_v60, %v2681_v58  ;;  %v2993_v23 = vrot.slane %v2923_v31, 1  ;;  %v3143_v59 = vmul.f32 %v4353_v21, %v2770_v10 }
 0x24a   : > { %v3249_v5 = vrot.slane %v3141_v57, 2  ;;  %v2879_v25 = vadd.f32 %v2831_v20, %v2682_v37  ;;  %v2994_v38 = vrot.slane %v2924_v41, 1  ;;  %v3250_v36 = vrot.slane %v3142_v29, 2 }
 0x24b   : > { %v1113_v26 = vsel %vm4246_vm6, 0, %v1112_v42  ;;  %v3089_v62 = vadd.f32 %v2993_v23, %v2877_v44  ;;  %v3252_v14 = vrot.slane %v3143_v59, 2  ;;  %v1170_v56 = vsel %vm4250_vm7, 0, %v1169_v2 }
 0x24c   : > { %1114 = vst [vmem:[#allocation2 + $0x110] sm:$0x8] %v1113_v26  ;;  %v1485_v50 = vmul.f32 %v5179_v6, %v4314_v17  ;;  %v2995_v54 = vsel %vm1604_vm8, %v2993_v23, %v2994_v38  ;;  %v3091_v22 = vadd.f32 %v2994_v38, %v2879_v25  ;;  %v3251_v40 = vsel %vm1849_vm9, %v3249_v5, %v3250_v36 }
 0x24d   : > { %1171 = vst [vmem:[#allocation2 + $0x118] sm:$0x10] %v1170_v56  ;;  %1335 = vst [vmem:[#allocation2 + $0x110] sm:$0xff] %v5458_v49  ;;  %v1486_v18 = vmul.f32 %v5181_v1, %v4314_v17  ;;  %v3090_v46 = vadd.f32 %v2995_v54, %v2878_v43  ;;  %v3253_v19 = vsel %vm1849_vm9, %v3250_v36, %v3252_v14 }
 0x24e   : > { %v3365_v47 = vadd.f32 %v3249_v5, %v3089_v62  ;;  %1336 = vst [vmem:[#allocation2 + $0x118] sm:$0xff] %v5458_v49  ;;  %v1487_v6 = vmul.f32 %v5184_v24, %v4314_v17  ;;  %v3367_v32 = vadd.f32 %v3253_v19, %v3091_v22  ;;  %v1570_v37 = vmul.f32 %v5181_v1, %v4303_v0 }
 0x24f   : > { %v1571_v45 = vmul.f32 %v5184_v24, %v4303_v0  ;;  %v1798_v58 = vmul.f32 %v5181_v1, %v4308_v8  ;;  %v3366_v60 = vadd.f32 %v3251_v40, %v3090_v46  ;;  %v1799_v57 = vmul.f32 %v5184_v24, %v4308_v8 }
 0x250   : > { %v3420_v31 = vadd.f32 %v5389_v12, %v3365_v47  ;;  %v1800_v42 = vmul.f32 %v5187_v16, %v4308_v8  ;;  %v3422_v20 = vadd.f32 %v5389_v12, %v3367_v32  ;;  %v1650_v44 = vrot.slane %v1570_v37, 1 }
 0x251   : > { %v1651_v41 = vrot.slane %v1571_v45, 1  ;;  %v1925_v29 = vrot.slane %v1798_v58, 2  ;;  %v3421_v2 = vadd.f32 %v5389_v12, %v3366_v60  ;;  %v1926_v23 = vrot.slane %v1799_v57, 2 }
 0x252   : > { %v3468_v43 = vmax.f32 %v3420_v31, 0.0  ;;  %v1928_v59 = vrot.slane %v1800_v42, 2  ;;  %v3470_v1 = vmax.f32 %v3422_v20, 0.0  ;;  %v1746_v25 = vadd.f32 %v1650_v44, %v1485_v50 }
 0x253   : > { %v1652_v5 = vsel %vm1604_vm8, %v1650_v44, %v1651_v41  ;;  %v1748_v38 = vadd.f32 %v1651_v41, %v1487_v6  ;;  %v3469_v36 = vmax.f32 %v3421_v2, 0.0  ;;  %v1927_v16 = vsel %vm1849_vm9, %v1925_v29, %v1926_v23 }
 0x254   : > { %v3516_v24 = vmin.f32 %v3468_v43, 6.0  ;;  %v1747_v26 = vadd.f32 %v1652_v5, %v1486_v18  ;;  %v3518_v62 = vmin.f32 %v3470_v1, 6.0  ;;  %v1929_v14 = vsel %vm1849_vm9, %v1926_v23, %v1928_v59 }
 0x255   : > { %v2023_v56 = vadd.f32 %v1925_v29, %v1746_v25  ;;  %v2171_v54 = vmul.f32 %v2799_v11, %v4331_v51  ;;  %v3517_v22 = vmin.f32 %v3469_v36, 6.0  ;;  %v2025_v19 = vadd.f32 %v1929_v14, %v1748_v38 }
 0x256   : > { %v3625_v40 = vrot.slane %v3516_v24, 7  ;;  %v2024_v46 = vadd.f32 %v1927_v16, %v1747_v26  ;;  %v3628_v47 = vrot.slane %v3518_v62, 7  ;;  %v2172_v50 = vmul.f32 %v5345_v15, %v4331_v51 }
 0x257   : > { %v2173_v18 = vmul.f32 %v5348_v33, %v4331_v51  ;;  %v2219_v6 = vadd.f32 %v2171_v54, %v2023_v56  ;;  %v3626_v32 = vrot.slane %v3517_v22, 7  ;;  %v2256_v37 = vmul.f32 %v5345_v15, %v4334_v52 }
 0x258   : > { %v2257_v35 = vmul.f32 %v5348_v33, %v4334_v52  ;;  %v2483_v11 = vmul.f32 %v5345_v15, %v4337_v53  ;;  %v2220_v45 = vadd.f32 %v2172_v50, %v2024_v46  ;;  %v2484_v60 = vmul.f32 %v5348_v33, %v4337_v53 }
 0x259   : > { %v2221_v58 = vadd.f32 %v2173_v18, %v2025_v19  ;;  %v2485_v31 = vmul.f32 %v2802_v28, %v4337_v53  ;;  %v3627_v57 = vsel %vm3594_vm10, %v3625_v40, %v3626_v32  ;;  %v3629_v42 = vsel %vm3594_vm10, %v3626_v32, %v3628_v47 }
 0x25a   : > { %v2335_v20 = vrot.slane %v2256_v37, 1  ;;  %v2336_v44 = vrot.slane %v2257_v35, 1  ;;  %v3713_v41 = vpack.c.bf16 %v3629_v42, %v3627_v57  ;;  %v2609_v29 = vrot.slane %v2483_v11, 2 }
 0x25b   : > { %v2610_v2 = vrot.slane %v2484_v60, 2  ;;  %v2612_v43 = vrot.slane %v2485_v31, 2  ;;  %v2803_v33 = vunpack.c.l.bf16 %v5458_v49  ;;  %v2804_v5 = vunpack.c.h.bf16 %v5458_v49 }
 0x25c   : > { %v2337_v15 = vsel %vm1604_vm8, %v2335_v20, %v2336_v44  ;;  %v2431_v23 = vadd.f32 %v2335_v20, %v2219_v6  ;;  %v2433_v59 = vadd.f32 %v2336_v44, %v2221_v58  ;;  %4020 = vmatpush3.bf16.xpose.msra.mxu1 %v3713_v41  ;;  %v1461_v47 = vmul.f32 %v5262_v34, %v4314_v17 }
 0x25d   : > { %v2432_v1 = vadd.f32 %v2337_v15, %v2220_v45  ;;  %v2611_v63 = vsel %vm1849_vm9, %v2609_v29, %v2610_v2  ;;  %v2613_v28 = vsel %vm1849_vm9, %v2610_v2, %v2612_v43  ;;  %v2856_v36 = vmul.f32 %v4339_v55, %v2803_v33 }
 0x25e   : > { %v2707_v25 = vadd.f32 %v2609_v29, %v2431_v23  ;;  %v2709_v38 = vadd.f32 %v2613_v28, %v2433_v59  ;;  %v2942_v24 = vmul.f32 %v4348_v13, %v2803_v33  ;;  %v2857_v16 = vmul.f32 %v4339_v55, %v2804_v5 }
 0x25f   : > { %v2708_v26 = vadd.f32 %v2611_v63, %v2432_v1  ;;  %v2941_v62 = vmul.f32 %v4348_v13, %v2804_v5  ;;  %v3168_v14 = vmul.f32 %v4353_v21, %v2804_v5  ;;  %v3169_v40 = vmul.f32 %v4353_v21, %v2803_v33 }
 0x260   : > { %v2904_v56 = vadd.f32 %v2856_v36, %v2707_v25  ;;  %v2906_v54 = vadd.f32 %v2856_v36, %v2709_v38  ;;  %v3021_v22 = vrot.slane %v2942_v24, 1  ;;  %v1462_v6 = vmul.f32 %v5264_v48, %v4314_v17 }
 0x261   : > { %v2905_v46 = vadd.f32 %v2857_v16, %v2708_v26  ;;  %v3020_v49 = vrot.slane %v2941_v62, 1  ;;  %v3294_v19 = vrot.slane %v3168_v14, 2  ;;  %v3295_v18 = vrot.slane %v3169_v40, 2 }
 0x262   : > { %v3118_v50 = vadd.f32 %v3021_v22, %v2906_v54  ;;  %v1463_v32 = vmul.f32 %v5268_v3, %v4314_v17  ;;  %v1554_v11 = vmul.f32 %v5264_v48, %v4303_v0  ;;  %v1555_v45 = vmul.f32 %v5268_v3, %v4303_v0 }
 0x263   : > { %v3022_v37 = vsel %vm1604_vm8, %v3020_v49, %v3021_v22  ;;  %v3116_v35 = vadd.f32 %v3020_v49, %v2904_v56  ;;  %v3296_v34 = vsel %vm1849_vm9, %v3294_v19, %v3295_v18  ;;  %v3298_v60 = vsel %vm1849_vm9, %v3295_v18, %v3294_v19  ;;  %v2725_v22 = vld [vmem:[#allocation2 + $0x90] sm:$0xff] }
 0x264   : > { %v3117_v58 = vadd.f32 %v3022_v37, %v2905_v46  ;;  %v1774_v31 = vmul.f32 %v5264_v48, %v4308_v8  ;;  %v3394_v42 = vadd.f32 %v3298_v60, %v3118_v50  ;;  %v1626_v17 = vrot.slane %v1554_v11, 1 }
 0x265   : > { %v3392_v57 = vadd.f32 %v3294_v19, %v3116_v35  ;;  %v1627_v20 = vrot.slane %v1555_v45, 1  ;;  %v1775_v41 = vmul.f32 %v5268_v3, %v4308_v8  ;;  %v1776_v29 = vmul.f32 %v5270_v7, %v4308_v8 }
 0x266   : > { %v3393_v44 = vadd.f32 %v3296_v34, %v3117_v58  ;;  %v1885_v0 = vrot.slane %v1774_v31, 2  ;;  %v3449_v43 = vadd.f32 %v5389_v12, %v3394_v42  ;;  %v1722_v23 = vadd.f32 %v1626_v17, %v1461_v47 }
 0x267   : > { %v3447_v2 = vadd.f32 %v5389_v12, %v3392_v57  ;;  %v1628_v15 = vsel %vm1604_vm8, %v1626_v17, %v1627_v20  ;;  %v1724_v33 = vadd.f32 %v1627_v20, %v1463_v32  ;;  %v1886_v1 = vrot.slane %v1775_v41, 2  ;;  %v2726_v32 = vld [vmem:[#allocation2 + $0x98] sm:$0xff] }
 0x268   : > { %v3448_v48 = vadd.f32 %v5389_v12, %v3393_v44  ;;  %v1723_v59 = vadd.f32 %v1628_v15, %v1462_v6  ;;  %v3497_v28 = vmax.f32 %v3449_v43, 0.0  ;;  %v1888_v5 = vrot.slane %v1776_v29, 2 }
 0x269   : > { %v3495_v63 = vmax.f32 %v3447_v2, 0.0  ;;  %v1999_v3 = vadd.f32 %v1885_v0, %v1722_v23  ;;  %v1887_v8 = vsel %vm1849_vm9, %v1885_v0, %v1886_v1  ;;  %v2147_v7 = vmul.f32 %v2767_v30, %v4331_v51 }
 0x26a   : > { %v3496_v25 = vmax.f32 %v3448_v48, 0.0  ;;  %v2148_v38 = vmul.f32 %v5424_v39, %v4331_v51  ;;  %v3545_v24 = vmin.f32 %v3497_v28, 6.0  ;;  %v1889_v26 = vsel %vm1849_vm9, %v1886_v1, %v1888_v5 }
 0x26b   : > { %v3543_v36 = vmin.f32 %v3495_v63, 6.0  ;;  %v2000_v16 = vadd.f32 %v1887_v8, %v1723_v59  ;;  %v2001_v14 = vadd.f32 %v1889_v26, %v1724_v33  ;;  %v2149_v56 = vmul.f32 %v5429_v9, %v4331_v51 }
 0x26c   : > { %v3544_v62 = vmin.f32 %v3496_v25, 6.0  ;;  %v2195_v54 = vadd.f32 %v2147_v7, %v1999_v3  ;;  %v3673_v46 = vrot.slane %v3545_v24, 7  ;;  %v2240_v4 = vmul.f32 %v5424_v39, %v4334_v52 }
 0x26d   : > { %v3670_v40 = vrot.slane %v3543_v36, 7  ;;  %v2196_v49 = vadd.f32 %v2148_v38, %v2000_v16  ;;  %v2197_v19 = vadd.f32 %v2149_v56, %v2001_v14  ;;  %v2241_v47 = vmul.f32 %v5429_v9, %v4334_v52 }
 0x26e   : > { %v3671_v30 = vrot.slane %v3544_v62, 7  ;;  %v2459_v50 = vmul.f32 %v5424_v39, %v4337_v53  ;;  %v2311_v18 = vrot.slane %v2240_v4, 1  ;;  %v2460_v51 = vmul.f32 %v5429_v9, %v4337_v53 }
 0x26f   : > { %v2461_v6 = vmul.f32 %v2770_v10, %v4337_v53  ;;  %v2771_v37 = vunpack.c.l.bf16 %v2725_v22  ;;  %v2312_v45 = vrot.slane %v2241_v47, 1  ;;  %v2772_v9 = vunpack.c.h.bf16 %v2725_v22 }
 0x270   : > { %v3672_v35 = vsel %vm3594_vm10, %v3670_v40, %v3671_v30  ;;  %v3674_v11 = vsel %vm3594_vm10, %v3671_v30, %v3673_v46  ;;  %v2569_v58 = vrot.slane %v2459_v50, 2  ;;  %v2407_v34 = vadd.f32 %v2311_v18, %v2195_v54 }
 0x271   : > { %v3722_v52 = vpack.c.bf16 %v3674_v11, %v3672_v35  ;;  %v2570_v60 = vrot.slane %v2460_v51, 2  ;;  %v2572_v39 = vrot.slane %v2461_v6, 2  ;;  %v2313_v31 = vsel %vm1604_vm8, %v2311_v18, %v2312_v45  ;;  %v3772_v11 = vld [vmem:[%s550_s24 + $0x8] sm:$0xff] }
 0x272   : > { %v2409_v57 = vadd.f32 %v2312_v45, %v2197_v19  ;;  %v2773_v42 = vunpack.c.l.bf16 %v2726_v32  ;;  %v2408_v27 = vadd.f32 %v2313_v31, %v2196_v49  ;;  %v2683_v17 = vadd.f32 %v2569_v58, %v2407_v34 }
 0x273   : > { %4021 = vmatprep.subr.bf16.mxu1 %v3722_v52  ;;  %v2571_v53 = vsel %vm1849_vm9, %v2569_v58, %v2570_v60  ;;  %v2573_v10 = vsel %vm1849_vm9, %v2570_v60, %v2572_v39  ;;  %v2774_v44 = vunpack.c.h.bf16 %v2726_v32  ;;  %v2832_v41 = vmul.f32 %v4339_v55, %v2771_v37  ;;  %v3771_v32 = vld [vmem:[%s550_s24] sm:$0xff] }
 0x274   : > { %v2685_v20 = vadd.f32 %v2573_v10, %v2409_v57  ;;  %v2833_v29 = vmul.f32 %v4339_v55, %v2772_v9  ;;  %v2684_v0 = vadd.f32 %v2571_v53, %v2408_v27  ;;  %v2834_v2 = vmul.f32 %v4339_v55, %v2773_v42 }
 0x275   : > { %v2925_v43 = vmul.f32 %v4348_v13, %v2772_v9  ;;  %v2926_v15 = vmul.f32 %v4348_v13, %v2773_v42  ;;  %v2880_v23 = vadd.f32 %v2832_v41, %v2683_v17  ;;  %v3144_v48 = vmul.f32 %v4353_v21, %v2772_v9 }
 0x276   : > { %v3145_v59 = vmul.f32 %v4353_v21, %v2773_v42  ;;  %v3146_v33 = vmul.f32 %v4353_v21, %v2774_v44  ;;  %v2881_v1 = vadd.f32 %v2833_v29, %v2684_v0  ;;  %v2882_v63 = vadd.f32 %v2834_v2, %v2685_v20 }
 0x277   : > { %v2996_v28 = vrot.slane %v2925_v43, 1  ;;  %v2997_v5 = vrot.slane %v2926_v15, 1  ;;  %v3254_v3 = vrot.slane %v3144_v48, 2 }
 0x278   : > { %v3255_v25 = vrot.slane %v3145_v59, 2  ;;  %v3257_v8 = vrot.slane %v3146_v33, 2 }
 0x279   : > { %v2998_v55 = vsel %vm1604_vm8, %v2996_v28, %v2997_v5  ;;  %v3092_v7 = vadd.f32 %v2996_v28, %v2880_v23  ;;  %v3094_v38 = vadd.f32 %v2997_v5, %v2882_v63 }
 0x27a   : > { %v3093_v36 = vadd.f32 %v2998_v55, %v2881_v1  ;;  %v3258_v13 = vsel %vm1849_vm9, %v3255_v25, %v3257_v8  ;;  %v3256_v24 = vsel %vm1849_vm9, %v3254_v3, %v3255_v25 }
 0x27b   : > { %v3368_v26 = vadd.f32 %v3254_v3, %v3092_v7  ;;  %v3370_v16 = vadd.f32 %v3258_v13, %v3094_v38 }
 0x27c   : > { %v3369_v62 = vadd.f32 %v3256_v24, %v3093_v36 }
 0x27d   : > { %v3423_v21 = vadd.f32 %v5389_v12, %v3368_v26  ;;  %v3425_v14 = vadd.f32 %v5389_v12, %v3370_v16 }
 0x27e   : > { %v3424_v56 = vadd.f32 %v5389_v12, %v3369_v62 }
 0x27f   : > { %v3471_v54 = vmax.f32 %v3423_v21, 0.0  ;;  %v3473_v22 = vmax.f32 %v3425_v14, 0.0 }
 0x280   : > { %v3472_v40 = vmax.f32 %v3424_v56, 0.0 }
 0x281   : > { %v3519_v46 = vmin.f32 %v3471_v54, 6.0  ;;  %v3521_v49 = vmin.f32 %v3473_v22, 6.0 }
 0x282   : > { %v3520_v4 = vmin.f32 %v3472_v40, 6.0 }
 0x283   : > { %v3630_v30 = vrot.slane %v3519_v46, 7  ;;  %v3633_v19 = vrot.slane %v3521_v49, 7 }
 0x284   : > { %v3631_v47 = vrot.slane %v3520_v4, 7 }
 0x286   : > { %v3632_v50 = vsel %vm3594_vm10, %v3630_v30, %v3631_v47  ;;  %v3634_v18 = vsel %vm3594_vm10, %v3631_v47, %v3633_v19 }
 0x287   : > { %v3714_v51 = vpack.c.bf16 %v3634_v18, %v3632_v50 }
 0x288   : > { %v3728_v12 = vpop.permute.xlu0 %3727 }
 0x289   : > { %4022 = vmatpush3.bf16.xpose.msra.mxu1 %v3714_v51 }
 0x290   : > { %4024 = vmatmul.mubr.bf16.vlgmr.msra.gmra.mrb[0].mxu1 %v5222_v61 }
 0x363   : > { %v3764_v6 = vpop.f32.mrb[0].mxu1 }
 0x364   : > { %v3765_v37 = vadd.f32 %v3764_v6, %v3728_v12  ;;  %v3766_v35 = vpop.f32.mrb[1].mxu1 }
 0x365   : > { %v3767_v45 = vadd.f32 %v3766_v35, %v3728_v12  ;;  %v3768_v58 = vpop.f32.mrb[2].mxu1 }
 0x366   : > { %v3773_v52 = vadd.f32 %v3771_v32, %v3765_v37  ;;  %v3769_v34 = vpop.f32.mrb[3].mxu1 }
 0x367   : > { %v3774_v61 = vadd.f32 %v3772_v11, %v3767_v45 }
 0x368   : > { %3775 = vst [vmem:[%s560_s26] sm:$0xff] %v3773_v52 }
 0x369   : > { %3776 = vst [vmem:[%s560_s26 + $0x8] sm:$0xff] %v3774_v61 }
 0x36a PF: > { %s20_s13 = sadd.s32 1, %s4127_s13   ;;  %s5612_s11 = smov %s4123_s12 }
 0x36b   : > { %p17_p5 = scmp.ge.s32.totalorder %s20_s13, 6   ;;  %s5613_s12 = smov %s5615_s14 }
 0x36d   :  { %19 = sbr.rel (!%p17_p5) target bundleno = 2 (0x2), region = 119 }

</bundles_post_ra>
